<compile_context>
chip_gen: v7x
topology: tpu7x:2x2x1
jax: 0.10.0
libtpu: 0.0.40
codegen_flags: <defaults>
</compile_context>

<pallas_src>
import functools

import jax
import jax.numpy as jnp
from jax import lax
from jax.experimental import pallas as pl
from jax.experimental.pallas import tpu as pltpu

# ---- hyperparameters (MambaBlock(dim=32), Mamba(d_state=16, d_conv=4, expand=4)) ----
DIM      = 32                    # d_model
EXPAND   = 4
D_INNER  = EXPAND * DIM          # 128
D_STATE  = 16
D_CONV   = 4
DT_RANK  = -(-DIM // 16)         # ceil(d_model/16) = 2
RMS_EPS  = 1e-5
SEQ_LEN  = 8                     # L  (x carries L * DIM features)
BATCH    = 2
SD       = D_STATE * D_INNER     # 2048: state flattened into lanes, col = s*D_INNER + d


def _silu(v):
    return v * (1.0 / (1.0 + jnp.exp(-v)))


def _softplus(v):
    # matches torch.nn.functional.softplus(beta=1, threshold=20)
    return jnp.where(v > 20.0, v, jnp.log(1.0 + jnp.exp(jnp.minimum(v, 20.0))))


# ------------------------------- Pallas kernel -------------------------------
def mamba_block_kernel(bt, seq_len,
                       x_ref, rms_w_ref, w_in_ref, w_conv_ref, b_conv_ref,
                       w_fused_ref, b_dt_ref, a_flat_ref, d_ref, w_out_ref,
                       o_ref):
    # Rows inside this tile are TIME-MAJOR: row r = i*bt + b  (i = seq pos, b = batch).
    rows = bt * seq_len
    bf16 = jnp.bfloat16

    x = x_ref[...]                                              # (rows, DIM) f32

    # ---- RMSNorm (Block.norm, eps=1e-5), f32 ----
    ms = jnp.mean(x * x, axis=-1, keepdims=True)
    xn = x * lax.rsqrt(ms + RMS_EPS) * rms_w_ref[...]

    # ---- in_proj (no bias): all rows in one MXU matmul, bf16 operands / f32 acc ----
    xz = jnp.dot(xn.astype(bf16), w_in_ref[...],
                 preferred_element_type=jnp.float32)            # (rows, 2*D_INNER)
    xc = xz[:, :D_INNER]
    zg = xz[:, D_INNER:]

    # ---- depthwise causal Conv1d (k=4, pad=3, truncated to L) + SiLU ----
    # One batched shifted-add per tap over the whole tile.  Because rows are
    # time-major, "s steps back in time" == "s*bt rows up"; zero-padding the first
    # s*bt rows is exactly the causal padding and prevents any cross-sequence mix.
    conv = b_conv_ref[...] + xc * w_conv_ref[D_CONV - 1:D_CONV, :]
    for s in range(1, D_CONV):
        shifted = jnp.concatenate(
            [jnp.zeros((s * bt, D_INNER), jnp.float32), xc[:rows - s * bt, :]], axis=0)
        conv = conv + shifted * w_conv_ref[D_CONV - 1 - s:D_CONV - s, :]
    u = _silu(conv)                                             # (rows, D_INNER) f32
    u_bf = u.astype(bf16)

    # ---- fused dt / B / C projection: ONE MXU matmul.  The wrapper pre-expanded the
    #      weights so that column s*D_INNER + d of each block already carries the
    #      lane-flattened (s, d) layout of the state -> no in-kernel transposes. ----
    proj = jnp.dot(u_bf, w_fused_ref[...],
                   preferred_element_type=jnp.float32)          # (rows, 3*SD)
    dt_t = _softplus(proj[:, :SD] + b_dt_ref[...])              # dt[r,d], tiled over s
    b_e  = proj[:, SD:2 * SD]                                   # B[r,s]  at col s*D+d
    c_e  = proj[:, 2 * SD:]                                     # C[r,s]  at col s*D+d

    # ---- hoisted scan inputs (vectorized, no per-row loop) ----
    u_t = jnp.concatenate([u] * D_STATE, axis=1)                # u[r,d] tiled -> (rows, SD)
    da  = jnp.exp(dt_t * a_flat_ref[...])                       # exp(dt*A)
    dbu = b_e * (dt_t * u_t)                                    # B * dt * u

    # ---- selective scan, batched over the bt sequences: serial chain = L steps,
    #      two VPU FMAs per step on the (bt, SD) state ----
    state = jnp.zeros((bt, SD), jnp.float32)
    states = []
    for i in range(seq_len):
        lo = i * bt
        state = da[lo:lo + bt, :] * state + dbu[lo:lo + bt, :]
        states.append(state)
    st = jnp.concatenate(states, axis=0)                        # (rows, SD), time-major

    # ---- deferred C . state contraction, entirely in f32 (no MXU, no bf16 state):
    #      one elementwise mul + 15 aligned 128-lane slab adds ----
    prod = c_e * st
    y = prod[:, :D_INNER]
    for s in range(1, D_STATE):
        y = y + prod[:, s * D_INNER:(s + 1) * D_INNER]

    y = y + u * d_ref[...]                                      # D skip connection
    y = y * _silu(zg)                                           # gate

    # ---- out_proj + Block residual + final `+ input_` skip  (=> mamba + 2*x) ----
    mo = jnp.dot(y.astype(bf16), w_out_ref[...],
                 preferred_element_type=jnp.float32)            # (rows, DIM)
    o_ref[...] = mo + 2.0 * x


# ------------------------------- wrapper -------------------------------
def _pick_bt(B, L):
    """Rows per grid step ~ MXU row dim (<=256); prefer >=2 chunky 'parallel' steps
    (v7x dual TensorCore) when the batch allows it; keep row blocks 8-aligned."""
    cand = [d for d in range(1, B + 1)
            if B % d == 0 and d * L <= 256 and (d == B or (d * L) % 8 == 0)]
    if not cand:
        return B
    multi = [d for d in cand if d < B and d * L >= 64]
    return max(multi) if multi else max(cand)


def prepare_params(p):
    """One-time kernel-side weight prep: fuse dt_proj, lane-expand B/C, cast to bf16.
    Hoisted out of the forward call so no per-call weight HBM traffic remains."""
    bf16 = jnp.bfloat16
    hp = lax.Precision.HIGHEST
    # rank-2 dt path folded into a single (D_INNER, D_INNER) matrix, then tiled over s
    w_dtall = jnp.dot(p['w_dt'], p['w_dtproj'], precision=hp)        # (128, 128)
    w_dt_e = jnp.tile(w_dtall, (1, D_STATE))                         # (128, SD)
    # lane expansion: column s*D_INNER + d of the B/C block carries w_B/C[:, s]
    w_b_e = jnp.repeat(p['w_B'], D_INNER, axis=1)                    # (128, SD)
    w_c_e = jnp.repeat(p['w_C'], D_INNER, axis=1)                    # (128, SD)
    w_fused = jnp.concatenate([w_dt_e, w_b_e, w_c_e], axis=1)        # (128, 3*SD)
    return dict(
        rms_w=p['rms_w'],
        w_in=p['w_in'].astype(bf16),
        w_conv=p['w_conv'],
        b_conv=p['b_conv'],
        w_fused=w_fused.astype(bf16),
        b_dt=jnp.tile(p['b_dtproj'], (1, D_STATE)),                  # (1, SD)
        a_flat=p['A_T'].reshape(1, SD),                              # col s*D+d -> A_T[s, d]
        d=p['D'],
        w_out=p['w_out'].astype(bf16),
    )


@jax.jit
def pallas_mamba_block(x_flat, kp):
    B, N = x_flat.shape
    L = N // DIM
    assert N == L * DIM
    bt = _pick_bt(B, L)
    G = B // bt
    rows = bt * L

    # (B, N) == (B, L, DIM)  ->  time-major rows inside each batch tile:
    #   global row = g*rows + i*bt + b    (free XLA layout plumbing, inside jit)
    x_tm = (x_flat.reshape(G, bt, L, DIM)
                  .transpose(0, 2, 1, 3)
                  .reshape(B * L, DIM))

    args = (x_tm, kp['rms_w'], kp['w_in'], kp['w_conv'], kp['b_conv'],
            kp['w_fused'], kp['b_dt'], kp['a_flat'], kp['d'], kp['w_out'])

    in_specs = ([pl.BlockSpec((rows, DIM), lambda g: (g, 0))]
                + [pl.BlockSpec(a.shape, lambda g: (0, 0)) for a in args[1:]])
    out_spec = pl.BlockSpec((rows, DIM), lambda g: (g, 0))

    out_tm = pl.pallas_call(
        functools.partial(mamba_block_kernel, bt, L),
        out_shape=jax.ShapeDtypeStruct((B * L, DIM), jnp.float32),
        grid=(G,),
        in_specs=in_specs,
        out_specs=out_spec,
        compiler_params=pltpu.CompilerParams(dimension_semantics=("parallel",)),
    )(*args)

    # undo the time-major permutation and flatten back to (B, N)
    return (out_tm.reshape(G, L, bt, DIM)
                  .transpose(0, 2, 1, 3)
                  .reshape(B, N))


# ------------------------------- pure-JAX reference -------------------------------
def ref_forward(x_flat, p):
    B, N = x_flat.shape
    L = N // DIM
    xb = x_flat.reshape(B, L, DIM)
    hp = lax.Precision.HIGHEST

    def one(x):
        ms = jnp.mean(x * x, axis=-1, keepdims=True)
        xn = x * lax.rsqrt(ms + RMS_EPS) * p['rms_w']
        xz = jnp.dot(xn, p['w_in'], precision=hp)
        xc, zg = xz[:, :D_INNER], xz[:, D_INNER:]
        xp = jnp.concatenate([jnp.zeros((D_CONV - 1, D_INNER), jnp.float32), xc], 0)
        conv = p['b_conv']
        for k in range(D_CONV):
            conv = conv + xp[k:k + L, :] * p['w_conv'][k:k + 1, :]
        u = _silu(conv)
        dt = _softplus(jnp.dot(jnp.dot(u, p['w_dt'], precision=hp),
                               p['w_dtproj'], precision=hp) + p['b_dtproj'])
        Bm = jnp.dot(u, p['w_B'], precision=hp)              # (L, D_STATE)
        Cm = jnp.dot(u, p['w_C'], precision=hp)              # (L, D_STATE)
        state = jnp.zeros((D_STATE, D_INNER), jnp.float32)
        ys = []
        for i in range(L):
            da = jnp.exp(dt[i:i + 1] * p['A_T'])                      # (D_STATE, D_INNER)
            dbu = Bm[i][:, None] * (dt[i:i + 1] * u[i:i + 1])         # (D_STATE, D_INNER)
            state = da * state + dbu
            ys.append(jnp.dot(Cm[i:i + 1], state, precision=hp))
        y = jnp.concatenate(ys, 0) + u * p['D']
        y = y * _silu(zg)
        return jnp.dot(y, p['w_out'], precision=hp) + x + x

    return jax.vmap(one)(xb).reshape(B, N)


# ------------------------------- deterministic params -------------------------------
def init_params(key):
    ks = jax.random.split(key, 8)
    s = 0.05
    p = {}
    p['rms_w']    = jnp.ones((1, DIM), jnp.float32)
    p['w_in']     = s * jax.random.normal(ks[0], (DIM, 2 * D_INNER), jnp.float32)
    p['w_conv']   = s * jax.random.normal(ks[1], (D_CONV, D_INNER), jnp.float32)
    p['b_conv']   = jnp.zeros((1, D_INNER), jnp.float32)
    p['w_dt']     = s * jax.random.normal(ks[2], (D_INNER, DT_RANK), jnp.float32)
    p['w_dtproj'] = s * jax.random.normal(ks[3], (DT_RANK, D_INNER), jnp.float32)
    # dt bias = softplus^-1(dt) with dt in [1e-3, 1e-1]  (mamba-style init, stable scan)
    dt0 = jnp.exp(jax.random.uniform(ks[4], (D_INNER,), jnp.float32)
                  * (jnp.log(0.1) - jnp.log(1e-3)) + jnp.log(1e-3))
    p['b_dtproj'] = jnp.log(jnp.expm1(dt0)).reshape(1, D_INNER).astype(jnp.float32)
    p['w_B']      = s * jax.random.normal(ks[5], (D_INNER, D_STATE), jnp.float32)
    p['w_C']      = s * jax.random.normal(ks[6], (D_INNER, D_STATE), jnp.float32)
    # A = -exp(A_log) with S4D-real init; pass A^T (D_STATE, D_INNER)
    A = -jnp.broadcast_to(jnp.arange(1, D_STATE + 1, dtype=jnp.float32), (D_INNER, D_STATE))
    p['A_T']      = jnp.asarray(A.T)
    p['D']        = jnp.ones((1, D_INNER), jnp.float32)
    p['w_out']    = s * jax.random.normal(ks[7], (D_INNER, DIM), jnp.float32)
    return p


if __name__ == "__main__":
    key = jax.random.PRNGKey(0)
    pkey, xkey = jax.random.split(key)
    params = init_params(pkey)
    kparams = prepare_params(params)            # one-time weight fusion / casts
    x = jax.random.normal(xkey, (BATCH, SEQ_LEN * DIM), jnp.float32)   # module input (B, L*dim)

    out = pallas_mamba_block(x, kparams)
    out = jax.block_until_ready(out)

    ref = jax.block_until_ready(ref_forward(x, params))
    assert out.shape == (BATCH, SEQ_LEN * DIM)
    max_err = float(jnp.max(jnp.abs(out - ref)))
    assert max_err < 1e-2, f"max abs err {max_err}"
    print("KERNEL_OK")
</pallas_src>

<mosaic_0001>
module attributes {stable_mosaic.version = 11 : i64} {
  func.func @mamba_block_kernel(%arg0: i32, %arg1: memref<16x32xf32, #tpu.memory_space<vmem>>, %arg2: memref<1x32xf32, #tpu.memory_space<vmem>>, %arg3: memref<32x256xbf16, #tpu.memory_space<vmem>>, %arg4: memref<4x128xf32, #tpu.memory_space<vmem>>, %arg5: memref<1x128xf32, #tpu.memory_space<vmem>>, %arg6: memref<128x6144xbf16, #tpu.memory_space<vmem>>, %arg7: memref<1x2048xf32, #tpu.memory_space<vmem>>, %arg8: memref<1x2048xf32, #tpu.memory_space<vmem>>, %arg9: memref<1x128xf32, #tpu.memory_space<vmem>>, %arg10: memref<128x32xbf16, #tpu.memory_space<vmem>>, %arg11: memref<16x32xf32, #tpu.memory_space<vmem>>) attributes {dimension_semantics = [#tpu.dimension_semantics<parallel>], iteration_bounds = array<i64: 1>, scalar_prefetch = 0 : i64, scratch_operands = 0 : i64, tpu.core_type = #tpu.core_type<tc>, window_params = [{transform_indices = @transform_0, window_bounds = array<i64: 16, 32>}, {pipeline_mode = #tpu.pipeline_mode<synchronous>, transform_indices = @transform_1, window_bounds = array<i64: 1, 32>}, {pipeline_mode = #tpu.pipeline_mode<synchronous>, transform_indices = @transform_2, window_bounds = array<i64: 32, 256>}, {pipeline_mode = #tpu.pipeline_mode<synchronous>, transform_indices = @transform_3, window_bounds = array<i64: 4, 128>}, {pipeline_mode = #tpu.pipeline_mode<synchronous>, transform_indices = @transform_4, window_bounds = array<i64: 1, 128>}, {pipeline_mode = #tpu.pipeline_mode<synchronous>, transform_indices = @transform_5, window_bounds = array<i64: 128, 6144>}, {pipeline_mode = #tpu.pipeline_mode<synchronous>, transform_indices = @transform_6, window_bounds = array<i64: 1, 2048>}, {pipeline_mode = #tpu.pipeline_mode<synchronous>, transform_indices = @transform_7, window_bounds = array<i64: 1, 2048>}, {pipeline_mode = #tpu.pipeline_mode<synchronous>, transform_indices = @transform_8, window_bounds = array<i64: 1, 128>}, {pipeline_mode = #tpu.pipeline_mode<synchronous>, transform_indices = @transform_9, window_bounds = array<i64: 128, 32>}, {transform_indices = @transform_10, window_bounds = array<i64: 16, 32>}]} {
    %c0 = arith.constant 0 : index
    %c0_0 = arith.constant 0 : index
    %0 = vector.load %arg1[%c0, %c0_0] : memref<16x32xf32, #tpu.memory_space<vmem>>, vector<16x32xf32>
    %1 = arith.mulf %0, %0 : vector<16x32xf32>
    %cst = arith.constant dense<0.000000e+00> : vector<16xf32>
    %2 = vector.multi_reduction <add>, %1, %cst [1] : vector<16x32xf32> to vector<16xf32>
    %3 = vector.shape_cast %2 : vector<16xf32> to vector<16x1xf32>
    %cst_1 = arith.constant 3.200000e+01 : f32
    %4 = vector.broadcast %cst_1 : f32 to vector<16x1xf32>
    %5 = arith.divf %3, %4 : vector<16x1xf32>
    %cst_2 = arith.constant 9.99999974E-6 : f32
    %6 = vector.broadcast %cst_2 : f32 to vector<16x1xf32>
    %7 = arith.addf %5, %6 : vector<16x1xf32>
    %8 = math.rsqrt %7 : vector<16x1xf32>
    %9 = vector.broadcast %8 : vector<16x1xf32> to vector<16x32xf32>
    %10 = arith.mulf %0, %9 : vector<16x32xf32>
    %c0_3 = arith.constant 0 : index
    %c0_4 = arith.constant 0 : index
    %11 = vector.load %arg2[%c0_3, %c0_4] : memref<1x32xf32, #tpu.memory_space<vmem>>, vector<1x32xf32>
    %12 = vector.broadcast %11 : vector<1x32xf32> to vector<16x32xf32>
    %13 = arith.mulf %10, %12 : vector<16x32xf32>
    %14 = arith.truncf %13 : vector<16x32xf32> to vector<16x32xbf16>
    %c0_5 = arith.constant 0 : index
    %c0_6 = arith.constant 0 : index
    %15 = vector.load %arg3[%c0_5, %c0_6] : memref<32x256xbf16, #tpu.memory_space<vmem>>, vector<32x256xbf16>
    %cst_7 = arith.constant dense<0.000000e+00> : vector<16x256xf32>
    %16 = tpu.matmul %14, %15, %cst_7 {dimension_numbers = #tpu.dot_dimension_numbers<[1], [0], [0], [1], [0, 0, 1, 1], [], []>} : vector<16x32xbf16>, vector<32x256xbf16>, vector<16x256xf32> -> vector<16x256xf32>
    %17 = vector.extract_strided_slice %16 {offsets = [0, 0], sizes = [16, 128], strides = [1, 1]} : vector<16x256xf32> to vector<16x128xf32>
    %18 = vector.extract_strided_slice %16 {offsets = [0, 128], sizes = [16, 128], strides = [1, 1]} : vector<16x256xf32> to vector<16x128xf32>
    %c0_8 = arith.constant 0 : index
    %c0_9 = arith.constant 0 : index
    %19 = vector.load %arg5[%c0_8, %c0_9] : memref<1x128xf32, #tpu.memory_space<vmem>>, vector<1x128xf32>
    %c3 = arith.constant 3 : index
    %c0_10 = arith.constant 0 : index
    %20 = vector.load %arg4[%c3, %c0_10] : memref<4x128xf32, #tpu.memory_space<vmem>>, vector<1x128xf32>
    %21 = vector.broadcast %20 : vector<1x128xf32> to vector<16x128xf32>
    %22 = arith.mulf %17, %21 : vector<16x128xf32>
    %23 = vector.broadcast %19 : vector<1x128xf32> to vector<16x128xf32>
    %24 = arith.addf %23, %22 : vector<16x128xf32>
    %cst_11 = arith.constant 0.000000e+00 : f32
    %25 = vector.broadcast %cst_11 : f32 to vector<2x128xf32>
    %26 = vector.extract_strided_slice %17 {offsets = [0, 0], sizes = [14, 128], strides = [1, 1]} : vector<16x128xf32> to vector<14x128xf32>
    %27 = tpu.concatenate %25, %26 in 0 : vector<2x128xf32>, vector<14x128xf32> -> vector<16x128xf32>
    %c2 = arith.constant 2 : index
    %c0_12 = arith.constant 0 : index
    %28 = vector.load %arg4[%c2, %c0_12] : memref<4x128xf32, #tpu.memory_space<vmem>>, vector<1x128xf32>
    %29 = vector.broadcast %28 : vector<1x128xf32> to vector<16x128xf32>
    %30 = arith.mulf %27, %29 : vector<16x128xf32>
    %31 = arith.addf %24, %30 : vector<16x128xf32>
    %cst_13 = arith.constant 0.000000e+00 : f32
    %32 = vector.broadcast %cst_13 : f32 to vector<4x128xf32>
    %33 = vector.extract_strided_slice %17 {offsets = [0, 0], sizes = [12, 128], strides = [1, 1]} : vector<16x128xf32> to vector<12x128xf32>
    %34 = tpu.concatenate %32, %33 in 0 : vector<4x128xf32>, vector<12x128xf32> -> vector<16x128xf32>
    %c1 = arith.constant 1 : index
    %c0_14 = arith.constant 0 : index
    %35 = vector.load %arg4[%c1, %c0_14] : memref<4x128xf32, #tpu.memory_space<vmem>>, vector<1x128xf32>
    %36 = vector.broadcast %35 : vector<1x128xf32> to vector<16x128xf32>
    %37 = arith.mulf %34, %36 : vector<16x128xf32>
    %38 = arith.addf %31, %37 : vector<16x128xf32>
    %cst_15 = arith.constant 0.000000e+00 : f32
    %39 = vector.broadcast %cst_15 : f32 to vector<6x128xf32>
    %40 = vector.extract_strided_slice %17 {offsets = [0, 0], sizes = [10, 128], strides = [1, 1]} : vector<16x128xf32> to vector<10x128xf32>
    %41 = tpu.concatenate %39, %40 in 0 : vector<6x128xf32>, vector<10x128xf32> -> vector<16x128xf32>
    %c0_16 = arith.constant 0 : index
    %c0_17 = arith.constant 0 : index
    %42 = vector.load %arg4[%c0_16, %c0_17] : memref<4x128xf32, #tpu.memory_space<vmem>>, vector<1x128xf32>
    %43 = vector.broadcast %42 : vector<1x128xf32> to vector<16x128xf32>
    %44 = arith.mulf %41, %43 : vector<16x128xf32>
    %45 = arith.addf %38, %44 : vector<16x128xf32>
    %cst_18 = arith.constant 0.000000e+00 : f32
    %46 = vector.broadcast %cst_18 : f32 to vector<16x128xf32>
    %47 = arith.subf %46, %45 : vector<16x128xf32>
    %48 = math.exp %47 : vector<16x128xf32>
    %cst_19 = arith.constant 1.000000e+00 : f32
    %49 = vector.broadcast %cst_19 : f32 to vector<16x128xf32>
    %50 = arith.addf %49, %48 : vector<16x128xf32>
    %cst_20 = arith.constant 1.000000e+00 : f32
    %51 = vector.broadcast %cst_20 : f32 to vector<16x128xf32>
    %52 = arith.divf %51, %50 : vector<16x128xf32>
    %53 = arith.mulf %45, %52 : vector<16x128xf32>
    %54 = arith.truncf %53 : vector<16x128xf32> to vector<16x128xbf16>
    %c0_21 = arith.constant 0 : index
    %c0_22 = arith.constant 0 : index
    %55 = vector.load %arg6[%c0_21, %c0_22] : memref<128x6144xbf16, #tpu.memory_space<vmem>>, vector<128x6144xbf16>
    %cst_23 = arith.constant dense<0.000000e+00> : vector<16x6144xf32>
    %56 = tpu.matmul %54, %55, %cst_23 {dimension_numbers = #tpu.dot_dimension_numbers<[1], [0], [0], [1], [0, 0, 1, 1], [], []>} : vector<16x128xbf16>, vector<128x6144xbf16>, vector<16x6144xf32> -> vector<16x6144xf32>
    %57 = vector.extract_strided_slice %56 {offsets = [0, 0], sizes = [16, 2048], strides = [1, 1]} : vector<16x6144xf32> to vector<16x2048xf32>
    %c0_24 = arith.constant 0 : index
    %c0_25 = arith.constant 0 : index
    %58 = vector.load %arg7[%c0_24, %c0_25] : memref<1x2048xf32, #tpu.memory_space<vmem>>, vector<1x2048xf32>
    %59 = vector.broadcast %58 : vector<1x2048xf32> to vector<16x2048xf32>
    %60 = arith.addf %57, %59 : vector<16x2048xf32>
    %cst_26 = arith.constant 2.000000e+01 : f32
    %61 = vector.broadcast %cst_26 : f32 to vector<16x2048xf32>
    %62 = arith.cmpf ogt, %60, %61 : vector<16x2048xf32>
    %cst_27 = arith.constant 2.000000e+01 : f32
    %63 = vector.broadcast %cst_27 : f32 to vector<16x2048xf32>
    %64 = arith.minimumf %60, %63 : vector<16x2048xf32>
    %65 = math.exp %64 : vector<16x2048xf32>
    %cst_28 = arith.constant 1.000000e+00 : f32
    %66 = vector.broadcast %cst_28 : f32 to vector<16x2048xf32>
    %67 = arith.addf %66, %65 : vector<16x2048xf32>
    %68 = math.log %67 : vector<16x2048xf32>
    %69 = arith.select %62, %60, %68 : vector<16x2048xi1>, vector<16x2048xf32>
    %70 = vector.extract_strided_slice %56 {offsets = [0, 2048], sizes = [16, 2048], strides = [1, 1]} : vector<16x6144xf32> to vector<16x2048xf32>
    %71 = vector.extract_strided_slice %56 {offsets = [0, 4096], sizes = [16, 2048], strides = [1, 1]} : vector<16x6144xf32> to vector<16x2048xf32>
    %72 = tpu.concatenate %53, %53, %53, %53, %53, %53, %53, %53, %53, %53, %53, %53, %53, %53, %53, %53 in 1 : vector<16x128xf32>, vector<16x128xf32>, vector<16x128xf32>, vector<16x128xf32>, vector<16x128xf32>, vector<16x128xf32>, vector<16x128xf32>, vector<16x128xf32>, vector<16x128xf32>, vector<16x128xf32>, vector<16x128xf32>, vector<16x128xf32>, vector<16x128xf32>, vector<16x128xf32>, vector<16x128xf32>, vector<16x128xf32> -> vector<16x2048xf32>
    %c0_29 = arith.constant 0 : index
    %c0_30 = arith.constant 0 : index
    %73 = vector.load %arg8[%c0_29, %c0_30] : memref<1x2048xf32, #tpu.memory_space<vmem>>, vector<1x2048xf32>
    %74 = vector.broadcast %73 : vector<1x2048xf32> to vector<16x2048xf32>
    %75 = arith.mulf %69, %74 : vector<16x2048xf32>
    %76 = math.exp %75 : vector<16x2048xf32>
    %77 = arith.mulf %69, %72 : vector<16x2048xf32>
    %78 = arith.mulf %70, %77 : vector<16x2048xf32>
    %cst_31 = arith.constant 0.000000e+00 : f32
    %79 = vector.broadcast %cst_31 : f32 to vector<2x2048xf32>
    %80 = vector.extract_strided_slice %76 {offsets = [0, 0], sizes = [2, 2048], strides = [1, 1]} : vector<16x2048xf32> to vector<2x2048xf32>
    %81 = arith.mulf %80, %79 : vector<2x2048xf32>
    %82 = vector.extract_strided_slice %78 {offsets = [0, 0], sizes = [2, 2048], strides = [1, 1]} : vector<16x2048xf32> to vector<2x2048xf32>
    %83 = arith.addf %81, %82 : vector<2x2048xf32>
    %84 = vector.extract_strided_slice %76 {offsets = [2, 0], sizes = [2, 2048], strides = [1, 1]} : vector<16x2048xf32> to vector<2x2048xf32>
    %85 = arith.mulf %84, %83 : vector<2x2048xf32>
    %86 = vector.extract_strided_slice %78 {offsets = [2, 0], sizes = [2, 2048], strides = [1, 1]} : vector<16x2048xf32> to vector<2x2048xf32>
    %87 = arith.addf %85, %86 : vector<2x2048xf32>
    %88 = vector.extract_strided_slice %76 {offsets = [4, 0], sizes = [2, 2048], strides = [1, 1]} : vector<16x2048xf32> to vector<2x2048xf32>
    %89 = arith.mulf %88, %87 : vector<2x2048xf32>
    %90 = vector.extract_strided_slice %78 {offsets = [4, 0], sizes = [2, 2048], strides = [1, 1]} : vector<16x2048xf32> to vector<2x2048xf32>
    %91 = arith.addf %89, %90 : vector<2x2048xf32>
    %92 = vector.extract_strided_slice %76 {offsets = [6, 0], sizes = [2, 2048], strides = [1, 1]} : vector<16x2048xf32> to vector<2x2048xf32>
    %93 = arith.mulf %92, %91 : vector<2x2048xf32>
    %94 = vector.extract_strided_slice %78 {offsets = [6, 0], sizes = [2, 2048], strides = [1, 1]} : vector<16x2048xf32> to vector<2x2048xf32>
    %95 = arith.addf %93, %94 : vector<2x2048xf32>
    %96 = vector.extract_strided_slice %76 {offsets = [8, 0], sizes = [2, 2048], strides = [1, 1]} : vector<16x2048xf32> to vector<2x2048xf32>
    %97 = arith.mulf %96, %95 : vector<2x2048xf32>
    %98 = vector.extract_strided_slice %78 {offsets = [8, 0], sizes = [2, 2048], strides = [1, 1]} : vector<16x2048xf32> to vector<2x2048xf32>
    %99 = arith.addf %97, %98 : vector<2x2048xf32>
    %100 = vector.extract_strided_slice %76 {offsets = [10, 0], sizes = [2, 2048], strides = [1, 1]} : vector<16x2048xf32> to vector<2x2048xf32>
    %101 = arith.mulf %100, %99 : vector<2x2048xf32>
    %102 = vector.extract_strided_slice %78 {offsets = [10, 0], sizes = [2, 2048], strides = [1, 1]} : vector<16x2048xf32> to vector<2x2048xf32>
    %103 = arith.addf %101, %102 : vector<2x2048xf32>
    %104 = vector.extract_strided_slice %76 {offsets = [12, 0], sizes = [2, 2048], strides = [1, 1]} : vector<16x2048xf32> to vector<2x2048xf32>
    %105 = arith.mulf %104, %103 : vector<2x2048xf32>
    %106 = vector.extract_strided_slice %78 {offsets = [12, 0], sizes = [2, 2048], strides = [1, 1]} : vector<16x2048xf32> to vector<2x2048xf32>
    %107 = arith.addf %105, %106 : vector<2x2048xf32>
    %108 = vector.extract_strided_slice %76 {offsets = [14, 0], sizes = [2, 2048], strides = [1, 1]} : vector<16x2048xf32> to vector<2x2048xf32>
    %109 = arith.mulf %108, %107 : vector<2x2048xf32>
    %110 = vector.extract_strided_slice %78 {offsets = [14, 0], sizes = [2, 2048], strides = [1, 1]} : vector<16x2048xf32> to vector<2x2048xf32>
    %111 = arith.addf %109, %110 : vector<2x2048xf32>
    %112 = tpu.concatenate %83, %87, %91, %95, %99, %103, %107, %111 in 0 : vector<2x2048xf32>, vector<2x2048xf32>, vector<2x2048xf32>, vector<2x2048xf32>, vector<2x2048xf32>, vector<2x2048xf32>, vector<2x2048xf32>, vector<2x2048xf32> -> vector<16x2048xf32>
    %113 = arith.mulf %71, %112 : vector<16x2048xf32>
    %114 = vector.extract_strided_slice %113 {offsets = [0, 0], sizes = [16, 128], strides = [1, 1]} : vector<16x2048xf32> to vector<16x128xf32>
    %115 = vector.extract_strided_slice %113 {offsets = [0, 128], sizes = [16, 128], strides = [1, 1]} : vector<16x2048xf32> to vector<16x128xf32>
    %116 = arith.addf %114, %115 : vector<16x128xf32>
    %117 = vector.extract_strided_slice %113 {offsets = [0, 256], sizes = [16, 128], strides = [1, 1]} : vector<16x2048xf32> to vector<16x128xf32>
    %118 = arith.addf %116, %117 : vector<16x128xf32>
    %119 = vector.extract_strided_slice %113 {offsets = [0, 384], sizes = [16, 128], strides = [1, 1]} : vector<16x2048xf32> to vector<16x128xf32>
    %120 = arith.addf %118, %119 : vector<16x128xf32>
    %121 = vector.extract_strided_slice %113 {offsets = [0, 512], sizes = [16, 128], strides = [1, 1]} : vector<16x2048xf32> to vector<16x128xf32>
    %122 = arith.addf %120, %121 : vector<16x128xf32>
    %123 = vector.extract_strided_slice %113 {offsets = [0, 640], sizes = [16, 128], strides = [1, 1]} : vector<16x2048xf32> to vector<16x128xf32>
    %124 = arith.addf %122, %123 : vector<16x128xf32>
    %125 = vector.extract_strided_slice %113 {offsets = [0, 768], sizes = [16, 128], strides = [1, 1]} : vector<16x2048xf32> to vector<16x128xf32>
    %126 = arith.addf %124, %125 : vector<16x128xf32>
    %127 = vector.extract_strided_slice %113 {offsets = [0, 896], sizes = [16, 128], strides = [1, 1]} : vector<16x2048xf32> to vector<16x128xf32>
    %128 = arith.addf %126, %127 : vector<16x128xf32>
    %129 = vector.extract_strided_slice %113 {offsets = [0, 1024], sizes = [16, 128], strides = [1, 1]} : vector<16x2048xf32> to vector<16x128xf32>
    %130 = arith.addf %128, %129 : vector<16x128xf32>
    %131 = vector.extract_strided_slice %113 {offsets = [0, 1152], sizes = [16, 128], strides = [1, 1]} : vector<16x2048xf32> to vector<16x128xf32>
    %132 = arith.addf %130, %131 : vector<16x128xf32>
    %133 = vector.extract_strided_slice %113 {offsets = [0, 1280], sizes = [16, 128], strides = [1, 1]} : vector<16x2048xf32> to vector<16x128xf32>
    %134 = arith.addf %132, %133 : vector<16x128xf32>
    %135 = vector.extract_strided_slice %113 {offsets = [0, 1408], sizes = [16, 128], strides = [1, 1]} : vector<16x2048xf32> to vector<16x128xf32>
    %136 = arith.addf %134, %135 : vector<16x128xf32>
    %137 = vector.extract_strided_slice %113 {offsets = [0, 1536], sizes = [16, 128], strides = [1, 1]} : vector<16x2048xf32> to vector<16x128xf32>
    %138 = arith.addf %136, %137 : vector<16x128xf32>
    %139 = vector.extract_strided_slice %113 {offsets = [0, 1664], sizes = [16, 128], strides = [1, 1]} : vector<16x2048xf32> to vector<16x128xf32>
    %140 = arith.addf %138, %139 : vector<16x128xf32>
    %141 = vector.extract_strided_slice %113 {offsets = [0, 1792], sizes = [16, 128], strides = [1, 1]} : vector<16x2048xf32> to vector<16x128xf32>
    %142 = arith.addf %140, %141 : vector<16x128xf32>
    %143 = vector.extract_strided_slice %113 {offsets = [0, 1920], sizes = [16, 128], strides = [1, 1]} : vector<16x2048xf32> to vector<16x128xf32>
    %144 = arith.addf %142, %143 : vector<16x128xf32>
    %c0_32 = arith.constant 0 : index
    %c0_33 = arith.constant 0 : index
    %145 = vector.load %arg9[%c0_32, %c0_33] : memref<1x128xf32, #tpu.memory_space<vmem>>, vector<1x128xf32>
    %146 = vector.broadcast %145 : vector<1x128xf32> to vector<16x128xf32>
    %147 = arith.mulf %53, %146 : vector<16x128xf32>
    %148 = arith.addf %144, %147 : vector<16x128xf32>
    %cst_34 = arith.constant 0.000000e+00 : f32
    %149 = vector.broadcast %cst_34 : f32 to vector<16x128xf32>
    %150 = arith.subf %149, %18 : vector<16x128xf32>
    %151 = math.exp %150 : vector<16x128xf32>
    %cst_35 = arith.constant 1.000000e+00 : f32
    %152 = vector.broadcast %cst_35 : f32 to vector<16x128xf32>
    %153 = arith.addf %152, %151 : vector<16x128xf32>
    %cst_36 = arith.constant 1.000000e+00 : f32
    %154 = vector.broadcast %cst_36 : f32 to vector<16x128xf32>
    %155 = arith.divf %154, %153 : vector<16x128xf32>
    %156 = arith.mulf %18, %155 : vector<16x128xf32>
    %157 = arith.mulf %148, %156 : vector<16x128xf32>
    %158 = arith.truncf %157 : vector<16x128xf32> to vector<16x128xbf16>
    %c0_37 = arith.constant 0 : index
    %c0_38 = arith.constant 0 : index
    %159 = vector.load %arg10[%c0_37, %c0_38] : memref<128x32xbf16, #tpu.memory_space<vmem>>, vector<128x32xbf16>
    %cst_39 = arith.constant dense<0.000000e+00> : vector<16x32xf32>
    %160 = tpu.matmul %158, %159, %cst_39 {dimension_numbers = #tpu.dot_dimension_numbers<[1], [0], [0], [1], [0, 0, 1, 1], [], []>} : vector<16x128xbf16>, vector<128x32xbf16>, vector<16x32xf32> -> vector<16x32xf32>
    %cst_40 = arith.constant 2.000000e+00 : f32
    %161 = vector.broadcast %cst_40 : f32 to vector<16x32xf32>
    %162 = arith.mulf %161, %0 : vector<16x32xf32>
    %163 = arith.addf %160, %162 : vector<16x32xf32>
    %c0_41 = arith.constant 0 : index
    %c0_42 = arith.constant 0 : index
    %164 = vector.load %arg11[%c0_41, %c0_42] : memref<16x32xf32, #tpu.memory_space<vmem>>, vector<16x32xf32>
    tpu.vector_store %arg11[%c0_41, %c0_42], %163 {strides = array<i32>} : memref<16x32xf32, #tpu.memory_space<vmem>>, vector<16x32xf32>,
    return
  }
  func.func @transform_0(%arg0: i32) -> (i32, i32) {
    %c0_i32 = arith.constant 0 : i32
    %c0_i32_0 = arith.constant 0 : i32
    return %arg0, %c0_i32 : i32, i32
  }
  func.func @transform_1(%arg0: i32) -> (i32, i32) {
    %c0_i32 = arith.constant 0 : i32
    %c0_i32_0 = arith.constant 0 : i32
    %c0_i32_1 = arith.constant 0 : i32
    return %c0_i32, %c0_i32_0 : i32, i32
  }
  func.func @transform_2(%arg0: i32) -> (i32, i32) {
    %c0_i32 = arith.constant 0 : i32
    %c0_i32_0 = arith.constant 0 : i32
    %c0_i32_1 = arith.constant 0 : i32
    return %c0_i32, %c0_i32_0 : i32, i32
  }
  func.func @transform_3(%arg0: i32) -> (i32, i32) {
    %c0_i32 = arith.constant 0 : i32
    %c0_i32_0 = arith.constant 0 : i32
    %c0_i32_1 = arith.constant 0 : i32
    return %c0_i32, %c0_i32_0 : i32, i32
  }
  func.func @transform_4(%arg0: i32) -> (i32, i32) {
    %c0_i32 = arith.constant 0 : i32
    %c0_i32_0 = arith.constant 0 : i32
    %c0_i32_1 = arith.constant 0 : i32
    return %c0_i32, %c0_i32_0 : i32, i32
  }
  func.func @transform_5(%arg0: i32) -> (i32, i32) {
    %c0_i32 = arith.constant 0 : i32
    %c0_i32_0 = arith.constant 0 : i32
    %c0_i32_1 = arith.constant 0 : i32
    return %c0_i32, %c0_i32_0 : i32, i32
  }
  func.func @transform_6(%arg0: i32) -> (i32, i32) {
    %c0_i32 = arith.constant 0 : i32
    %c0_i32_0 = arith.constant 0 : i32
    %c0_i32_1 = arith.constant 0 : i32
    return %c0_i32, %c0_i32_0 : i32, i32
  }
  func.func @transform_7(%arg0: i32) -> (i32, i32) {
    %c0_i32 = arith.constant 0 : i32
    %c0_i32_0 = arith.constant 0 : i32
    %c0_i32_1 = arith.constant 0 : i32
    return %c0_i32, %c0_i32_0 : i32, i32
  }
  func.func @transform_8(%arg0: i32) -> (i32, i32) {
    %c0_i32 = arith.constant 0 : i32
    %c0_i32_0 = arith.constant 0 : i32
    %c0_i32_1 = arith.constant 0 : i32
    return %c0_i32, %c0_i32_0 : i32, i32
  }
  func.func @transform_9(%arg0: i32) -> (i32, i32) {
    %c0_i32 = arith.constant 0 : i32
    %c0_i32_0 = arith.constant 0 : i32
    %c0_i32_1 = arith.constant 0 : i32
    return %c0_i32, %c0_i32_0 : i32, i32
  }
  func.func @transform_10(%arg0: i32) -> (i32, i32) {
    %c0_i32 = arith.constant 0 : i32
    %c0_i32_0 = arith.constant 0 : i32
    return %arg0, %c0_i32 : i32, i32
  }
}

</mosaic_0001>

<bundles_post_ra>
// kernel: pallas_mamba_block.1
= control target key start
LH: loop header
LB: loop body
LE: loop exit
PB: predicated region body
PF: predicated region fallthrough
CT: control target
= control target key end

     0   :  { %15 = vsyncpa [#allocation3], 0  ;;  %s8709_s0 = inlined_call_operand.vmem [shape: f32[16,32], index: 0, kind: input, shape index: {}]   ;;  %s8710_s1 = inlined_call_operand.hbm [shape: f32[1,32], index: 1, kind: input, shape index: {}]   ;;  %s8711_s2 = inlined_call_operand.hbm [shape: bf16[32,256], index: 2, kind: input, shape index: {}]   ;;  %s8712_s3 = inlined_call_operand.hbm [shape: f32[4,128], index: 3, kind: input, shape index: {}]   ;;  %s8713_s4 = inlined_call_operand.hbm [shape: f32[1,128], index: 4, kind: input, shape index: {}]   ;;  %s8714_s5 = inlined_call_operand.hbm [shape: bf16[128,6144], index: 5, kind: input, shape index: {}]   ;;  %s8715_s6 = inlined_call_operand.hbm [shape: f32[1,2048], index: 6, kind: input, shape index: {}]   ;;  %s8716_s7 = inlined_call_operand.hbm [shape: f32[1,2048], index: 7, kind: input, shape index: {}]   ;;  %s8717_s8 = inlined_call_operand.hbm [shape: f32[1,128], index: 8, kind: input, shape index: {}]   ;;  %s8718_s9 = inlined_call_operand.vmem [shape: bf16[128,32], index: 9, kind: input, shape index: {}]   ;;  %s8719_s10 = inlined_call_operand.vmem [shape: f32[16,32], index: 10, kind: output, shape index: {}]  }
   0x1   :  { %16 = vsyncpa [#allocation5], 0 }
   0x2   :  { %17 = vsyncpa [#allocation8], 0 }
   0x3   :  { %18 = vsyncpa [#allocation11], 0 }
   0x4   :  { %19 = vsyncpa [#allocation14], 0  ;;  %s6024_s13 = smov [#allocation4]   ;;  %s5838_s17 = scalar_lea.hbm %s8711_s2, 512 }
   0x5   :  { %s37_s14 = sshll.u32 %s6024_s13, 4  ;;  %p5839_p0 = scmp.ne.s32.totalorder %s8711_s2, %s5838_s17  ;;  %s38_s14 = int_to_ptr.vmem [resolvable:$true] %s37_s14 }
   0x6   :  { %p5842_p1 = scmp.lt.u32.totalorder %s5838_s17, %s8711_s2 }
   0x8   :  { %p5844_p2 = pnand %p5842_p1, %p5839_p0 }
   0xa   :  { %5847 = shalt.err (!%p5844_p2)
}
   0xb   :  { %s5848_s22 = scalar_lea.vmem %s38_s14, 512  ;;  %p5853_p4 = scmp.lt.s32.totalorder %s38_s14, %s38_s14 }
   0xc   :  { %p5849_p3 = scmp.ne.s32.totalorder %s38_s14, %s5848_s22  ;;  %p5854_p5 = scmp.lt.s32.totalorder %s5848_s22, %s5848_s22 }
   0xe   :  { %p5855_p6 = por %p5854_p5, %p5853_p4 }
  0x10   :  { %p5856_p7 = pnand %p5855_p6, %p5849_p3 }
  0x12   :  { %5859 = shalt.err (!%p5856_p7)
}
  0x13   :  { %s6025_s23 = smov 128   ;;  %s6026_s24 = smov 8  }
  0x14   :  { %43 = dma.hbm_to_vmem [thread:$0]  %s8711_s2, 512, %s38_s14, [#allocation5], %s6025_s23, %s6025_s23, %s6026_s24  }
  0x15   :  { %s6027_s27 = smov [#allocation7]   ;;  %s6028_s29 = smov [#allocation10]  }
  0x16   :  { %s60_s28 = sshll.u32 %s6027_s27, 4  ;;  %s82_s30 = sshll.u32 %s6028_s29, 4  ;;  %s61_s28 = int_to_ptr.vmem [resolvable:$true] %s60_s28  ;;  %s83_s30 = int_to_ptr.vmem [resolvable:$true] %s82_s30 }
  0x17   :  { %s5860_s13 = scalar_lea.hbm %s8713_s4, 16 }
  0x18   :  { %p5861_p8 = scmp.ne.s32.totalorder %s8713_s4, %s5860_s13  ;;  %p5864_p9 = scmp.lt.u32.totalorder %s5860_s13, %s8713_s4 }
  0x1a   :  { %p5866_p10 = pnand %p5864_p9, %p5861_p8 }
  0x1c   :  { %5869 = shalt.err (!%p5866_p10)
}
  0x1d   :  { %s5870_s2 = scalar_lea.vmem %s61_s28, 16  ;;  %s5874_s14 = scalar_lea.vmem %s61_s28, 32 }
  0x1e   :  { %p5871_p11 = scmp.ne.s32.totalorder %s61_s28, %s5870_s2  ;;  %p5875_p12 = scmp.lt.s32.totalorder %s61_s28, %s61_s28 }
  0x1f   :  { %p5876_p13 = scmp.lt.s32.totalorder %s5874_s14, %s5870_s2 }
  0x21   :  { %p5877_p0 = por %p5876_p13, %p5875_p12 }
  0x23   :  { %p5878_p1 = pnand %p5877_p0, %p5871_p11 }
  0x25   :  { %5881 = shalt.err (!%p5878_p1)
}
  0x26   :  { %63 = dma.hbm_to_vmem [thread:$0]  %s8713_s4, 16, %s61_s28, [#allocation8]  }
  0x27   :  { %s5882_s23 = scalar_lea.hbm %s8715_s6, 256 }
  0x28   :  { %p5883_p2 = scmp.ne.s32.totalorder %s8715_s6, %s5882_s23  ;;  %p5886_p3 = scmp.lt.u32.totalorder %s5882_s23, %s8715_s6 }
  0x2a   :  { %p5888_p4 = pnand %p5886_p3, %p5883_p2 }
  0x2c   :  { %5891 = shalt.err (!%p5888_p4)
}
  0x2d   :  { %s5892_s29 = scalar_lea.vmem %s83_s30, 256  ;;  %p5897_p6 = scmp.lt.s32.totalorder %s83_s30, %s83_s30 }
  0x2e   :  { %p5893_p5 = scmp.ne.s32.totalorder %s83_s30, %s5892_s29  ;;  %p5898_p7 = scmp.lt.s32.totalorder %s5892_s29, %s5892_s29 }
  0x30   :  { %p5899_p8 = por %p5898_p7, %p5897_p6 }
  0x32   :  { %p5900_p9 = pnand %p5899_p8, %p5893_p5 }
  0x34   :  { %5903 = shalt.err (!%p5900_p9)
}
  0x35   :  { %85 = dma.hbm_to_vmem [thread:$0]  %s8715_s6, 256, %s83_s30, [#allocation11]  }
  0x36   :  { %s6029_s11 = smov [#allocation2]   ;;  %s6030_s13 = smov [#allocation6]  }
  0x37   :  { %s28_s12 = sshll.u32 %s6029_s11, 4  ;;  %s50_s15 = sshll.u32 %s6030_s13, 4  ;;  %s29_s12 = int_to_ptr.vmem [resolvable:$true] %s28_s12  ;;  %s51_s15 = int_to_ptr.vmem [resolvable:$true] %s50_s15 }
  0x38   :  { %s5904_s18 = scalar_lea.hbm %s8710_s1, 16 }
  0x39   :  { %p5905_p10 = scmp.ne.s32.totalorder %s8710_s1, %s5904_s18  ;;  %p5908_p11 = scmp.lt.u32.totalorder %s5904_s18, %s8710_s1 }
  0x3b   :  { %p5910_p12 = pnand %p5908_p11, %p5905_p10 }
  0x3d   :  { %5913 = shalt.err (!%p5910_p12)
}
  0x3e   :  { %s5914_s6 = scalar_lea.vmem %s29_s12, 16  ;;  %s5918_s30 = scalar_lea.vmem %s29_s12, 32 }
  0x3f   :  { %p5915_p13 = scmp.ne.s32.totalorder %s29_s12, %s5914_s6  ;;  %p5919_p0 = scmp.lt.s32.totalorder %s29_s12, %s29_s12 }
  0x40   :  { %p5920_p1 = scmp.lt.s32.totalorder %s5918_s30, %s5914_s6 }
  0x42   :  { %p5921_p2 = por %p5920_p1, %p5919_p0 }
  0x44   :  { %p5922_p3 = pnand %p5921_p2, %p5915_p13 }
  0x46   :  { %5925 = shalt.err (!%p5922_p3)
}
  0x47   :  { %31 = dma.hbm_to_vmem [thread:$0]  %s8710_s1, 16, %s29_s12, [#allocation3]  }
  0x48   :  { %s5926_s25 = scalar_lea.hbm %s8712_s3, 64 }
  0x49   :  { %p5927_p4 = scmp.ne.s32.totalorder %s8712_s3, %s5926_s25  ;;  %p5930_p5 = scmp.lt.u32.totalorder %s5926_s25, %s8712_s3 }
  0x4b   :  { %p5932_p6 = pnand %p5930_p5, %p5927_p4 }
  0x4d   :  { %5935 = shalt.err (!%p5932_p6)
}
  0x4e   :  { %s5936_s28 = scalar_lea.vmem %s51_s15, 64  ;;  %p5941_p8 = scmp.lt.s32.totalorder %s51_s15, %s51_s15 }
  0x4f   :  { %p5937_p7 = scmp.ne.s32.totalorder %s51_s15, %s5936_s28  ;;  %p5942_p9 = scmp.lt.s32.totalorder %s5936_s28, %s5936_s28 }
  0x51   :  { %p5943_p10 = por %p5942_p9, %p5941_p8 }
  0x53   :  { %p5944_p11 = pnand %p5943_p10, %p5937_p7 }
  0x55   :  { %5947 = shalt.err (!%p5944_p11)
}
  0x56   :  { %53 = dma.hbm_to_vmem [thread:$0]  %s8712_s3, 64, %s51_s15, [#allocation5]  }
  0x57   :  { %s6031_s12 = smov [#allocation9]   ;;  %s5948_s18 = scalar_lea.hbm %s8714_s5, 49152 }
  0x58   :  { %s69_s13 = sshll.u32 %s6031_s12, 4  ;;  %p5949_p12 = scmp.ne.s32.totalorder %s8714_s5, %s5948_s18  ;;  %s70_s13 = int_to_ptr.vmem [resolvable:$true] %s69_s13 }
  0x59   :  { %p5952_p13 = scmp.lt.u32.totalorder %s5948_s18, %s8714_s5 }
  0x5b   :  { %p5954_p0 = pnand %p5952_p13, %p5949_p12 }
  0x5d   :  { %5957 = shalt.err (!%p5954_p0)
}
  0x5e   :  { %s5958_s6 = scalar_lea.vmem %s70_s13, 49152  ;;  %p5963_p2 = scmp.lt.s32.totalorder %s70_s13, %s70_s13 }
  0x5f   :  { %p5959_p1 = scmp.ne.s32.totalorder %s70_s13, %s5958_s6  ;;  %p5964_p3 = scmp.lt.s32.totalorder %s5958_s6, %s5958_s6 }
  0x61   :  { %p5965_p4 = por %p5964_p3, %p5963_p2 }
  0x63   :  { %p5966_p5 = pnand %p5965_p4, %p5959_p1 }
  0x65   :  { %5969 = shalt.err (!%p5966_p5)
}
  0x66   :  { %s6032_s3 = smov 3072   ;;  %s6033_s15 = smov 192  }
  0x67   :  { %75 = dma.hbm_to_vmem [thread:$0]  %s8714_s5, 49152, %s70_s13, [#allocation8], %s6032_s3, %s6032_s3, %s6033_s15  }
  0x68   :  { %s6034_s22 = smov [#allocation12]   ;;  %s6035_s24 = smov [#allocation13]  }
  0x69   :  { %s92_s23 = sshll.u32 %s6034_s22, 4  ;;  %s102_s25 = sshll.u32 %s6035_s24, 4  ;;  %s93_s23 = int_to_ptr.vmem [resolvable:$true] %s92_s23  ;;  %s103_s25 = int_to_ptr.vmem [resolvable:$true] %s102_s25 }
  0x6a   :  { %s5970_s29 = scalar_lea.hbm %s8716_s7, 256 }
  0x6b   :  { %p5971_p6 = scmp.ne.s32.totalorder %s8716_s7, %s5970_s29  ;;  %p5974_p7 = scmp.lt.u32.totalorder %s5970_s29, %s8716_s7 }
  0x6d   :  { %p5976_p8 = pnand %p5974_p7, %p5971_p6 }
  0x6f   :  { %5979 = shalt.err (!%p5976_p8)
}
  0x70   :  { %s5980_s5 = scalar_lea.vmem %s93_s23, 256  ;;  %p5985_p10 = scmp.lt.s32.totalorder %s93_s23, %s93_s23 }
  0x71   :  { %p5981_p9 = scmp.ne.s32.totalorder %s93_s23, %s5980_s5  ;;  %p5986_p11 = scmp.lt.s32.totalorder %s5980_s5, %s5980_s5 }
  0x73   :  { %p5987_p12 = por %p5986_p11, %p5985_p10 }
  0x75   :  { %p5988_p13 = pnand %p5987_p12, %p5981_p9 }
  0x77   :  { %5991 = shalt.err (!%p5988_p13)
}
  0x78   :  { %95 = dma.hbm_to_vmem [thread:$0]  %s8716_s7, 256, %s93_s23, [#allocation11]  }
  0x79   :  { %s5992_s18 = scalar_lea.hbm %s8717_s8, 16 }
  0x7a   :  { %p5993_p0 = scmp.ne.s32.totalorder %s8717_s8, %s5992_s18  ;;  %p5996_p1 = scmp.lt.u32.totalorder %s5992_s18, %s8717_s8 }
  0x7c   :  { %p5998_p2 = pnand %p5996_p1, %p5993_p0 }
  0x7e   :  { %6001 = shalt.err (!%p5998_p2)
}
  0x7f   :  { %s6002_s6 = scalar_lea.vmem %s103_s25, 16  ;;  %s6006_s3 = scalar_lea.vmem %s103_s25, 32 }
  0x80   :  { %p6003_p3 = scmp.ne.s32.totalorder %s103_s25, %s6002_s6  ;;  %p6007_p4 = scmp.lt.s32.totalorder %s103_s25, %s103_s25 }
  0x81   :  { %p6008_p5 = scmp.lt.s32.totalorder %s6006_s3, %s6002_s6 }
  0x83   :  { %p6009_p6 = por %p6008_p5, %p6007_p4 }
  0x85   :  { %p6010_p7 = pnand %p6009_p6, %p6003_p3 }
  0x87   :  { %6013 = shalt.err (!%p6010_p7)
}
  0x88   :  { %105 = dma.hbm_to_vmem [thread:$0]  %s8717_s8, 16, %s103_s25, [#allocation14]  }
  0x89   :  { %6014 = dma.done.wait [#allocation3], 16  }
  0x8a   :  { %6015 = vsyncadd [#allocation3], 4294967280 }
  0x8b   :  { %6016 = dma.done.wait [#allocation5], 576  }
  0x8c   :  { %6017 = vsyncadd [#allocation5], 4294966720 }
  0x8d   :  { %6018 = dma.done.wait [#allocation8], 49168  }
  0x8e   :  { %6019 = vsyncadd [#allocation8], 4294918128 }
  0x8f   :  { %6020 = dma.done.wait [#allocation11], 512  }
  0x90   :  { %6021 = vsyncadd [#allocation11], 4294966784 }
  0x91   :  { %6022 = dma.done.wait [#allocation14], 16  }
  0x92   :  { %6023 = vsyncadd [#allocation14], 4294967280  ;;  %v133_v0 = vld [vmem:[%s8709_s0] sm:$0xff]  ;;  %vm137_vm0 = vcmask 261120   ;;  %v134_v1 = vld [vmem:[%s8709_s0 + $0x8] sm:$0xff]  ;;  %v8720_v9 = vmov 0  }
  0x93   :  { %v135_v2 = vmul.f32 %v133_v0, %v133_v0  ;;  %v136_v3 = vmul.f32 %v134_v1, %v134_v1  ;;  %v5610_v6 = vld [vmem:[#allocation4 + $0x4] ss:$8 sps:$4 sm:$0xff]   ;;  %v5612_v7 = vld [vmem:[#allocation4] ss:$8 sps:$4 sm:$0xff]   ;;  %v5613_v8 = vld [vmem:[#allocation4 + $0x14] ss:$8 sps:$4 sm:$0xff]   ;;  %222 = vmatprep.mubr.bf16.mxu0 %v8720_v9  ;;  %2650 = vmatprep.mubr.bf16.mxu1 %v8720_v9 }
  0x94   :  { %190 = vmatprep.subr.bf16.mxu0 %v5610_v6  ;;  %v5615_v10 = vld [vmem:[#allocation4 + $0x10] ss:$8 sps:$4 sm:$0xff]   ;;  %v5162_v20 = vld [vmem:[#allocation2] ss:$0 sm:$0xff]  ;;  %v314_v25 = vld [vmem:[#allocation9] sm:$0xff]  ;;  %vm251_vm1 = vcmask 1041408  }
  0x95   :  { %v138_v4 = vsel %vm137_vm0, %v135_v2, 0.0  ;;  %v141_v5 = vsel %vm137_vm0, %v136_v3, 0.0  ;;  %191 = vmatpush1.bf16.msra.mxu0 %v5612_v7  ;;  %v338_v26 = vld [vmem:[#allocation9 + $0xc0] sm:$0xff]  ;;  %v315_v27 = vld [vmem:[#allocation9 + $0x8] sm:$0xff]  ;;  %vm267_vm2 = vcmask 1043456   ;;  %vm283_vm3 = vcmask 1045504  }
  0x96   :  { %139 = vadd.xlane.f32.xlu0 %v138_v4  ;;  %192 = vmatprep.subr.bf16.mxu0 %v5613_v8  ;;  %v5174_v28 = vcombine.high %v314_v25, %v338_v26  ;;  %v339_v29 = vld [vmem:[#allocation9 + $0xc8] sm:$0xff]  ;;  %v5173_v32 = vcombine.low %v314_v25, %v338_v26  ;;  %v362_v33 = vld [vmem:[#allocation9 + $0x180] sm:$0xff]  ;;  %v6202_v26 = vld [vmem:[#allocation9 + $0x10] sm:$0xff] }
  0x97   :  { %v5175_v30 = vcombine.low %v315_v27, %v339_v29  ;;  %v5176_v31 = vcombine.high %v315_v27, %v339_v29  ;;  %v386_v34 = vld [vmem:[#allocation9 + $0x240] sm:$0xff]  ;;  %v363_v35 = vld [vmem:[#allocation9 + $0x188] sm:$0xff]  ;;  %v6204_v27 = vld [vmem:[#allocation9 + $0xd0] sm:$0xff] }
  0x98   :  { %2618 = vmatprep.subr.bf16.mxu1 %v5174_v28  ;;  %v5222_v36 = vcombine.high %v362_v33, %v386_v34  ;;  %v387_v37 = vld [vmem:[#allocation9 + $0x248] sm:$0xff]  ;;  %v5221_v40 = vcombine.low %v362_v33, %v386_v34  ;;  %v410_v41 = vld [vmem:[#allocation9 + $0x300] sm:$0xff]  ;;  %v6206_v28 = vld [vmem:[#allocation9 + $0x18] sm:$0xff]  ;;  %v5177_v29 = vcombine.low %v6202_v26, %v6204_v27 }
  0x99   :  { %193 = vmatpush1.bf16.msra.mxu0 %v5615_v10  ;;  %2619 = vmatpush1.bf16.msra.mxu1 %v5173_v32  ;;  %v5223_v38 = vcombine.low %v363_v35, %v387_v37  ;;  %v5224_v39 = vcombine.high %v363_v35, %v387_v37  ;;  %v434_v42 = vld [vmem:[#allocation9 + $0x3c0] sm:$0xff]  ;;  %v411_v43 = vld [vmem:[#allocation9 + $0x308] sm:$0xff]  ;;  %v5168_v34 = vld [vmem:[#allocation6 + $0x3] ss:$0 sm:$0xff] }
  0x9a   :  { %142 = vadd.xlane.f32.xlu0 %v141_v5  ;;  %2661 = vmatprep.subr.bf16.mxu0 %v5176_v31  ;;  %v5270_v44 = vcombine.high %v410_v41, %v434_v42  ;;  %v435_v45 = vld [vmem:[#allocation9 + $0x3c8] sm:$0xff]  ;;  %v5269_v48 = vcombine.low %v410_v41, %v434_v42  ;;  %v458_v49 = vld [vmem:[#allocation9 + $0x480] sm:$0xff]  ;;  %v6212_v31 = vld [vmem:[#allocation9 + $0xd8] sm:$0xff] }
  0x9b   :  { %2620 = vmatprep.subr.bf16.mxu1 %v5222_v36  ;;  %v5271_v46 = vcombine.low %v411_v43, %v435_v45  ;;  %v5272_v47 = vcombine.high %v411_v43, %v435_v45  ;;  %v482_v50 = vld [vmem:[#allocation9 + $0x540] sm:$0xff]  ;;  %v459_v51 = vld [vmem:[#allocation9 + $0x488] sm:$0xff]  ;;  %v5179_v32 = vcombine.low %v6206_v28, %v6212_v31  ;;  %v5180_v33 = vcombine.high %v6206_v28, %v6212_v31  ;;  %v5169_v36 = vld [vmem:[#allocation7] ss:$0 sm:$0xff] }
  0x9c   :  { %v5318_v52 = vcombine.high %v458_v49, %v482_v50  ;;  %v483_v53 = vld [vmem:[#allocation9 + $0x548] sm:$0xff]  ;;  %v5317_v56 = vcombine.low %v458_v49, %v482_v50  ;;  %v506_v57 = vld [vmem:[#allocation9 + $0x600] sm:$0xff]  ;;  %v508_v31 = vld [vmem:[#allocation9 + $0x610] sm:$0xff] }
  0x9d   :  { %2621 = vmatpush1.bf16.msra.mxu1 %v5221_v40  ;;  %v5319_v54 = vcombine.low %v459_v51, %v483_v53  ;;  %v5320_v55 = vcombine.high %v459_v51, %v483_v53  ;;  %v530_v58 = vld [vmem:[#allocation9 + $0x6c0] sm:$0xff]  ;;  %v507_v59 = vld [vmem:[#allocation9 + $0x608] sm:$0xff]  ;;  %v5172_v51 = vld [vmem:[#allocation6] ss:$0 sm:$0xff] }
  0x9e   :  { %2622 = vmatprep.subr.bf16.mxu1 %v5270_v44  ;;  %v5366_v60 = vcombine.high %v506_v57, %v530_v58  ;;  %v531_v61 = vld [vmem:[#allocation9 + $0x6c8] sm:$0xff]  ;;  %v578_v2 = vld [vmem:[#allocation9 + $0x840] sm:$0xff] }
  0x9f   :  { %v5367_v62 = vcombine.low %v507_v59, %v531_v61  ;;  %v5368_v63 = vcombine.high %v507_v59, %v531_v61  ;;  %v555_v3 = vld [vmem:[#allocation9 + $0x788] sm:$0xff]  ;;  %v602_v10 = vld [vmem:[#allocation9 + $0x900] sm:$0xff] }
  0xa0   :  { %v579_v5 = vld [vmem:[#allocation9 + $0x848] sm:$0xff] }
  0xa1   :  { %2623 = vmatpush1.bf16.msra.mxu1 %v5269_v48  ;;  %v5415_v6 = vcombine.low %v555_v3, %v579_v5  ;;  %v5416_v7 = vcombine.high %v555_v3, %v579_v5 }
  0xa2   :  { %2624 = vmatprep.subr.bf16.mxu1 %v5318_v52 }
  0xa5   :  { %2625 = vmatpush1.bf16.msra.mxu1 %v5317_v56 }
  0xa6   :  { %2626 = vmatprep.subr.bf16.mxu1 %v5366_v60 }
 0x123   :  { %v140_v11 = vpop.xlane.xlu0 %139 }
 0x124   :  { %v145_v12 = vmul.f32 0.03125, %v140_v11  ;;  %v626_v11 = vld [vmem:[#allocation9 + $0x9c0] sm:$0xff] }
 0x126   :  { %v147_v13 = vadd.f32 1e-05, %v145_v12  ;;  %v603_v12 = vld [vmem:[#allocation9 + $0x908] sm:$0xff] }
 0x127   :  { %v143_v14 = vpop.xlane.xlu0 %142 }
 0x128   :  { %5624 = vrsqrt.f32 %v147_v13  ;;  %v146_v15 = vmul.f32 0.03125, %v143_v14  ;;  %v5462_v13 = vcombine.high %v602_v10, %v626_v11  ;;  %v627_v14 = vld [vmem:[#allocation9 + $0x9c8] sm:$0xff] }
 0x12a   :  { %v148_v16 = vadd.f32 1e-05, %v146_v15  ;;  %v5463_v15 = vcombine.low %v603_v12, %v627_v14 }
 0x12c   :  { %5626 = vrsqrt.f32 %v148_v16  ;;  %v5464_v16 = vcombine.high %v603_v12, %v627_v14 }
 0x132   :  { %v5625_v17 = vpop.eup %5624 }
 0x133   :  { %v151_v18 = vmul.f32 %v5625_v17, %v133_v0  ;;  %v5365_v0 = vcombine.low %v506_v57, %v530_v58  ;;  %v5461_v17 = vcombine.low %v602_v10, %v626_v11 }
 0x135   :  { %v160_v22 = vmul.f32 %v5162_v20, %v151_v18  ;;  %2627 = vmatpush1.bf16.msra.mxu1 %v5365_v0  ;;  %v650_v18 = vld [vmem:[#allocation9 + $0xa80] sm:$0xff] }
 0x136   :  { %v5627_v19 = vpop.eup %5626 }
 0x137   :  { %v152_v21 = vmul.f32 %v5627_v19, %v134_v1  ;;  %v554_v1 = vld [vmem:[#allocation9 + $0x780] sm:$0xff] }
 0x138   :  { %v5414_v4 = vcombine.high %v554_v1, %v578_v2  ;;  %v5413_v8 = vcombine.low %v554_v1, %v578_v2  ;;  %v674_v19 = vld [vmem:[#allocation9 + $0xb40] sm:$0xff] }
 0x139   :  { %v161_v23 = vmul.f32 %v5162_v20, %v152_v21  ;;  %v651_v20 = vld [vmem:[#allocation9 + $0xa88] sm:$0xff]  ;;  %v5510_v21 = vcombine.high %v650_v18, %v674_v19  ;;  %v5509_v25 = vcombine.low %v650_v18, %v674_v19  ;;  %v388_v19 = vld [vmem:[#allocation9 + $0x250] sm:$0xff] }
 0x13a   :  { %2628 = vmatprep.subr.bf16.mxu1 %v5414_v4 }
 0x13b   :  { %v162_v24 = vpack.c.bf16 %v161_v23, %v160_v22  ;;  %2629 = vmatpush1.bf16.msra.mxu1 %v5413_v8  ;;  %v675_v22 = vld [vmem:[#allocation9 + $0xb48] sm:$0xff] }
 0x13c   :  { %2630 = vmatprep.subr.bf16.mxu1 %v5462_v13  ;;  %v5511_v23 = vcombine.low %v651_v20, %v675_v22 }
 0x13d   :  { %5167 = vmatmul.mubr.msk.bf16.vlgmr.msra.gmra.mrb[0].mxu0 %vm137_vm0, %v162_v24  ;;  %v5512_v24 = vcombine.high %v651_v20, %v675_v22  ;;  %v365_v20 = vld [vmem:[#allocation9 + $0x198] sm:$0xff] }
 0x13e   :  { %2693 = vmatprep.mubr.bf16.mxu0 %v8720_v9  ;;  %2662 = vmatpush1.bf16.msra.mxu0 %v5175_v30  ;;  %v5178_v30 = vcombine.high %v6202_v26, %v6204_v27 }
 0x13f   :  { %2663 = vmatprep.subr.bf16.mxu0 %v5224_v39  ;;  %2631 = vmatpush1.bf16.msra.mxu1 %v5461_v17  ;;  %v5170_v39 = vld [vmem:[#allocation6 + $0x2] ss:$0 sm:$0xff]  ;;  %v364_v17 = vld [vmem:[#allocation9 + $0x190] sm:$0xff] }
 0x140   :  { %2632 = vmatprep.subr.bf16.mxu1 %v5510_v21  ;;  %v389_v21 = vld [vmem:[#allocation9 + $0x258] sm:$0xff] }
 0x142   :  { %2664 = vmatpush1.bf16.msra.mxu0 %v5223_v38 }
 0x143   :  { %2665 = vmatprep.subr.bf16.mxu0 %v5272_v47  ;;  %2633 = vmatpush1.bf16.msra.mxu1 %v5509_v25  ;;  %v5171_v47 = vld [vmem:[#allocation6 + $0x1] ss:$0 sm:$0xff]  ;;  %v5226_v25 = vcombine.high %v364_v17, %v388_v19 }
 0x144   :  { %2704 = vmatprep.subr.bf16.mxu1 %v5178_v30  ;;  %v5228_v30 = vcombine.high %v365_v20, %v389_v21 }
 0x146   :  { %2666 = vmatpush1.bf16.msra.mxu0 %v5271_v46 }
 0x147   :  { %2667 = vmatprep.subr.bf16.mxu0 %v5320_v55 }
 0x14a   :  { %2668 = vmatpush1.bf16.msra.mxu0 %v5319_v54 }
 0x14b   :  { %2669 = vmatprep.subr.bf16.mxu0 %v5368_v63 }
 0x14e   :  { %2670 = vmatpush1.bf16.msra.mxu0 %v5367_v62 }
 0x14f   :  { %2671 = vmatprep.subr.bf16.mxu0 %v5416_v7 }
 0x152   :  { %2672 = vmatpush1.bf16.msra.mxu0 %v5415_v6 }
 0x153   :  { %2673 = vmatprep.subr.bf16.mxu0 %v5464_v16 }
 0x156   :  { %2674 = vmatpush1.bf16.msra.mxu0 %v5463_v15 }
 0x157   :  { %2675 = vmatprep.subr.bf16.mxu0 %v5512_v24 }
 0x15a   :  { %2676 = vmatpush1.bf16.msra.mxu0 %v5511_v23 }
 0x15b   :  { %2747 = vmatprep.subr.bf16.mxu0 %v5180_v33  ;;  %v412_v33 = vld [vmem:[#allocation9 + $0x310] sm:$0xff] }
 0x210   :  { %v224_v35 = vpop.f32.mrb[0].mxu0 }
 0x211   :  { %v239_v37 = vmul.f32 %v5168_v34, %v224_v35  ;;  %v252_v38 = vrot.slane %v224_v35, 6  ;;  %v268_v40 = vrot.slane %v224_v35, 4  ;;  %v284_v41 = vrot.slane %v224_v35, 2  ;;  %v6218_v42 = vpop.f32.mrb[1].mxu0  ;;  %v413_v35 = vld [vmem:[#allocation9 + $0x318] sm:$0xff] }
 0x212   :  { %8989 = vst [vmem:[#allocation20_spill] sm:$0xff] %v6218_v42  ;;  %v228_v43 = vpop.f32.mrb[2].mxu0  ;;  %v6496_v42 = vld [vmem:[#allocation9 + $0xb00] sm:$0xff] }
 0x213   :  { %v247_v44 = vadd.f32 %v5169_v36, %v239_v37  ;;  %v257_v45 = vsel %vm251_vm1, 0.0, %v252_v38  ;;  %v273_v46 = vsel %vm267_vm2, 0.0, %v268_v40  ;;  %v6222_v48 = vpop.f32.mrb[3].mxu0  ;;  %v289_v50 = vsel %vm283_vm3, 0.0, %v284_v41 }
 0x214   :  { %8990 = vst [vmem:[#allocation21_spill] sm:$0xff] %v6222_v48  ;;  %v263_v49 = vmul.f32 %v5170_v39, %v257_v45  ;;  %v240_v52 = vmul.f32 %v5168_v34, %v228_v43  ;;  %v253_v53 = vrot.slane %v228_v43, 6  ;;  %v269_v54 = vrot.slane %v228_v43, 4  ;;  %v436_v34 = vld [vmem:[#allocation9 + $0x3d0] sm:$0xff]  ;;  %v485_v45 = vld [vmem:[#allocation9 + $0x558] sm:$0xff] }
 0x215   :  { %v285_v55 = vrot.slane %v228_v43, 2  ;;  %v279_v57 = vmul.f32 %v5171_v47, %v273_v46  ;;  %v295_v63 = vmul.f32 %v5172_v51, %v289_v50  ;;  %v5225_v37 = vcombine.low %v364_v17, %v388_v19  ;;  %v484_v43 = vld [vmem:[#allocation9 + $0x550] sm:$0xff]  ;;  %v509_v46 = vld [vmem:[#allocation9 + $0x618] sm:$0xff]  ;;  %v343_v17 = vld [vmem:[#allocation9 + $0xe8] sm:$0xff] }
 0x216   :  { %v265_v56 = vadd.f32 %v263_v49, %v247_v44  ;;  %v248_v58 = vadd.f32 %v5169_v36, %v240_v52  ;;  %v254_v59 = vsel %vm251_vm1, %v252_v38, %v253_v53  ;;  %v270_v60 = vsel %vm267_vm2, %v268_v40, %v269_v54  ;;  %v437_v36 = vld [vmem:[#allocation9 + $0x3d8] sm:$0xff]  ;;  %v556_v53 = vld [vmem:[#allocation9 + $0x790] sm:$0xff] }
 0x217   :  { %v286_v61 = vsel %vm283_vm3, %v284_v41, %v285_v55  ;;  %v264_v0 = vmul.f32 %v5170_v39, %v254_v59  ;;  %v280_v3 = vmul.f32 %v5171_v47, %v270_v60  ;;  %v5227_v38 = vcombine.low %v365_v20, %v389_v21  ;;  %v460_v41 = vld [vmem:[#allocation9 + $0x490] sm:$0xff]  ;;  %v461_v44 = vld [vmem:[#allocation9 + $0x498] sm:$0xff] }
 0x218   :  { %v281_v62 = vadd.f32 %v279_v57, %v265_v56  ;;  %v296_v6 = vmul.f32 %v5172_v51, %v286_v61  ;;  %v5274_v39 = vcombine.high %v412_v33, %v436_v34  ;;  %v5276_v40 = vcombine.high %v413_v35, %v437_v36  ;;  %v533_v47 = vld [vmem:[#allocation9 + $0x6d8] sm:$0xff]  ;;  %v580_v54 = vld [vmem:[#allocation9 + $0x850] sm:$0xff] }
 0x219   :  { %v266_v2 = vadd.f32 %v264_v0, %v248_v58  ;;  %v5273_v26 = vcombine.low %v412_v33, %v436_v34  ;;  %v5275_v27 = vcombine.low %v413_v35, %v437_v36  ;;  %v5322_v28 = vcombine.high %v460_v41, %v484_v43  ;;  %v557_v55 = vld [vmem:[#allocation9 + $0x798] sm:$0xff]  ;;  %v604_v61 = vld [vmem:[#allocation9 + $0x910] sm:$0xff]  ;;  %v367_v33 = vld [vmem:[#allocation9 + $0x1a8] sm:$0xff] }
 0x21a   :  { %v297_v1 = vadd.f32 %v295_v63, %v281_v62  ;;  %v5321_v49 = vcombine.low %v460_v41, %v484_v43  ;;  %v5323_v50 = vcombine.low %v461_v44, %v485_v45  ;;  %v5372_v52 = vcombine.high %v509_v46, %v533_v47  ;;  %v581_v56 = vld [vmem:[#allocation9 + $0x858] sm:$0xff]  ;;  %v628_v62 = vld [vmem:[#allocation9 + $0x9d0] sm:$0xff]  ;;  %v391_v34 = vld [vmem:[#allocation9 + $0x268] sm:$0xff] }
 0x21b   :  { %v282_v5 = vadd.f32 %v280_v3, %v266_v2  ;;  %v5371_v58 = vcombine.low %v509_v46, %v533_v47  ;;  %v5418_v59 = vcombine.high %v556_v53, %v580_v54  ;;  %v5420_v60 = vcombine.high %v557_v55, %v581_v56  ;;  %v605_v63 = vld [vmem:[#allocation9 + $0x918] sm:$0xff]  ;;  %v415_v41 = vld [vmem:[#allocation9 + $0x328] sm:$0xff] }
 0x21c   :  { %v299_v4 = vsub.f32 0.0, %v297_v1  ;;  %v629_v0 = vld [vmem:[#allocation9 + $0x9d8] sm:$0xff]  ;;  %v5419_v2 = vcombine.low %v557_v55, %v581_v56  ;;  %v5466_v3 = vcombine.high %v604_v61, %v628_v62  ;;  %v439_v43 = vld [vmem:[#allocation9 + $0x3e8] sm:$0xff] }
 0x21d   :  { %v298_v8 = vadd.f32 %v296_v6, %v282_v5  ;;  %v652_v5 = vld [vmem:[#allocation9 + $0xa90] sm:$0xff]  ;;  %v5279_v47 = vcombine.low %v415_v41, %v439_v43 }
 0x21e   :  { %v301_v7 = vmul.f32 1.442695, %v299_v4  ;;  %v5468_v4 = vcombine.high %v605_v63, %v629_v0  ;;  %v676_v6 = vld [vmem:[#allocation9 + $0xb50] sm:$0xff] }
 0x21f   :  { %v300_v10 = vsub.f32 0.0, %v298_v8 }
 0x220   :  { %5628 = vpow2.f32 %v301_v7  ;;  %v653_v7 = vld [vmem:[#allocation9 + $0xa98] sm:$0xff] }
 0x221   :  { %v303_v11 = vmul.f32 1.442695, %v300_v10  ;;  %v5465_v10 = vcombine.low %v604_v61, %v628_v62  ;;  %v559_v61 = vld [vmem:[#allocation9 + $0x7a8] sm:$0xff] }
 0x222   :  { %v583_v62 = vld [vmem:[#allocation9 + $0x868] sm:$0xff] }
 0x223   :  { %5630 = vpow2.f32 %v303_v11  ;;  %v5467_v11 = vcombine.low %v605_v63, %v629_v0 }
 0x22a   :  { %v5629_v12 = vpop.eup %5628 }
 0x22b   :  { %v305_v13 = vadd.f32 1.0, %v5629_v12  ;;  %v5514_v12 = vcombine.high %v652_v5, %v676_v6 }
 0x22d   :  { %v5631_v14 = vpop.eup %5630  ;;  %5632 = vrcp.f32 %v305_v13 }
 0x22e   :  { %v306_v15 = vadd.f32 1.0, %v5631_v14  ;;  %v318_v14 = vld [vmem:[#allocation9 + $0x20] sm:$0xff] }
 0x230   :  { %5634 = vrcp.f32 %v306_v15  ;;  %v342_v15 = vld [vmem:[#allocation9 + $0xe0] sm:$0xff] }
 0x231   :  { %v5182_v20 = vcombine.high %v318_v14, %v342_v15  ;;  %v5181_v35 = vcombine.low %v318_v14, %v342_v15  ;;  %v655_v14 = vld [vmem:[#allocation9 + $0xaa8] sm:$0xff] }
 0x232   :  { %v679_v15 = vld [vmem:[#allocation9 + $0xb68] sm:$0xff] }
 0x237   :  { %v5633_v16 = vpop.eup %5632 }
 0x238   :  { %v6228_v22 = vmul.f32 %v5633_v16, %v297_v1  ;;  %v5417_v1 = vcombine.low %v556_v53, %v580_v54  ;;  %v319_v16 = vld [vmem:[#allocation9 + $0x28] sm:$0xff] }
 0x239   :  { %v5184_v21 = vcombine.high %v319_v16, %v343_v17  ;;  %v5183_v36 = vcombine.low %v319_v16, %v343_v17  ;;  %v511_v53 = vld [vmem:[#allocation9 + $0x628] sm:$0xff] }
 0x23a   :  { %v5635_v18 = vpop.eup %5634  ;;  %8991 = vst [vmem:[#allocation22_spill] sm:$0xff] %v6228_v22  ;;  %v535_v54 = vld [vmem:[#allocation9 + $0x6e8] sm:$0xff] }
 0x23b   :  { %v6230_v23 = vmul.f32 %v5635_v18, %v298_v8  ;;  %v677_v8 = vld [vmem:[#allocation9 + $0xb58] sm:$0xff]  ;;  %v5513_v18 = vcombine.low %v652_v5, %v676_v6  ;;  %v5375_v0 = vcombine.low %v511_v53, %v535_v54  ;;  %v607_v5 = vld [vmem:[#allocation9 + $0x928] sm:$0xff] }
 0x23c   :  { %v5516_v13 = vcombine.high %v653_v7, %v677_v8  ;;  %v5515_v19 = vcombine.low %v653_v7, %v677_v8  ;;  %v631_v6 = vld [vmem:[#allocation9 + $0x9e8] sm:$0xff]  ;;  %v5423_v8 = vcombine.low %v559_v61, %v583_v62 }
 0x23d   :  { %8992 = vst [vmem:[#allocation23_spill] sm:$0xff] %v6230_v23  ;;  %v6234_v24 = vpack.c.bf16 %v6230_v23, %v6228_v22  ;;  %v5471_v17 = vcombine.low %v607_v5, %v631_v6  ;;  %v6498_v23 = vld [vmem:[#allocation9 + $0xbc0] sm:$0xff] }
 0x23f   :  { %8993 = vst [vmem:[#allocation24_spill] sm:$0xff] %v6234_v24  ;;  %2651 = vmatmul.mubr.bf16.vlgmr.msra.gmra.mrb[0].mxu1 %v6234_v24  ;;  %2694 = vmatmul.mubr.bf16.vlgmr.msra.gmra.mrb[4].mxu0 %v6234_v24 }
 0x240   :  { %2705 = vmatpush1.bf16.msra.mxu1 %v5177_v29  ;;  %2748 = vmatpush1.bf16.msra.mxu0 %v5179_v32  ;;  %v5324_v29 = vcombine.high %v461_v44, %v485_v45  ;;  %v532_v32 = vld [vmem:[#allocation9 + $0x6d0] sm:$0xff]  ;;  %v5231_v45 = vcombine.low %v367_v33, %v391_v34 }
 0x241   :  { %2706 = vmatprep.subr.bf16.mxu1 %v5226_v25  ;;  %2749 = vmatprep.subr.bf16.mxu0 %v5228_v30  ;;  %v5370_v51 = vcombine.high %v508_v31, %v532_v32  ;;  %v5369_v57 = vcombine.low %v508_v31, %v532_v32  ;;  %v366_v25 = vld [vmem:[#allocation9 + $0x1a0] sm:$0xff]  ;;  %v463_v31 = vld [vmem:[#allocation9 + $0x4a8] sm:$0xff] }
 0x242   :  { %2736 = vmatprep.mubr.bf16.mxu1 %v8720_v9  ;;  %2779 = vmatprep.mubr.bf16.mxu0 %v8720_v9  ;;  %v390_v30 = vld [vmem:[#allocation9 + $0x260] sm:$0xff]  ;;  %v487_v32 = vld [vmem:[#allocation9 + $0x568] sm:$0xff] }
 0x243   :  { %v5229_v44 = vcombine.low %v366_v25, %v390_v30  ;;  %v5327_v56 = vcombine.low %v463_v31, %v487_v32 }
 0x244   :  { %2707 = vmatpush1.bf16.msra.mxu1 %v5225_v37  ;;  %2750 = vmatpush1.bf16.msra.mxu0 %v5227_v38  ;;  %v5230_v37 = vcombine.high %v366_v25, %v390_v30  ;;  %v5232_v38 = vcombine.high %v367_v33, %v391_v34  ;;  %v321_v25 = vld [vmem:[#allocation9 + $0x38] sm:$0xff]  ;;  %v5519_v34 = vcombine.low %v655_v14, %v679_v15 }
 0x245   :  { %2708 = vmatprep.subr.bf16.mxu1 %v5274_v39  ;;  %2751 = vmatprep.subr.bf16.mxu0 %v5276_v40  ;;  %v414_v39 = vld [vmem:[#allocation9 + $0x320] sm:$0xff]  ;;  %v345_v30 = vld [vmem:[#allocation9 + $0xf8] sm:$0xff] }
 0x246   :  { %v438_v40 = vld [vmem:[#allocation9 + $0x3e0] sm:$0xff] }
 0x247   :  { %v5277_v46 = vcombine.low %v414_v39, %v438_v40 }
 0x248   :  { %2709 = vmatpush1.bf16.msra.mxu1 %v5273_v26  ;;  %2752 = vmatpush1.bf16.msra.mxu0 %v5275_v27  ;;  %v5278_v26 = vcombine.high %v414_v39, %v438_v40  ;;  %v5280_v27 = vcombine.high %v415_v41, %v439_v43  ;;  %v369_v39 = vld [vmem:[#allocation9 + $0x1b8] sm:$0xff]  ;;  %v5187_v43 = vcombine.low %v321_v25, %v345_v30 }
 0x249   :  { %2710 = vmatprep.subr.bf16.mxu1 %v5322_v28  ;;  %2753 = vmatprep.subr.bf16.mxu0 %v5324_v29  ;;  %v462_v28 = vld [vmem:[#allocation9 + $0x4a0] sm:$0xff]  ;;  %v393_v40 = vld [vmem:[#allocation9 + $0x278] sm:$0xff] }
 0x24a   :  { %v486_v29 = vld [vmem:[#allocation9 + $0x560] sm:$0xff] }
 0x24b   :  { %v5325_v55 = vcombine.low %v462_v28, %v486_v29 }
 0x24c   :  { %2711 = vmatpush1.bf16.msra.mxu1 %v5321_v49  ;;  %2754 = vmatpush1.bf16.msra.mxu0 %v5323_v50  ;;  %v5326_v49 = vcombine.high %v462_v28, %v486_v29  ;;  %v5328_v50 = vcombine.high %v463_v31, %v487_v32  ;;  %v417_v28 = vld [vmem:[#allocation9 + $0x338] sm:$0xff]  ;;  %v5235_v32 = vcombine.low %v369_v39, %v393_v40 }
 0x24d   :  { %2712 = vmatprep.subr.bf16.mxu1 %v5370_v51  ;;  %2755 = vmatprep.subr.bf16.mxu0 %v5372_v52  ;;  %v510_v51 = vld [vmem:[#allocation9 + $0x620] sm:$0xff]  ;;  %v441_v29 = vld [vmem:[#allocation9 + $0x3f8] sm:$0xff] }
 0x24e   :  { %v534_v52 = vld [vmem:[#allocation9 + $0x6e0] sm:$0xff] }
 0x24f   :  { %v5373_v63 = vcombine.low %v510_v51, %v534_v52 }
 0x250   :  { %2713 = vmatpush1.bf16.msra.mxu1 %v5369_v57  ;;  %2756 = vmatpush1.bf16.msra.mxu0 %v5371_v58  ;;  %v5374_v57 = vcombine.high %v510_v51, %v534_v52  ;;  %v5376_v58 = vcombine.high %v511_v53, %v535_v54  ;;  %v465_v51 = vld [vmem:[#allocation9 + $0x4b8] sm:$0xff]  ;;  %v5283_v54 = vcombine.low %v417_v28, %v441_v29 }
 0x251   :  { %2714 = vmatprep.subr.bf16.mxu1 %v5418_v59  ;;  %2757 = vmatprep.subr.bf16.mxu0 %v5420_v60  ;;  %v558_v59 = vld [vmem:[#allocation9 + $0x7a0] sm:$0xff]  ;;  %v489_v52 = vld [vmem:[#allocation9 + $0x578] sm:$0xff] }
 0x252   :  { %v582_v60 = vld [vmem:[#allocation9 + $0x860] sm:$0xff] }
 0x253   :  { %v5421_v7 = vcombine.low %v558_v59, %v582_v60 }
 0x254   :  { %2715 = vmatpush1.bf16.msra.mxu1 %v5417_v1  ;;  %2758 = vmatpush1.bf16.msra.mxu0 %v5419_v2  ;;  %v5422_v1 = vcombine.high %v558_v59, %v582_v60  ;;  %v5424_v2 = vcombine.high %v559_v61, %v583_v62  ;;  %v513_v59 = vld [vmem:[#allocation9 + $0x638] sm:$0xff]  ;;  %v5331_v62 = vcombine.low %v465_v51, %v489_v52 }
 0x255   :  { %2716 = vmatprep.subr.bf16.mxu1 %v5466_v3  ;;  %2759 = vmatprep.subr.bf16.mxu0 %v5468_v4  ;;  %v606_v3 = vld [vmem:[#allocation9 + $0x920] sm:$0xff]  ;;  %v537_v60 = vld [vmem:[#allocation9 + $0x6f8] sm:$0xff] }
 0x256   :  { %v630_v4 = vld [vmem:[#allocation9 + $0x9e0] sm:$0xff] }
 0x257   :  { %v5469_v16 = vcombine.low %v606_v3, %v630_v4 }
 0x258   :  { %2717 = vmatpush1.bf16.msra.mxu1 %v5465_v10  ;;  %2760 = vmatpush1.bf16.msra.mxu0 %v5467_v11  ;;  %v5470_v10 = vcombine.high %v606_v3, %v630_v4  ;;  %v5472_v11 = vcombine.high %v607_v5, %v631_v6  ;;  %v561_v3 = vld [vmem:[#allocation9 + $0x7b8] sm:$0xff]  ;;  %v5379_v6 = vcombine.low %v513_v59, %v537_v60 }
 0x259   :  { %2718 = vmatprep.subr.bf16.mxu1 %v5514_v12  ;;  %2761 = vmatprep.subr.bf16.mxu0 %v5516_v13  ;;  %v654_v12 = vld [vmem:[#allocation9 + $0xaa0] sm:$0xff]  ;;  %v585_v4 = vld [vmem:[#allocation9 + $0x878] sm:$0xff] }
 0x25a   :  { %v678_v13 = vld [vmem:[#allocation9 + $0xb60] sm:$0xff] }
 0x25b   :  { %v5517_v33 = vcombine.low %v654_v12, %v678_v13 }
 0x25c   :  { %2719 = vmatpush1.bf16.msra.mxu1 %v5513_v18  ;;  %2762 = vmatpush1.bf16.msra.mxu0 %v5515_v19  ;;  %v5518_v18 = vcombine.high %v654_v12, %v678_v13  ;;  %v5520_v19 = vcombine.high %v655_v14, %v679_v15  ;;  %v609_v12 = vld [vmem:[#allocation9 + $0x938] sm:$0xff]  ;;  %v5427_v15 = vcombine.low %v561_v3, %v585_v4 }
 0x25d   :  { %2790 = vmatprep.subr.bf16.mxu1 %v5182_v20  ;;  %2833 = vmatprep.subr.bf16.mxu0 %v5184_v21  ;;  %v320_v20 = vld [vmem:[#allocation9 + $0x30] sm:$0xff]  ;;  %v633_v13 = vld [vmem:[#allocation9 + $0x9f8] sm:$0xff] }
 0x25e   :  { %v344_v21 = vld [vmem:[#allocation9 + $0xf0] sm:$0xff] }
 0x25f   :  { %2737 = vmatmul.mubr.bf16.vlgmr.msra.gmra.mrb[4].mxu1 %v6234_v24  ;;  %2780 = vmatmul.mubr.bf16.vlgmr.msra.gmra.mrb[8].mxu0 %v6234_v24  ;;  %v5185_v41 = vcombine.low %v320_v20, %v344_v21 }
 0x260   :  { %2791 = vmatpush1.bf16.msra.mxu1 %v5181_v35  ;;  %2834 = vmatpush1.bf16.msra.mxu0 %v5183_v36  ;;  %v5186_v35 = vcombine.high %v320_v20, %v344_v21  ;;  %v5188_v36 = vcombine.high %v321_v25, %v345_v30  ;;  %v657_v20 = vld [vmem:[#allocation9 + $0xab8] sm:$0xff]  ;;  %v5475_v30 = vcombine.low %v609_v12, %v633_v13 }
 0x261   :  { %2792 = vmatprep.subr.bf16.mxu1 %v5230_v37  ;;  %2835 = vmatprep.subr.bf16.mxu0 %v5232_v38  ;;  %v368_v37 = vld [vmem:[#allocation9 + $0x1b0] sm:$0xff]  ;;  %v681_v21 = vld [vmem:[#allocation9 + $0xb78] sm:$0xff] }
 0x262   :  { %2822 = vmatprep.mubr.bf16.mxu1 %v8720_v9  ;;  %2865 = vmatprep.mubr.bf16.mxu0 %v8720_v9  ;;  %v392_v38 = vld [vmem:[#allocation9 + $0x270] sm:$0xff] }
 0x263   :  { %v5233_v31 = vcombine.low %v368_v37, %v392_v38 }
 0x264   :  { %2793 = vmatpush1.bf16.msra.mxu1 %v5229_v44  ;;  %2836 = vmatpush1.bf16.msra.mxu0 %v5231_v45  ;;  %v5234_v44 = vcombine.high %v368_v37, %v392_v38  ;;  %v5236_v45 = vcombine.high %v369_v39, %v393_v40  ;;  %v323_v37 = vld [vmem:[#allocation9 + $0x48] sm:$0xff]  ;;  %v5523_v40 = vcombine.low %v657_v20, %v681_v21 }
 0x265   :  { %2794 = vmatprep.subr.bf16.mxu1 %v5278_v26  ;;  %2837 = vmatprep.subr.bf16.mxu0 %v5280_v27  ;;  %v416_v26 = vld [vmem:[#allocation9 + $0x330] sm:$0xff]  ;;  %v347_v38 = vld [vmem:[#allocation9 + $0x108] sm:$0xff] }
 0x266   :  { %v440_v27 = vld [vmem:[#allocation9 + $0x3f0] sm:$0xff] }
 0x267   :  { %v5281_v53 = vcombine.low %v416_v26, %v440_v27 }
 0x268   :  { %2795 = vmatpush1.bf16.msra.mxu1 %v5277_v46  ;;  %2838 = vmatpush1.bf16.msra.mxu0 %v5279_v47  ;;  %v5282_v46 = vcombine.high %v416_v26, %v440_v27  ;;  %v5284_v47 = vcombine.high %v417_v28, %v441_v29  ;;  %v371_v26 = vld [vmem:[#allocation9 + $0x1c8] sm:$0xff]  ;;  %v5191_v29 = vcombine.low %v323_v37, %v347_v38 }
 0x269   :  { %2796 = vmatprep.subr.bf16.mxu1 %v5326_v49  ;;  %2839 = vmatprep.subr.bf16.mxu0 %v5328_v50  ;;  %v464_v49 = vld [vmem:[#allocation9 + $0x4b0] sm:$0xff]  ;;  %v395_v27 = vld [vmem:[#allocation9 + $0x288] sm:$0xff] }
 0x26a   :  { %v488_v50 = vld [vmem:[#allocation9 + $0x570] sm:$0xff] }
 0x26b   :  { %v5329_v61 = vcombine.low %v464_v49, %v488_v50 }
 0x26c   :  { %2797 = vmatpush1.bf16.msra.mxu1 %v5325_v55  ;;  %2840 = vmatpush1.bf16.msra.mxu0 %v5327_v56  ;;  %v5330_v55 = vcombine.high %v464_v49, %v488_v50  ;;  %v5332_v56 = vcombine.high %v465_v51, %v489_v52  ;;  %v419_v49 = vld [vmem:[#allocation9 + $0x348] sm:$0xff]  ;;  %v5239_v52 = vcombine.low %v371_v26, %v395_v27 }
 0x26d   :  { %2798 = vmatprep.subr.bf16.mxu1 %v5374_v57  ;;  %2841 = vmatprep.subr.bf16.mxu0 %v5376_v58  ;;  %v512_v57 = vld [vmem:[#allocation9 + $0x630] sm:$0xff]  ;;  %v443_v50 = vld [vmem:[#allocation9 + $0x408] sm:$0xff] }
 0x26e   :  { %v536_v58 = vld [vmem:[#allocation9 + $0x6f0] sm:$0xff] }
 0x26f   :  { %v5377_v5 = vcombine.low %v512_v57, %v536_v58 }
 0x270   :  { %2799 = vmatpush1.bf16.msra.mxu1 %v5373_v63  ;;  %2842 = vmatpush1.bf16.msra.mxu0 %v5375_v0  ;;  %v5378_v63 = vcombine.high %v512_v57, %v536_v58  ;;  %v5380_v0 = vcombine.high %v513_v59, %v537_v60  ;;  %v467_v57 = vld [vmem:[#allocation9 + $0x4c8] sm:$0xff]  ;;  %v5287_v60 = vcombine.low %v419_v49, %v443_v50 }
 0x271   :  { %2800 = vmatprep.subr.bf16.mxu1 %v5422_v1  ;;  %2843 = vmatprep.subr.bf16.mxu0 %v5424_v2  ;;  %v560_v1 = vld [vmem:[#allocation9 + $0x7b0] sm:$0xff]  ;;  %v491_v58 = vld [vmem:[#allocation9 + $0x588] sm:$0xff] }
 0x272   :  { %v584_v2 = vld [vmem:[#allocation9 + $0x870] sm:$0xff] }
 0x273   :  { %v5425_v14 = vcombine.low %v560_v1, %v584_v2 }
 0x274   :  { %2801 = vmatpush1.bf16.msra.mxu1 %v5421_v7  ;;  %2844 = vmatpush1.bf16.msra.mxu0 %v5423_v8  ;;  %v5426_v7 = vcombine.high %v560_v1, %v584_v2  ;;  %v5428_v8 = vcombine.high %v561_v3, %v585_v4  ;;  %v515_v1 = vld [vmem:[#allocation9 + $0x648] sm:$0xff]  ;;  %v5335_v4 = vcombine.low %v467_v57, %v491_v58 }
 0x275   :  { %2802 = vmatprep.subr.bf16.mxu1 %v5470_v10  ;;  %2845 = vmatprep.subr.bf16.mxu0 %v5472_v11  ;;  %v608_v10 = vld [vmem:[#allocation9 + $0x930] sm:$0xff]  ;;  %v539_v2 = vld [vmem:[#allocation9 + $0x708] sm:$0xff] }
 0x276   :  { %v632_v11 = vld [vmem:[#allocation9 + $0x9f0] sm:$0xff] }
 0x277   :  { %v5473_v25 = vcombine.low %v608_v10, %v632_v11 }
 0x278   :  { %2803 = vmatpush1.bf16.msra.mxu1 %v5469_v16  ;;  %2846 = vmatpush1.bf16.msra.mxu0 %v5471_v17  ;;  %v5474_v16 = vcombine.high %v608_v10, %v632_v11  ;;  %v5476_v17 = vcombine.high %v609_v12, %v633_v13  ;;  %v563_v10 = vld [vmem:[#allocation9 + $0x7c8] sm:$0xff]  ;;  %v5383_v13 = vcombine.low %v515_v1, %v539_v2 }
 0x279   :  { %2804 = vmatprep.subr.bf16.mxu1 %v5518_v18  ;;  %2847 = vmatprep.subr.bf16.mxu0 %v5520_v19  ;;  %v656_v18 = vld [vmem:[#allocation9 + $0xab0] sm:$0xff]  ;;  %v587_v11 = vld [vmem:[#allocation9 + $0x888] sm:$0xff] }
 0x27a   :  { %v680_v19 = vld [vmem:[#allocation9 + $0xb70] sm:$0xff] }
 0x27b   :  { %v5521_v39 = vcombine.low %v656_v18, %v680_v19 }
 0x27c   :  { %2805 = vmatpush1.bf16.msra.mxu1 %v5517_v33  ;;  %2848 = vmatpush1.bf16.msra.mxu0 %v5519_v34  ;;  %v5522_v33 = vcombine.high %v656_v18, %v680_v19  ;;  %v5524_v34 = vcombine.high %v657_v20, %v681_v21  ;;  %v611_v18 = vld [vmem:[#allocation9 + $0x948] sm:$0xff]  ;;  %v5431_v21 = vcombine.low %v563_v10, %v587_v11 }
 0x27d   :  { %2876 = vmatprep.subr.bf16.mxu1 %v5186_v35  ;;  %2919 = vmatprep.subr.bf16.mxu0 %v5188_v36  ;;  %v322_v35 = vld [vmem:[#allocation9 + $0x40] sm:$0xff]  ;;  %v635_v19 = vld [vmem:[#allocation9 + $0xa08] sm:$0xff] }
 0x27e   :  { %v346_v36 = vld [vmem:[#allocation9 + $0x100] sm:$0xff] }
 0x27f   :  { %2823 = vmatmul.mubr.bf16.vlgmr.msra.gmra.mrb[8].mxu1 %v6234_v24  ;;  %2866 = vmatmul.mubr.bf16.vlgmr.msra.gmra.mrb[12].mxu0 %v6234_v24  ;;  %v5189_v28 = vcombine.low %v322_v35, %v346_v36 }
 0x280   :  { %2877 = vmatpush1.bf16.msra.mxu1 %v5185_v41  ;;  %2920 = vmatpush1.bf16.msra.mxu0 %v5187_v43  ;;  %v5190_v41 = vcombine.high %v322_v35, %v346_v36  ;;  %v5192_v43 = vcombine.high %v323_v37, %v347_v38  ;;  %v659_v35 = vld [vmem:[#allocation9 + $0xac8] sm:$0xff]  ;;  %v5479_v38 = vcombine.low %v611_v18, %v635_v19 }
 0x281   :  { %2878 = vmatprep.subr.bf16.mxu1 %v5234_v44  ;;  %2921 = vmatprep.subr.bf16.mxu0 %v5236_v45  ;;  %v370_v44 = vld [vmem:[#allocation9 + $0x1c0] sm:$0xff]  ;;  %v683_v36 = vld [vmem:[#allocation9 + $0xb88] sm:$0xff] }
 0x282   :  { %2908 = vmatprep.mubr.bf16.mxu1 %v8720_v9  ;;  %2951 = vmatprep.mubr.bf16.mxu0 %v8720_v9  ;;  %v394_v45 = vld [vmem:[#allocation9 + $0x280] sm:$0xff] }
 0x283   :  { %v5237_v51 = vcombine.low %v370_v44, %v394_v45 }
 0x284   :  { %2879 = vmatpush1.bf16.msra.mxu1 %v5233_v31  ;;  %2922 = vmatpush1.bf16.msra.mxu0 %v5235_v32  ;;  %v5238_v31 = vcombine.high %v370_v44, %v394_v45  ;;  %v5240_v32 = vcombine.high %v371_v26, %v395_v27  ;;  %v325_v44 = vld [vmem:[#allocation9 + $0x58] sm:$0xff]  ;;  %v5527_v27 = vcombine.low %v659_v35, %v683_v36 }
 0x285   :  { %2880 = vmatprep.subr.bf16.mxu1 %v5282_v46  ;;  %2923 = vmatprep.subr.bf16.mxu0 %v5284_v47  ;;  %v418_v46 = vld [vmem:[#allocation9 + $0x340] sm:$0xff]  ;;  %v349_v45 = vld [vmem:[#allocation9 + $0x118] sm:$0xff] }
 0x286   :  { %v442_v47 = vld [vmem:[#allocation9 + $0x400] sm:$0xff] }
 0x287   :  { %v5285_v59 = vcombine.low %v418_v46, %v442_v47 }
 0x288   :  { %2881 = vmatpush1.bf16.msra.mxu1 %v5281_v53  ;;  %2924 = vmatpush1.bf16.msra.mxu0 %v5283_v54  ;;  %v5286_v53 = vcombine.high %v418_v46, %v442_v47  ;;  %v5288_v54 = vcombine.high %v419_v49, %v443_v50  ;;  %v373_v46 = vld [vmem:[#allocation9 + $0x1d8] sm:$0xff]  ;;  %v5195_v50 = vcombine.low %v325_v44, %v349_v45 }
 0x289   :  { %2882 = vmatprep.subr.bf16.mxu1 %v5330_v55  ;;  %2925 = vmatprep.subr.bf16.mxu0 %v5332_v56  ;;  %v466_v55 = vld [vmem:[#allocation9 + $0x4c0] sm:$0xff]  ;;  %v397_v47 = vld [vmem:[#allocation9 + $0x298] sm:$0xff] }
 0x28a   :  { %v490_v56 = vld [vmem:[#allocation9 + $0x580] sm:$0xff] }
 0x28b   :  { %v5333_v3 = vcombine.low %v466_v55, %v490_v56 }
 0x28c   :  { %2883 = vmatpush1.bf16.msra.mxu1 %v5329_v61  ;;  %2926 = vmatpush1.bf16.msra.mxu0 %v5331_v62  ;;  %v5334_v61 = vcombine.high %v466_v55, %v490_v56  ;;  %v5336_v62 = vcombine.high %v467_v57, %v491_v58  ;;  %v421_v55 = vld [vmem:[#allocation9 + $0x358] sm:$0xff]  ;;  %v5243_v58 = vcombine.low %v373_v46, %v397_v47 }
 0x28d   :  { %2884 = vmatprep.subr.bf16.mxu1 %v5378_v63  ;;  %2927 = vmatprep.subr.bf16.mxu0 %v5380_v0  ;;  %v514_v63 = vld [vmem:[#allocation9 + $0x640] sm:$0xff]  ;;  %v445_v56 = vld [vmem:[#allocation9 + $0x418] sm:$0xff] }
 0x28e   :  { %v538_v0 = vld [vmem:[#allocation9 + $0x700] sm:$0xff] }
 0x28f   :  { %v5381_v12 = vcombine.low %v514_v63, %v538_v0 }
 0x290   :  { %2885 = vmatpush1.bf16.msra.mxu1 %v5377_v5  ;;  %2928 = vmatpush1.bf16.msra.mxu0 %v5379_v6  ;;  %v5382_v5 = vcombine.high %v514_v63, %v538_v0  ;;  %v5384_v6 = vcombine.high %v515_v1, %v539_v2  ;;  %v469_v63 = vld [vmem:[#allocation9 + $0x4d8] sm:$0xff]  ;;  %v5291_v2 = vcombine.low %v421_v55, %v445_v56 }
 0x291   :  { %2886 = vmatprep.subr.bf16.mxu1 %v5426_v7  ;;  %2929 = vmatprep.subr.bf16.mxu0 %v5428_v8  ;;  %v562_v7 = vld [vmem:[#allocation9 + $0x7c0] sm:$0xff]  ;;  %v493_v0 = vld [vmem:[#allocation9 + $0x598] sm:$0xff] }
 0x292   :  { %v586_v8 = vld [vmem:[#allocation9 + $0x880] sm:$0xff] }
 0x293   :  { %v5429_v20 = vcombine.low %v562_v7, %v586_v8 }
 0x294   :  { %2887 = vmatpush1.bf16.msra.mxu1 %v5425_v14  ;;  %2930 = vmatpush1.bf16.msra.mxu0 %v5427_v15  ;;  %v5430_v14 = vcombine.high %v562_v7, %v586_v8  ;;  %v5432_v15 = vcombine.high %v563_v10, %v587_v11  ;;  %v517_v7 = vld [vmem:[#allocation9 + $0x658] sm:$0xff]  ;;  %v5339_v11 = vcombine.low %v469_v63, %v493_v0 }
 0x295   :  { %2888 = vmatprep.subr.bf16.mxu1 %v5474_v16  ;;  %2931 = vmatprep.subr.bf16.mxu0 %v5476_v17  ;;  %v610_v16 = vld [vmem:[#allocation9 + $0x940] sm:$0xff]  ;;  %v541_v8 = vld [vmem:[#allocation9 + $0x718] sm:$0xff] }
 0x296   :  { %v634_v17 = vld [vmem:[#allocation9 + $0xa00] sm:$0xff] }
 0x297   :  { %v5477_v37 = vcombine.low %v610_v16, %v634_v17 }
 0x298   :  { %2889 = vmatpush1.bf16.msra.mxu1 %v5473_v25  ;;  %2932 = vmatpush1.bf16.msra.mxu0 %v5475_v30  ;;  %v5478_v25 = vcombine.high %v610_v16, %v634_v17  ;;  %v5480_v30 = vcombine.high %v611_v18, %v635_v19  ;;  %v565_v16 = vld [vmem:[#allocation9 + $0x7d8] sm:$0xff]  ;;  %v5387_v19 = vcombine.low %v517_v7, %v541_v8 }
 0x299   :  { %2890 = vmatprep.subr.bf16.mxu1 %v5522_v33  ;;  %2933 = vmatprep.subr.bf16.mxu0 %v5524_v34  ;;  %v658_v33 = vld [vmem:[#allocation9 + $0xac0] sm:$0xff]  ;;  %v589_v17 = vld [vmem:[#allocation9 + $0x898] sm:$0xff] }
 0x29a   :  { %v682_v34 = vld [vmem:[#allocation9 + $0xb80] sm:$0xff] }
 0x29b   :  { %v5525_v26 = vcombine.low %v658_v33, %v682_v34 }
 0x29c   :  { %2891 = vmatpush1.bf16.msra.mxu1 %v5521_v39  ;;  %2934 = vmatpush1.bf16.msra.mxu0 %v5523_v40  ;;  %v5526_v39 = vcombine.high %v658_v33, %v682_v34  ;;  %v5528_v40 = vcombine.high %v659_v35, %v683_v36  ;;  %v613_v33 = vld [vmem:[#allocation9 + $0x958] sm:$0xff]  ;;  %v5435_v36 = vcombine.low %v565_v16, %v589_v17 }
 0x29d   :  { %2962 = vmatprep.subr.bf16.mxu1 %v5190_v41  ;;  %3005 = vmatprep.subr.bf16.mxu0 %v5192_v43  ;;  %v324_v41 = vld [vmem:[#allocation9 + $0x50] sm:$0xff]  ;;  %v637_v34 = vld [vmem:[#allocation9 + $0xa18] sm:$0xff] }
 0x29e   :  { %v348_v43 = vld [vmem:[#allocation9 + $0x110] sm:$0xff] }
 0x29f   :  { %2909 = vmatmul.mubr.bf16.vlgmr.msra.gmra.mrb[12].mxu1 %v6234_v24  ;;  %2952 = vmatmul.mubr.bf16.vlgmr.msra.gmra.mrb[16].mxu0 %v6234_v24  ;;  %v5193_v49 = vcombine.low %v324_v41, %v348_v43 }
 0x2a0   :  { %2963 = vmatpush1.bf16.msra.mxu1 %v5189_v28  ;;  %3006 = vmatpush1.bf16.msra.mxu0 %v5191_v29  ;;  %v5194_v28 = vcombine.high %v324_v41, %v348_v43  ;;  %v5196_v29 = vcombine.high %v325_v44, %v349_v45  ;;  %v661_v41 = vld [vmem:[#allocation9 + $0xad8] sm:$0xff]  ;;  %v5483_v45 = vcombine.low %v613_v33, %v637_v34 }
 0x2a1   :  { %2964 = vmatprep.subr.bf16.mxu1 %v5238_v31  ;;  %3007 = vmatprep.subr.bf16.mxu0 %v5240_v32  ;;  %v372_v31 = vld [vmem:[#allocation9 + $0x1d0] sm:$0xff]  ;;  %v685_v43 = vld [vmem:[#allocation9 + $0xb98] sm:$0xff] }
 0x2a2   :  { %2994 = vmatprep.mubr.bf16.mxu1 %v8720_v9  ;;  %3037 = vmatprep.mubr.bf16.mxu0 %v8720_v9  ;;  %v396_v32 = vld [vmem:[#allocation9 + $0x290] sm:$0xff] }
 0x2a3   :  { %v5241_v57 = vcombine.low %v372_v31, %v396_v32 }
 0x2a4   :  { %2965 = vmatpush1.bf16.msra.mxu1 %v5237_v51  ;;  %3008 = vmatpush1.bf16.msra.mxu0 %v5239_v52  ;;  %v5242_v51 = vcombine.high %v372_v31, %v396_v32  ;;  %v5244_v52 = vcombine.high %v373_v46, %v397_v47  ;;  %v327_v31 = vld [vmem:[#allocation9 + $0x68] sm:$0xff]  ;;  %v5531_v47 = vcombine.low %v661_v41, %v685_v43 }
 0x2a5   :  { %2966 = vmatprep.subr.bf16.mxu1 %v5286_v53  ;;  %3009 = vmatprep.subr.bf16.mxu0 %v5288_v54  ;;  %v420_v53 = vld [vmem:[#allocation9 + $0x350] sm:$0xff]  ;;  %v351_v32 = vld [vmem:[#allocation9 + $0x128] sm:$0xff] }
 0x2a6   :  { %v444_v54 = vld [vmem:[#allocation9 + $0x410] sm:$0xff] }
 0x2a7   :  { %v5289_v1 = vcombine.low %v420_v53, %v444_v54 }
 0x2a8   :  { %2967 = vmatpush1.bf16.msra.mxu1 %v5285_v59  ;;  %3010 = vmatpush1.bf16.msra.mxu0 %v5287_v60  ;;  %v5290_v59 = vcombine.high %v420_v53, %v444_v54  ;;  %v5292_v60 = vcombine.high %v421_v55, %v445_v56  ;;  %v375_v53 = vld [vmem:[#allocation9 + $0x1e8] sm:$0xff]  ;;  %v5199_v56 = vcombine.low %v327_v31, %v351_v32 }
 0x2a9   :  { %2968 = vmatprep.subr.bf16.mxu1 %v5334_v61  ;;  %3011 = vmatprep.subr.bf16.mxu0 %v5336_v62  ;;  %v468_v61 = vld [vmem:[#allocation9 + $0x4d0] sm:$0xff]  ;;  %v399_v54 = vld [vmem:[#allocation9 + $0x2a8] sm:$0xff] }
 0x2aa   :  { %v492_v62 = vld [vmem:[#allocation9 + $0x590] sm:$0xff] }
 0x2ab   :  { %v5337_v10 = vcombine.low %v468_v61, %v492_v62 }
 0x2ac   :  { %2969 = vmatpush1.bf16.msra.mxu1 %v5333_v3  ;;  %3012 = vmatpush1.bf16.msra.mxu0 %v5335_v4  ;;  %v5338_v3 = vcombine.high %v468_v61, %v492_v62  ;;  %v5340_v4 = vcombine.high %v469_v63, %v493_v0  ;;  %v423_v61 = vld [vmem:[#allocation9 + $0x368] sm:$0xff]  ;;  %v5247_v0 = vcombine.low %v375_v53, %v399_v54 }
 0x2ad   :  { %2970 = vmatprep.subr.bf16.mxu1 %v5382_v5  ;;  %3013 = vmatprep.subr.bf16.mxu0 %v5384_v6  ;;  %v516_v5 = vld [vmem:[#allocation9 + $0x650] sm:$0xff]  ;;  %v447_v62 = vld [vmem:[#allocation9 + $0x428] sm:$0xff] }
 0x2ae   :  { %v540_v6 = vld [vmem:[#allocation9 + $0x710] sm:$0xff] }
 0x2af   :  { %v5385_v18 = vcombine.low %v516_v5, %v540_v6 }
 0x2b0   :  { %2971 = vmatpush1.bf16.msra.mxu1 %v5381_v12  ;;  %3014 = vmatpush1.bf16.msra.mxu0 %v5383_v13  ;;  %v5386_v12 = vcombine.high %v516_v5, %v540_v6  ;;  %v5388_v13 = vcombine.high %v517_v7, %v541_v8  ;;  %v471_v5 = vld [vmem:[#allocation9 + $0x4e8] sm:$0xff]  ;;  %v5295_v8 = vcombine.low %v423_v61, %v447_v62 }
 0x2b1   :  { %2972 = vmatprep.subr.bf16.mxu1 %v5430_v14  ;;  %3015 = vmatprep.subr.bf16.mxu0 %v5432_v15  ;;  %v564_v14 = vld [vmem:[#allocation9 + $0x7d0] sm:$0xff]  ;;  %v495_v6 = vld [vmem:[#allocation9 + $0x5a8] sm:$0xff] }
 0x2b2   :  { %v588_v15 = vld [vmem:[#allocation9 + $0x890] sm:$0xff] }
 0x2b3   :  { %v5433_v35 = vcombine.low %v564_v14, %v588_v15 }
 0x2b4   :  { %2973 = vmatpush1.bf16.msra.mxu1 %v5429_v20  ;;  %3016 = vmatpush1.bf16.msra.mxu0 %v5431_v21  ;;  %v5434_v20 = vcombine.high %v564_v14, %v588_v15  ;;  %v5436_v21 = vcombine.high %v565_v16, %v589_v17  ;;  %v519_v14 = vld [vmem:[#allocation9 + $0x668] sm:$0xff]  ;;  %v5343_v17 = vcombine.low %v471_v5, %v495_v6 }
 0x2b5   :  { %2974 = vmatprep.subr.bf16.mxu1 %v5478_v25  ;;  %3017 = vmatprep.subr.bf16.mxu0 %v5480_v30  ;;  %v612_v25 = vld [vmem:[#allocation9 + $0x950] sm:$0xff]  ;;  %v543_v15 = vld [vmem:[#allocation9 + $0x728] sm:$0xff] }
 0x2b6   :  { %v636_v30 = vld [vmem:[#allocation9 + $0xa10] sm:$0xff] }
 0x2b7   :  { %v5481_v44 = vcombine.low %v612_v25, %v636_v30 }
 0x2b8   :  { %2975 = vmatpush1.bf16.msra.mxu1 %v5477_v37  ;;  %3018 = vmatpush1.bf16.msra.mxu0 %v5479_v38  ;;  %v5482_v37 = vcombine.high %v612_v25, %v636_v30  ;;  %v5484_v38 = vcombine.high %v613_v33, %v637_v34  ;;  %v567_v25 = vld [vmem:[#allocation9 + $0x7e8] sm:$0xff]  ;;  %v5391_v34 = vcombine.low %v519_v14, %v543_v15 }
 0x2b9   :  { %2976 = vmatprep.subr.bf16.mxu1 %v5526_v39  ;;  %3019 = vmatprep.subr.bf16.mxu0 %v5528_v40  ;;  %v660_v39 = vld [vmem:[#allocation9 + $0xad0] sm:$0xff]  ;;  %v591_v30 = vld [vmem:[#allocation9 + $0x8a8] sm:$0xff] }
 0x2ba   :  { %v684_v40 = vld [vmem:[#allocation9 + $0xb90] sm:$0xff] }
 0x2bb   :  { %v5529_v46 = vcombine.low %v660_v39, %v684_v40 }
 0x2bc   :  { %2977 = vmatpush1.bf16.msra.mxu1 %v5525_v26  ;;  %3020 = vmatpush1.bf16.msra.mxu0 %v5527_v27  ;;  %v5530_v26 = vcombine.high %v660_v39, %v684_v40  ;;  %v5532_v27 = vcombine.high %v661_v41, %v685_v43  ;;  %v615_v39 = vld [vmem:[#allocation9 + $0x968] sm:$0xff]  ;;  %v5439_v43 = vcombine.low %v567_v25, %v591_v30 }
 0x2bd   :  { %3048 = vmatprep.subr.bf16.mxu1 %v5194_v28  ;;  %3091 = vmatprep.subr.bf16.mxu0 %v5196_v29  ;;  %v326_v28 = vld [vmem:[#allocation9 + $0x60] sm:$0xff]  ;;  %v639_v40 = vld [vmem:[#allocation9 + $0xa28] sm:$0xff] }
 0x2be   :  { %v350_v29 = vld [vmem:[#allocation9 + $0x120] sm:$0xff] }
 0x2bf   :  { %2995 = vmatmul.mubr.bf16.vlgmr.msra.gmra.mrb[16].mxu1 %v6234_v24  ;;  %3038 = vmatmul.mubr.bf16.vlgmr.msra.gmra.mrb[20].mxu0 %v6234_v24  ;;  %v5197_v55 = vcombine.low %v326_v28, %v350_v29 }
 0x2c0   :  { %3049 = vmatpush1.bf16.msra.mxu1 %v5193_v49  ;;  %3092 = vmatpush1.bf16.msra.mxu0 %v5195_v50  ;;  %v5198_v49 = vcombine.high %v326_v28, %v350_v29  ;;  %v5200_v50 = vcombine.high %v327_v31, %v351_v32  ;;  %v663_v28 = vld [vmem:[#allocation9 + $0xae8] sm:$0xff]  ;;  %v5487_v32 = vcombine.low %v615_v39, %v639_v40 }
 0x2c1   :  { %3050 = vmatprep.subr.bf16.mxu1 %v5242_v51  ;;  %3093 = vmatprep.subr.bf16.mxu0 %v5244_v52  ;;  %v374_v51 = vld [vmem:[#allocation9 + $0x1e0] sm:$0xff]  ;;  %v687_v29 = vld [vmem:[#allocation9 + $0xba8] sm:$0xff] }
 0x2c2   :  { %3080 = vmatprep.mubr.bf16.mxu1 %v8720_v9  ;;  %3123 = vmatprep.mubr.bf16.mxu0 %v8720_v9  ;;  %v398_v52 = vld [vmem:[#allocation9 + $0x2a0] sm:$0xff] }
 0x2c3   :  { %v5245_v63 = vcombine.low %v374_v51, %v398_v52 }
 0x2c4   :  { %3051 = vmatpush1.bf16.msra.mxu1 %v5241_v57  ;;  %3094 = vmatpush1.bf16.msra.mxu0 %v5243_v58  ;;  %v5246_v57 = vcombine.high %v374_v51, %v398_v52  ;;  %v5248_v58 = vcombine.high %v375_v53, %v399_v54  ;;  %v329_v51 = vld [vmem:[#allocation9 + $0x78] sm:$0xff]  ;;  %v5535_v54 = vcombine.low %v663_v28, %v687_v29 }
 0x2c5   :  { %3052 = vmatprep.subr.bf16.mxu1 %v5290_v59  ;;  %3095 = vmatprep.subr.bf16.mxu0 %v5292_v60  ;;  %v422_v59 = vld [vmem:[#allocation9 + $0x360] sm:$0xff]  ;;  %v353_v52 = vld [vmem:[#allocation9 + $0x138] sm:$0xff] }
 0x2c6   :  { %v446_v60 = vld [vmem:[#allocation9 + $0x420] sm:$0xff] }
 0x2c7   :  { %v5293_v7 = vcombine.low %v422_v59, %v446_v60 }
 0x2c8   :  { %3053 = vmatpush1.bf16.msra.mxu1 %v5289_v1  ;;  %3096 = vmatpush1.bf16.msra.mxu0 %v5291_v2  ;;  %v5294_v1 = vcombine.high %v422_v59, %v446_v60  ;;  %v5296_v2 = vcombine.high %v423_v61, %v447_v62  ;;  %v377_v59 = vld [vmem:[#allocation9 + $0x1f8] sm:$0xff]  ;;  %v5203_v62 = vcombine.low %v329_v51, %v353_v52 }
 0x2c9   :  { %3054 = vmatprep.subr.bf16.mxu1 %v5338_v3  ;;  %3097 = vmatprep.subr.bf16.mxu0 %v5340_v4  ;;  %v470_v3 = vld [vmem:[#allocation9 + $0x4e0] sm:$0xff]  ;;  %v401_v60 = vld [vmem:[#allocation9 + $0x2b8] sm:$0xff] }
 0x2ca   :  { %v494_v4 = vld [vmem:[#allocation9 + $0x5a0] sm:$0xff] }
 0x2cb   :  { %v5341_v16 = vcombine.low %v470_v3, %v494_v4 }
 0x2cc   :  { %3055 = vmatpush1.bf16.msra.mxu1 %v5337_v10  ;;  %3098 = vmatpush1.bf16.msra.mxu0 %v5339_v11  ;;  %v5342_v10 = vcombine.high %v470_v3, %v494_v4  ;;  %v5344_v11 = vcombine.high %v471_v5, %v495_v6  ;;  %v425_v3 = vld [vmem:[#allocation9 + $0x378] sm:$0xff]  ;;  %v5251_v6 = vcombine.low %v377_v59, %v401_v60 }
 0x2cd   :  { %3056 = vmatprep.subr.bf16.mxu1 %v5386_v12  ;;  %3099 = vmatprep.subr.bf16.mxu0 %v5388_v13  ;;  %v518_v12 = vld [vmem:[#allocation9 + $0x660] sm:$0xff]  ;;  %v449_v4 = vld [vmem:[#allocation9 + $0x438] sm:$0xff] }
 0x2ce   :  { %v542_v13 = vld [vmem:[#allocation9 + $0x720] sm:$0xff] }
 0x2cf   :  { %v5389_v33 = vcombine.low %v518_v12, %v542_v13 }
 0x2d0   :  { %3057 = vmatpush1.bf16.msra.mxu1 %v5385_v18  ;;  %3100 = vmatpush1.bf16.msra.mxu0 %v5387_v19  ;;  %v5390_v18 = vcombine.high %v518_v12, %v542_v13  ;;  %v5392_v19 = vcombine.high %v519_v14, %v543_v15  ;;  %v473_v12 = vld [vmem:[#allocation9 + $0x4f8] sm:$0xff]  ;;  %v3654_v14 = vlaneseq }
 0x2d1   :  { %3058 = vmatprep.subr.bf16.mxu1 %v5434_v20  ;;  %3101 = vmatprep.subr.bf16.mxu0 %v5436_v21  ;;  %v566_v20 = vld [vmem:[#allocation9 + $0x7e0] sm:$0xff]  ;;  %v497_v13 = vld [vmem:[#allocation9 + $0x5b8] sm:$0xff] }
 0x2d2   :  { %v590_v21 = vld [vmem:[#allocation9 + $0x8a0] sm:$0xff] }
 0x2d3   :  { %v5437_v41 = vcombine.low %v566_v20, %v590_v21 }
 0x2d4   :  { %3059 = vmatpush1.bf16.msra.mxu1 %v5433_v35  ;;  %3102 = vmatpush1.bf16.msra.mxu0 %v5435_v36  ;;  %v5438_v35 = vcombine.high %v566_v20, %v590_v21  ;;  %v5440_v36 = vcombine.high %v567_v25, %v591_v30  ;;  %v544_v20 = vld [vmem:[#allocation9 + $0x730] sm:$0xff]  ;;  %v521_v21 = vld [vmem:[#allocation9 + $0x678] sm:$0xff]  ;;  %v6270_v30 = vshrl.u32 %v3654_v14, 7  ;;  %v6464_v14 = vld [vmem:[#allocation9 + $0x980] sm:$0xff] }
 0x2d5   :  { %3060 = vmatprep.subr.bf16.mxu1 %v5482_v37  ;;  %3103 = vmatprep.subr.bf16.mxu0 %v5484_v38  ;;  %v614_v37 = vld [vmem:[#allocation9 + $0x960] sm:$0xff]  ;;  %v545_v25 = vld [vmem:[#allocation9 + $0x738] sm:$0xff] }
 0x2d6   :  { %v638_v38 = vld [vmem:[#allocation9 + $0xa20] sm:$0xff] }
 0x2d7   :  { %v5485_v31 = vcombine.low %v614_v37, %v638_v38 }
 0x2d8   :  { %3061 = vmatpush1.bf16.msra.mxu1 %v5481_v44  ;;  %3104 = vmatpush1.bf16.msra.mxu0 %v5483_v45  ;;  %v5486_v44 = vcombine.high %v614_v37, %v638_v38  ;;  %v5488_v45 = vcombine.high %v615_v39, %v639_v40  ;;  %v6272_v37 = vld [vmem:[#allocation9 + $0x7f0] sm:$0xff]  ;;  %v6275_v38 = vsub.s32 0, %v6270_v30  ;;  %v6279_v40 = vld [vmem:[#allocation9 + $0x7f8] sm:$0xff] }
 0x2d9   :  { %3062 = vmatprep.subr.bf16.mxu1 %v5530_v26  ;;  %3105 = vmatprep.subr.bf16.mxu0 %v5532_v27  ;;  %v662_v26 = vld [vmem:[#allocation9 + $0xae0] sm:$0xff]  ;;  %v6277_v39 = vld [vmem:[#allocation9 + $0x8b0] sm:$0xff] }
 0x2da   :  { %v686_v27 = vld [vmem:[#allocation9 + $0xba0] sm:$0xff] }
 0x2db   :  { %v5533_v53 = vcombine.low %v662_v26, %v686_v27 }
 0x2dc   :  { %3063 = vmatpush1.bf16.msra.mxu1 %v5529_v46  ;;  %3106 = vmatpush1.bf16.msra.mxu0 %v5531_v47  ;;  %v5534_v46 = vcombine.high %v662_v26, %v686_v27  ;;  %v5536_v47 = vcombine.high %v663_v28, %v687_v29  ;;  %v5395_v27 = vcombine.low %v521_v21, %v545_v25  ;;  %v6292_v28 = vsub.s32 3, %v6270_v30  ;;  %v6294_v29 = vld [vmem:[#allocation9 + $0x970] sm:$0xff] }
 0x2dd   :  { %3134 = vmatprep.subr.bf16.mxu1 %v5198_v49  ;;  %3177 = vmatprep.subr.bf16.mxu0 %v5200_v50  ;;  %v328_v49 = vld [vmem:[#allocation9 + $0x70] sm:$0xff] }
 0x2de   :  { %v352_v50 = vld [vmem:[#allocation9 + $0x130] sm:$0xff] }
 0x2df   :  { %3081 = vmatmul.mubr.bf16.vlgmr.msra.gmra.mrb[20].mxu1 %v6234_v24  ;;  %3124 = vmatmul.mubr.bf16.vlgmr.msra.gmra.mrb[24].mxu0 %v6234_v24  ;;  %v5201_v61 = vcombine.low %v328_v49, %v352_v50 }
 0x2e0   :  { %3135 = vmatpush1.bf16.msra.mxu1 %v5197_v55  ;;  %3178 = vmatpush1.bf16.msra.mxu0 %v5199_v56  ;;  %v5202_v55 = vcombine.high %v328_v49, %v352_v50  ;;  %v5204_v56 = vcombine.high %v329_v51, %v353_v52  ;;  %v6304_v49 = vld [vmem:[#allocation9 + $0xa38] sm:$0xff]  ;;  %v6306_v50 = vld [vmem:[#allocation9 + $0xaf0] sm:$0xff] }
 0x2e1   :  { %3136 = vmatprep.subr.bf16.mxu1 %v5246_v57  ;;  %3179 = vmatprep.subr.bf16.mxu0 %v5248_v58  ;;  %v376_v57 = vld [vmem:[#allocation9 + $0x1f0] sm:$0xff] }
 0x2e2   :  { %3166 = vmatprep.mubr.bf16.mxu1 %v8720_v9  ;;  %3209 = vmatprep.mubr.bf16.mxu0 %v8720_v9  ;;  %v400_v58 = vld [vmem:[#allocation9 + $0x2b0] sm:$0xff] }
 0x2e3   :  { %v5249_v5 = vcombine.low %v376_v57, %v400_v58  ;;  %v6312_v52 = vld [vmem:[#allocation9 + $0xbb0] sm:$0xff] }
 0x2e4   :  { %3137 = vmatpush1.bf16.msra.mxu1 %v5245_v63  ;;  %3180 = vmatpush1.bf16.msra.mxu0 %v5247_v0  ;;  %v5250_v63 = vcombine.high %v376_v57, %v400_v58  ;;  %v5252_v0 = vcombine.high %v377_v59, %v401_v60  ;;  %v6330_v59 = vld [vmem:[#allocation9 + $0x80] sm:$0xff] }
 0x2e5   :  { %3138 = vmatprep.subr.bf16.mxu1 %v5294_v1  ;;  %3181 = vmatprep.subr.bf16.mxu0 %v5296_v2  ;;  %v424_v1 = vld [vmem:[#allocation9 + $0x370] sm:$0xff]  ;;  %v6332_v60 = vld [vmem:[#allocation9 + $0x140] sm:$0xff] }
 0x2e6   :  { %v448_v2 = vld [vmem:[#allocation9 + $0x430] sm:$0xff] }
 0x2e7   :  { %v5297_v15 = vcombine.low %v424_v1, %v448_v2 }
 0x2e8   :  { %3139 = vmatpush1.bf16.msra.mxu1 %v5293_v7  ;;  %3182 = vmatpush1.bf16.msra.mxu0 %v5295_v8  ;;  %v5298_v7 = vcombine.high %v424_v1, %v448_v2  ;;  %v5300_v8 = vcombine.high %v425_v3, %v449_v4  ;;  %v6344_v1 = vld [vmem:[#allocation9 + $0x148] sm:$0xff]  ;;  %v6346_v2 = vld [vmem:[#allocation9 + $0x200] sm:$0xff] }
 0x2e9   :  { %3140 = vmatprep.subr.bf16.mxu1 %v5342_v10  ;;  %3183 = vmatprep.subr.bf16.mxu0 %v5344_v11  ;;  %v472_v10 = vld [vmem:[#allocation9 + $0x4f0] sm:$0xff] }
 0x2ea   :  { %v496_v11 = vld [vmem:[#allocation9 + $0x5b0] sm:$0xff] }
 0x2ec   :  { %3141 = vmatpush1.bf16.msra.mxu1 %v5341_v16  ;;  %3184 = vmatpush1.bf16.msra.mxu0 %v5343_v17  ;;  %v5299_v16 = vcombine.low %v425_v3, %v449_v4  ;;  %v5346_v17 = vcombine.high %v472_v10, %v496_v11  ;;  %v6348_v3 = vld [vmem:[#allocation9 + $0x2c0] sm:$0xff] }
 0x2ed   :  { %3142 = vmatprep.subr.bf16.mxu1 %v5390_v18  ;;  %3185 = vmatprep.subr.bf16.mxu0 %v5392_v19  ;;  %v5348_v18 = vcombine.high %v473_v12, %v497_v13  ;;  %v520_v19 = vld [vmem:[#allocation9 + $0x670] sm:$0xff] }
 0x2ee   :  { %v5393_v26 = vcombine.low %v520_v19, %v544_v20 }
 0x2f0   :  { %3143 = vmatpush1.bf16.msra.mxu1 %v5389_v33  ;;  %3186 = vmatpush1.bf16.msra.mxu0 %v5391_v34  ;;  %v5345_v33 = vcombine.low %v472_v10, %v496_v11  ;;  %v5347_v34 = vcombine.low %v473_v12, %v497_v13  ;;  %v6360_v10 = vld [vmem:[#allocation9 + $0x380] sm:$0xff]  ;;  %v6468_v13 = vld [vmem:[#allocation12] sm:$0xff] }
 0x2f1   :  { %3144 = vmatprep.subr.bf16.mxu1 %v5438_v35  ;;  %3187 = vmatprep.subr.bf16.mxu0 %v5440_v36  ;;  %v5394_v35 = vcombine.high %v520_v19, %v544_v20  ;;  %v5396_v36 = vcombine.high %v521_v21, %v545_v25  ;;  %v6378_v19 = vld [vmem:[#allocation9 + $0x448] sm:$0xff] }
 0x2f2   :  { %v6482_v25 = vld [vmem:[#allocation9 + $0xa48] sm:$0xff] }
 0x2f3   :  { %8998 = vst [vmem:[#allocation29_spill] sm:$0xff] %v6482_v25  ;;  %v6560_v25 = vld [vmem:[#allocation9 + $0x218] sm:$0xff] }
 0x2f4   :  { %3145 = vmatpush1.bf16.msra.mxu1 %v5437_v41  ;;  %3188 = vmatpush1.bf16.msra.mxu0 %v5439_v43  ;;  %v6281_v41 = vld [vmem:[#allocation9 + $0x8b8] sm:$0xff]  ;;  %v6283_v43 = vld [vmem:[#allocation10] sm:$0xff]  ;;  %9014 = vst [vmem:[#allocation41_spill] sm:$0xff] %v6560_v25 }
 0x2f5   :  { %3146 = vmatprep.subr.bf16.mxu1 %v5486_v44  ;;  %3189 = vmatprep.subr.bf16.mxu0 %v5488_v45  ;;  %v6286_v44 = vsub.s32 2, %v6270_v30  ;;  %v6289_v45 = vsub.s32 1, %v6270_v30  ;;  %v6310_v51 = vrot.slane %v6283_v43, %v6275_v38  ;;  %v5443_v57 = vcombine.low %v6279_v40, %v6281_v41 }
 0x2f7   :  { %v6328_v58 = vrot.slane %v6283_v43, %v6289_v45 }
 0x2f8   :  { %3147 = vmatpush1.bf16.msra.mxu1 %v5485_v31  ;;  %3190 = vmatpush1.bf16.msra.mxu0 %v5487_v32  ;;  %v6296_v31 = vld [vmem:[#allocation9 + $0xa30] sm:$0xff]  ;;  %v5442_v32 = vcombine.high %v6272_v37, %v6277_v39 }
 0x2f9   :  { %3148 = vmatprep.subr.bf16.mxu1 %v5534_v46  ;;  %3191 = vmatprep.subr.bf16.mxu0 %v5536_v47  ;;  %v5444_v46 = vcombine.high %v6279_v40, %v6281_v41  ;;  %v6302_v47 = vld [vmem:[#allocation9 + $0x978] sm:$0xff] }
 0x2fa   :  { %v5491_v4 = vcombine.low %v6302_v47, %v6304_v49 }
 0x2fc   :  { %3149 = vmatpush1.bf16.msra.mxu1 %v5533_v53  ;;  %3192 = vmatpush1.bf16.msra.mxu0 %v5535_v54  ;;  %v6314_v53 = vld [vmem:[#allocation9 + $0xaf8] sm:$0xff] }
 0x2fd   :  { %3220 = vmatprep.subr.bf16.mxu1 %v5202_v55  ;;  %3263 = vmatprep.subr.bf16.mxu0 %v5204_v56  ;;  %v6316_v54 = vld [vmem:[#allocation9 + $0xbb8] sm:$0xff]  ;;  %v6320_v55 = vrot.slane %v6283_v43, %v6286_v44  ;;  %v5441_v56 = vcombine.low %v6272_v37, %v6277_v39  ;;  %v6394_v37 = vld [vmem:[#allocation9 + $0x5c0] sm:$0xff]  ;;  %v6396_v39 = vld [vmem:[#allocation9 + $0x508] sm:$0xff] }
 0x2fe   :  { %v9004_v22 = vcombine.low %v6314_v53, %v6316_v54 }
 0x2ff   :  { %3167 = vmatmul.mubr.bf16.vlgmr.msra.gmra.mrb[24].mxu1 %v6234_v24  ;;  %3210 = vmatmul.mubr.bf16.vlgmr.msra.gmra.mrb[28].mxu0 %v6234_v24 }
 0x300   :  { %3221 = vmatpush1.bf16.msra.mxu1 %v5201_v61  ;;  %3264 = vmatpush1.bf16.msra.mxu0 %v5203_v62  ;;  %v6334_v61 = vld [vmem:[#allocation9 + $0x88] sm:$0xff]  ;;  %v6338_v62 = vrot.slane %v6283_v43, %v6292_v28 }
 0x301   :  { %3222 = vmatprep.subr.bf16.mxu1 %v5250_v63  ;;  %3265 = vmatprep.subr.bf16.mxu0 %v5252_v0  ;;  %v5489_v63 = vcombine.low %v6294_v29, %v6296_v31  ;;  %v5490_v0 = vcombine.high %v6294_v29, %v6296_v31  ;;  %v6408_v31 = vld [vmem:[#allocation9 + $0x5c8] sm:$0xff]  ;;  %v6430_v29 = vsub.s32 6, %v6270_v30 }
 0x302   :  { %3252 = vmatprep.mubr.bf16.mxu1 %v8720_v9  ;;  %3295 = vmatprep.mubr.bf16.mxu0 %v8720_v9  ;;  %v6427_v9 = vsub.s32 4, %v6270_v30 }
 0x304   :  { %3223 = vmatpush1.bf16.msra.mxu1 %v5249_v5  ;;  %3266 = vmatpush1.bf16.msra.mxu0 %v5251_v6  ;;  %v5492_v5 = vcombine.high %v6302_v47, %v6304_v49  ;;  %v5538_v6 = vcombine.high %v6306_v50, %v6312_v52 }
 0x305   :  { %3224 = vmatprep.subr.bf16.mxu1 %v5298_v7  ;;  %3267 = vmatprep.subr.bf16.mxu0 %v5300_v8  ;;  %v6356_v7 = vld [vmem:[#allocation9 + $0x208] sm:$0xff] }
 0x306   :  { %v6358_v8 = vld [vmem:[#allocation9 + $0x2c8] sm:$0xff] }
 0x308   :  { %3225 = vmatpush1.bf16.msra.mxu1 %v5297_v15  ;;  %3268 = vmatpush1.bf16.msra.mxu0 %v5299_v16  ;;  %v5540_v15 = vcombine.high %v6314_v53, %v6316_v54  ;;  %v6454_v16 = vld [vmem:[#allocation9 + $0x808] sm:$0xff]  ;;  %v6538_v53 = vld [vmem:[#allocation9 + $0x98] sm:$0xff] }
 0x309   :  { %3226 = vmatprep.subr.bf16.mxu1 %v5346_v17  ;;  %3269 = vmatprep.subr.bf16.mxu0 %v5348_v18  ;;  %v6374_v17 = vld [vmem:[#allocation9 + $0x440] sm:$0xff]  ;;  %v6376_v18 = vld [vmem:[#allocation9 + $0x388] sm:$0xff]  ;;  %v6540_v54 = vld [vmem:[#allocation9 + $0x158] sm:$0xff] }
 0x30a   :  { %9009 = vst [vmem:[#allocation36_spill] sm:$0xff] %v6540_v54  ;;  %v9030_v54 = vcombine.low %v6346_v2, %v6348_v3 }
 0x30c   :  { %3227 = vmatpush1.bf16.msra.mxu1 %v5345_v33  ;;  %3270 = vmatpush1.bf16.msra.mxu0 %v5347_v34  ;;  %v6452_v34 = vld [vmem:[#allocation9 + $0x8c0] sm:$0xff]  ;;  %v6478_v33 = vrot.slane %v6283_v43, %v6430_v29 }
 0x30d   :  { %3228 = vmatprep.subr.bf16.mxu1 %v5394_v35  ;;  %3271 = vmatprep.subr.bf16.mxu0 %v5396_v36  ;;  %v6392_v36 = vld [vmem:[#allocation9 + $0x500] sm:$0xff] }
 0x30e   :  { %v6442_v35 = vld [vmem:[#allocation9 + $0x800] sm:$0xff]  ;;  %8996 = vst [vmem:[#allocation27_spill] sm:$0xff] %v6478_v33  ;;  %v6508_v33 = vld [vmem:[#allocation9 + $0xbc8] sm:$0xff] }
 0x30f   :  { %9001 = vst [vmem:[#allocation32_spill] sm:$0xff] %v6508_v33  ;;  %v6580_v33 = vld [vmem:[#allocation9 + $0x450] sm:$0xff] }
 0x310   :  { %3229 = vmatpush1.bf16.msra.mxu1 %v5393_v26  ;;  %3272 = vmatpush1.bf16.msra.mxu0 %v5395_v27  ;;  %v6422_v27 = vld [vmem:[#allocation9 + $0x688] sm:$0xff]  ;;  %9018 = vst [vmem:[#allocation45_spill] sm:$0xff] %v6580_v33 }
 0x311   :  { %3230 = vmatprep.subr.bf16.mxu1 %v5442_v32  ;;  %3273 = vmatprep.subr.bf16.mxu0 %v5444_v46  ;;  %v6410_v32 = vld [vmem:[#allocation9 + $0x680] sm:$0xff]  ;;  %v6424_v26 = vld [vmem:[#allocation9 + $0x748] sm:$0xff] }
 0x312   :  { %v6362_v11 = vpop.f32.mrb[0].mxu1  ;;  %v6364_v12 = vpop.f32.mrb[4].mxu0  ;;  %v6412_v46 = vld [vmem:[#allocation9 + $0x740] sm:$0xff]  ;;  %v6660_v33 = vld [vmem:[#allocation10 + $0x8] sm:$0xff] }
 0x313   :  { %v6380_v20 = vpop.f32.mrb[1].mxu1  ;;  %v6382_v21 = vpop.f32.mrb[5].mxu0 }
 0x314   :  { %3231 = vmatpush1.bf16.msra.mxu1 %v5441_v56  ;;  %3274 = vmatpush1.bf16.msra.mxu0 %v5443_v57  ;;  %v6398_v40 = vpop.f32.mrb[2].mxu1  ;;  %v6400_v41 = vpop.f32.mrb[6].mxu0  ;;  %v6437_v56 = vsub.s32 5, %v6270_v30  ;;  %v6440_v57 = vsub.s32 7, %v6270_v30  ;;  %v6456_v30 = vld [vmem:[#allocation9 + $0x8c8] sm:$0xff] }
 0x315   :  { %v6414_v47 = vpop.f32.mrb[3].mxu1  ;;  %v6416_v49 = vpop.f32.mrb[7].mxu0  ;;  %3232 = vmatprep.subr.bf16.mxu1 %v5490_v0  ;;  %3275 = vmatprep.subr.bf16.mxu0 %v5492_v5  ;;  %v6466_v5 = vld [vmem:[#allocation9 + $0xa40] sm:$0xff]  ;;  %v6480_v0 = vld [vmem:[#allocation9 + $0x988] sm:$0xff] }
 0x316   :  { %8994 = vst [vmem:[#allocation25_spill] sm:$0xff] %v6440_v57  ;;  %8997 = vst [vmem:[#allocation28_spill] sm:$0xff] %v6480_v0  ;;  %v6486_v48 = vrot.slane %v6283_v43, %v6437_v56  ;;  %v6562_v0 = vld [vmem:[#allocation9 + $0x2d8] sm:$0xff] }
 0x317   :  { %9015 = vst [vmem:[#allocation42_spill] sm:$0xff] %v6562_v0  ;;  %v6643_v0 = vld [vmem:[#allocation9 + $0x698] sm:$0xff] }
 0x318   :  { %3233 = vmatpush1.bf16.msra.mxu1 %v5489_v63  ;;  %3276 = vmatpush1.bf16.msra.mxu0 %v5491_v4  ;;  %v6474_v4 = vrot.slane %v6283_v43, %v6427_v9  ;;  %8999 = vst [vmem:[#allocation30_spill] sm:$0xff] %v6486_v48  ;;  %v9003_v63 = vcombine.low %v6306_v50, %v6312_v52  ;;  %v6578_v48 = vld [vmem:[#allocation9 + $0x390] sm:$0xff]  ;;  %v6616_v52 = vld [vmem:[#allocation9 + $0x518] sm:$0xff]  ;;  %9028 = vst [vmem:[#allocation50_spill] sm:$0xff] %v6643_v0 }
 0x319   :  { %3234 = vmatprep.subr.bf16.mxu1 %v5538_v6  ;;  %3277 = vmatprep.subr.bf16.mxu0 %v5540_v15  ;;  %v6490_v6 = vrot.slane %v6283_v43, %v6440_v57  ;;  %v6512_v15 = vrot.slane %v6468_v13, %v6275_v38  ;;  %v6526_v57 = vld [vmem:[#allocation9 + $0x90] sm:$0xff]  ;;  %v9007_v50 = vcombine.high %v6330_v59, %v6332_v60  ;;  %v6720_v0 = vld [vmem:[#allocation9 + $0xa58] sm:$0xff] }
 0x31a   :  { %8995 = vst [vmem:[#allocation26_spill] sm:$0xff] %v6474_v4  ;;  %9005 = vst [vmem:[#allocation34_spill] sm:$0xff] %v6526_v57  ;;  %v6546_v43 = vrot.slane %v6468_v13, %v6286_v44  ;;  %v6558_v4 = vld [vmem:[#allocation9 + $0x2d0] sm:$0xff]  ;;  %v6598_v57 = vld [vmem:[#allocation9 + $0x458] sm:$0xff] }
 0x31b   :  { %9000 = vst [vmem:[#allocation31_spill] sm:$0xff] %v6490_v6  ;;  %v6506_v6 = vld [vmem:[#allocation9 + $0xb08] sm:$0xff]  ;;  %9002 = vst [vmem:[#allocation33_spill] sm:$0xff] %v6512_v15  ;;  %v6528_v15 = vld [vmem:[#allocation9 + $0x150] sm:$0xff] }
 0x31c   :  { %3235 = vmatpush1.bf16.msra.mxu1 %v9003_v63  ;;  %3278 = vmatpush1.bf16.msra.mxu0 %v9004_v22  ;;  %9006 = vst [vmem:[#allocation35_spill] sm:$0xff] %v6528_v15  ;;  %v9008_v22 = vcombine.high %v6334_v61, %v6344_v1  ;;  %v6542_v63 = vld [vmem:[#allocation9 + $0x210] sm:$0xff]  ;;  %9011 = vst [vmem:[#allocation38_spill] sm:$0xff] %v6546_v43  ;;  %v6566_v43 = vrot.slane %v6468_v13, %v6292_v28  ;;  %v6596_v15 = vld [vmem:[#allocation9 + $0x398] sm:$0xff] }
 0x31d   :  { %3306 = vmatprep.subr.bf16.mxu1 %v9007_v50  ;;  %9010 = vst [vmem:[#allocation37_spill] sm:$0xff] %v6542_v63  ;;  %v6550_v50 = vrot.slane %v6468_v13, %v6289_v45  ;;  %9013 = vst [vmem:[#allocation40_spill] sm:$0xff] %v6558_v4  ;;  %v6632_v4 = vld [vmem:[#allocation9 + $0x750] sm:$0xff] }
 0x31e   :  { %3349 = vmatprep.subr.bf16.mxu0 %v9008_v22  ;;  %9016 = vst [vmem:[#allocation43_spill] sm:$0xff] %v6566_v43  ;;  %v6584_v43 = vadd.f32 %v6320_v55, %v6364_v12  ;;  %v9022_v12 = vcombine.high %v6346_v2, %v6348_v3  ;;  %v6630_v22 = vld [vmem:[#allocation9 + $0x690] sm:$0xff]  ;;  %v9033_v2 = vcombine.high %v6376_v18, %v6378_v19  ;;  %9042 = vst [vmem:[#allocation58_spill] sm:$0xff] %v6720_v0 }
 0x31f   :  { %9012 = vst [vmem:[#allocation39_spill] sm:$0xff] %v6550_v50  ;;  %v6570_v50 = vadd.f32 %v6310_v51, %v6362_v11  ;;  %3253 = vmatmul.mubr.bf16.vlgmr.msra.gmra.mrb[28].mxu1 %v6234_v24  ;;  %3296 = vmatmul.mubr.bf16.vlgmr.msra.gmra.mrb[32].mxu0 %v6234_v24  ;;  %v9020_v11 = vcombine.low %v6330_v59, %v6332_v60  ;;  %v6628_v60 = vld [vmem:[#allocation9 + $0x5d8] sm:$0xff] }
 0x320   :  { %9019 = vst [vmem:[#allocation46_spill] sm:$0xff] %v6584_v43  ;;  %v9021_v24 = vcombine.low %v6334_v61, %v6344_v1  ;;  %v9023_v59 = vcombine.high %v6356_v7, %v6358_v8  ;;  %v6612_v1 = vld [vmem:[#allocation9 + $0x510] sm:$0xff]  ;;  %9026 = vst [vmem:[#allocation48_spill] sm:$0xff] %v6628_v60  ;;  %v6645_v61 = vld [vmem:[#allocation9 + $0x758] sm:$0xff]  ;;  %v3800_v25 = vmin.f32 %v6584_v43, 20.0  ;;  %v9032_v43 = vcombine.high %v6360_v10, %v6374_v17 }
 0x321   :  { %9017 = vst [vmem:[#allocation44_spill] sm:$0xff] %v6570_v50  ;;  %3307 = vmatpush1.bf16.msra.mxu1 %v9020_v11  ;;  %v6614_v11 = vld [vmem:[#allocation9 + $0x5d0] sm:$0xff]  ;;  %v3798_v63 = vmin.f32 %v6570_v50, 20.0  ;;  %9029 = vst [vmem:[#allocation51_spill] sm:$0xff] %v6645_v61  ;;  %v6685_v50 = vld [vmem:[#allocation9 + $0x818] sm:$0xff]  ;;  %v6692_v60 = vrot.slane %v6660_v33, %v6275_v38  ;;  %v9037_v61 = vcombine.low %v6360_v10, %v6374_v17 }
 0x322   :  { %3350 = vmatpush1.bf16.msra.mxu0 %v9021_v24  ;;  %3308 = vmatprep.subr.bf16.mxu1 %v9022_v12  ;;  %v6620_v12 = vadd.f32 %v6328_v58, %v6380_v20  ;;  %v6637_v20 = vadd.f32 %v6338_v62, %v6382_v21  ;;  %v9031_v21 = vcombine.low %v6356_v7, %v6358_v8  ;;  %v6687_v7 = vld [vmem:[#allocation9 + $0x8d8] sm:$0xff]  ;;  %v3834_v3 = vmul.f32 1.442695, %v3800_v25 }
 0x323   :  { %3351 = vmatprep.subr.bf16.mxu0 %v9023_v59  ;;  %v9025_v59 = vmov 0   ;;  %9034 = vst [vmem:[#allocation52_spill] sm:$0xff] %v6687_v7  ;;  %v3830_v8 = vmul.f32 1.442695, %v3798_v63  ;;  %9035 = vst [vmem:[#allocation53_spill] sm:$0xff] %v6692_v60  ;;  %v9038_v63 = vcombine.low %v6376_v18, %v6378_v19  ;;  %v6710_v60 = vrot.slane %v6660_v33, %v6289_v45  ;;  %v6718_v25 = vld [vmem:[#allocation9 + $0x998] sm:$0xff] }
 0x324   :  { %9024 = vst [vmem:[#allocation47_spill] sm:$0xff] %v6620_v12  ;;  %3338 = vmatprep.mubr.bf16.mxu1 %v9025_v59  ;;  %3381 = vmatprep.mubr.bf16.mxu0 %v9025_v59  ;;  %9027 = vst [vmem:[#allocation49_spill] sm:$0xff] %v6637_v20  ;;  %v3799_v24 = vmin.f32 %v6620_v12, 20.0  ;;  %v3801_v59 = vmin.f32 %v6637_v20, 20.0  ;;  %v6698_v12 = vld [vmem:[#allocation9 + $0x990] sm:$0xff]  ;;  %v9043_v10 = vcombine.high %v6392_v36, %v6394_v37  ;;  %v6748_v19 = vld [vmem:[#allocation9 + $0xbd8] sm:$0xff] }
 0x325   :  { %3309 = vmatpush1.bf16.msra.mxu1 %v9030_v54  ;;  %v6674_v54 = vld [vmem:[#allocation9 + $0x810] sm:$0xff]  ;;  %9039 = vst [vmem:[#allocation55_spill] sm:$0xff] %v6710_v60  ;;  %9041 = vst [vmem:[#allocation57_spill] sm:$0xff] %v6718_v25  ;;  %v9044_v17 = vcombine.high %v6396_v39, %v6408_v31  ;;  %v6746_v60 = vld [vmem:[#allocation9 + $0xb18] sm:$0xff]  ;;  %5636 = vpow2.f32 %v3830_v8  ;;  %v6752_v7 = vadd.f32 %v6320_v55, %v6400_v41 }
 0x326   :  { %3352 = vmatpush1.bf16.msra.mxu0 %v9031_v21  ;;  %3310 = vmatprep.subr.bf16.mxu1 %v9032_v43  ;;  %v6676_v21 = vld [vmem:[#allocation9 + $0x8d0] sm:$0xff]  ;;  %v6696_v43 = vrot.slane %v6660_v33, %v6286_v44  ;;  %9047 = vst [vmem:[#allocation61_spill] sm:$0xff] %v6746_v60  ;;  %9048 = vst [vmem:[#allocation62_spill] sm:$0xff] %v6748_v19  ;;  %5638 = vpow2.f32 %v3834_v3  ;;  %v9052_v8 = vcombine.low %v6396_v39, %v6408_v31  ;;  %v6774_v3 = vld [vmem:[#allocation9 + $0x168] sm:$0xff] }
 0x327   :  { %3353 = vmatprep.subr.bf16.mxu0 %v9033_v2  ;;  %v6700_v2 = vld [vmem:[#allocation9 + $0xa50] sm:$0xff]  ;;  %9054 = vst [vmem:[#allocation66_spill] sm:$0xff] %v6774_v3  ;;  %v9056_v39 = vcombine.high %v6422_v27, %v6424_v26  ;;  %v6792_v41 = vld [vmem:[#allocation9 + $0x2e0] sm:$0xff]  ;;  %v6803_v31 = vld [vmem:[#allocation9 + $0x2e8] sm:$0xff]  ;;  %vm3784_vm9 = vcmp.gt.f32.partialorder %v6752_v7, 20.0 }
 0x328   :  { %9036 = vst [vmem:[#allocation54_spill] sm:$0xff] %v6696_v43  ;;  %v6714_v43 = vrot.slane %v6660_v33, %v6292_v28  ;;  %v6736_v20 = vld [vmem:[#allocation9 + $0xbd0] sm:$0xff]  ;;  %9058 = vst [vmem:[#allocation68_spill] sm:$0xff] %v6792_v41  ;;  %v6810_v55 = vld [vmem:[#allocation9 + $0x3a0] sm:$0xff] }
 0x329   :  { %3311 = vmatpush1.bf16.msra.mxu1 %v9037_v61  ;;  %9046 = vst [vmem:[#allocation60_spill] sm:$0xff] %v6736_v20  ;;  %v3836_v61 = vmul.f32 1.442695, %v3801_v59  ;;  %9061 = vst [vmem:[#allocation71_spill] sm:$0xff] %v6803_v31  ;;  %v6826_v18 = vld [vmem:[#allocation9 + $0x3a8] sm:$0xff]  ;;  %v6862_v31 = vrot.slane %v6468_v13, %v6437_v56  ;;  %v6874_v19 = vld [vmem:[#allocation9 + $0x760] sm:$0xff]  ;;  %v9078_v20 = vcombine.low %v6442_v35, %v6452_v34 }
 0x32a   :  { %3354 = vmatpush1.bf16.msra.mxu0 %v9038_v63  ;;  %9040 = vst [vmem:[#allocation56_spill] sm:$0xff] %v6714_v43  ;;  %3312 = vmatprep.subr.bf16.mxu1 %v9043_v10  ;;  %v6734_v63 = vld [vmem:[#allocation9 + $0xb10] sm:$0xff]  ;;  %v3832_v43 = vmul.f32 1.442695, %v3799_v24  ;;  %v6740_v10 = vadd.f32 %v6310_v51, %v6398_v40  ;;  %v6756_v40 = vld [vmem:[#allocation9 + $0xa0] sm:$0xff]  ;;  %v6772_v51 = vld [vmem:[#allocation9 + $0xa8] sm:$0xff] }
 0x32b   :  { %3355 = vmatprep.subr.bf16.mxu0 %v9044_v17  ;;  %9045 = vst [vmem:[#allocation59_spill] sm:$0xff] %v6734_v63  ;;  %9049 = vst [vmem:[#allocation63_spill] sm:$0xff] %v6756_v40  ;;  %v6758_v24 = vld [vmem:[#allocation9 + $0x160] sm:$0xff]  ;;  %v9051_v17 = vcombine.low %v6392_v36, %v6394_v37  ;;  %v6778_v36 = vadd.f32 %v6328_v58, %v6414_v47  ;;  %v9055_v37 = vcombine.high %v6410_v32, %v6412_v46  ;;  %v6845_v59 = vld [vmem:[#allocation9 + $0x528] sm:$0xff] }
 0x32c   :  { %9050 = vst [vmem:[#allocation64_spill] sm:$0xff] %v6758_v24  ;;  %9053 = vst [vmem:[#allocation65_spill] sm:$0xff] %v6772_v51  ;;  %5640 = vpow2.f32 %v3832_v43  ;;  %v3814_v58 = vmin.f32 %v6740_v10, 20.0  ;;  %v6797_v47 = vadd.f32 %v6338_v62, %v6416_v49  ;;  %v9063_v62 = vcombine.low %v6410_v32, %v6412_v46  ;;  %v6824_v43 = vld [vmem:[#allocation9 + $0x460] sm:$0xff]  ;;  %v6828_v24 = vld [vmem:[#allocation9 + $0x468] sm:$0xff] }
 0x32d   :  { %3313 = vmatpush1.bf16.msra.mxu1 %v9051_v17  ;;  %5642 = vpow2.f32 %v3836_v61  ;;  %v3816_v17 = vmin.f32 %v6752_v7, 20.0  ;;  %9062 = vst [vmem:[#allocation72_spill] sm:$0xff] %v6810_v55  ;;  %v9064_v49 = vcombine.low %v6422_v27, %v6424_v26  ;;  %9065 = vst [vmem:[#allocation73_spill] sm:$0xff] %v6824_v43  ;;  %v3815_v32 = vmin.f32 %v6778_v36, 20.0  ;;  %v6854_v46 = vld [vmem:[#allocation9 + $0x5e8] sm:$0xff]  ;;  %v6872_v40 = vld [vmem:[#allocation9 + $0x6a0] sm:$0xff] }
 0x32e   :  { %3356 = vmatpush1.bf16.msra.mxu0 %v9052_v8  ;;  %3314 = vmatprep.subr.bf16.mxu1 %v9055_v37  ;;  %v6790_v8 = vld [vmem:[#allocation9 + $0x220] sm:$0xff]  ;;  %9059 = vst [vmem:[#allocation69_spill] sm:$0xff] %v6797_v47  ;;  %9066 = vst [vmem:[#allocation74_spill] sm:$0xff] %v6826_v18  ;;  %v9068_v26 = vcombine.high %v6442_v35, %v6452_v34  ;;  %v9069_v27 = vcombine.high %v6454_v16, %v6456_v30  ;;  %v3817_v41 = vmin.f32 %v6797_v47, 20.0  ;;  %v6898_v55 = vld [vmem:[#allocation9 + $0x768] sm:$0xff] }
 0x32f   :  { %3357 = vmatprep.subr.bf16.mxu0 %v9056_v39  ;;  %9057 = vst [vmem:[#allocation67_spill] sm:$0xff] %v6790_v8  ;;  %v6801_v39 = vld [vmem:[#allocation9 + $0x228] sm:$0xff]  ;;  %9067 = vst [vmem:[#allocation75_spill] sm:$0xff] %v6828_v24  ;;  %v6843_v37 = vld [vmem:[#allocation9 + $0x5e0] sm:$0xff]  ;;  %v6849_v61 = vrot.slane %v6468_v13, %v6427_v9  ;;  %v5637_v63 = vpop.eup %5636  ;;  %v3864_v34 = vmul.f32 1.442695, %v3815_v32  ;;  %v6945_v32 = vrot.slane %v6660_v33, %v6430_v29 }
 0x330   :  { %9060 = vst [vmem:[#allocation70_spill] sm:$0xff] %v6801_v39  ;;  %9071 = vst [vmem:[#allocation77_spill] sm:$0xff] %v6854_v46  ;;  %v3866_v39 = vmul.f32 1.442695, %v3816_v17  ;;  %v6916_v24 = vld [vmem:[#allocation9 + $0x820] sm:$0xff]  ;;  %v5639_v47 = vpop.eup %5638  ;;  %v9088_v0 = vld [vmem:[#allocation26_spill] sm:$0xff] }
 0x331   :  { %3315 = vmatpush1.bf16.msra.mxu1 %v9063_v62  ;;  %9070 = vst [vmem:[#allocation76_spill] sm:$0xff] %v6849_v61  ;;  %v6858_v62 = vrot.slane %v6468_v13, %v6430_v29  ;;  %9073 = vst [vmem:[#allocation79_spill] sm:$0xff] %v6862_v31  ;;  %v6918_v18 = vld [vmem:[#allocation9 + $0x8e0] sm:$0xff]  ;;  %v6931_v46 = vld [vmem:[#allocation9 + $0x828] sm:$0xff]  ;;  %vm3782_vm8 = vcmp.gt.f32.partialorder %v6740_v10, 20.0  ;;  %vm3783_vm10 = vcmp.gt.f32.partialorder %v6778_v36, 20.0 }
 0x332   :  { %3358 = vmatpush1.bf16.msra.mxu0 %v9064_v49  ;;  %3316 = vmatprep.subr.bf16.mxu1 %v9068_v26  ;;  %v6841_v49 = vld [vmem:[#allocation9 + $0x520] sm:$0xff]  ;;  %v3862_v26 = vmul.f32 1.442695, %v3814_v58  ;;  %v6852_v8 = vpop.f32.mrb[8].mxu0  ;;  %9074 = vst [vmem:[#allocation80_spill] sm:$0xff] %v6872_v40  ;;  %9075 = vst [vmem:[#allocation81_spill] sm:$0xff] %v6874_v19  ;;  %v9079_v58 = vcombine.low %v6454_v16, %v6456_v30  ;;  %v9082_v16 = vcombine.high %v6464_v14, %v6466_v5 }
 0x333   :  { %3359 = vmatprep.subr.bf16.mxu0 %v9069_v27  ;;  %v2738_v27 = vpop.f32.mrb[4].mxu1  ;;  %9072 = vst [vmem:[#allocation78_spill] sm:$0xff] %v6858_v62  ;;  %v6866_v61 = vpop.f32.mrb[9].mxu0  ;;  %v9076_v62 = vld [vmem:[#allocation25_spill] sm:$0xff]  ;;  %9081 = vst [vmem:[#allocation83_spill] sm:$0xff] %v6898_v55  ;;  %v9083_v30 = vld [vmem:[#allocation28_spill] sm:$0xff] }
 0x334   :  { %v6864_v3 = vpop.f32.mrb[5].mxu1  ;;  %v6878_v60 = vrot.slane %v6468_v13, %v9076_v62  ;;  %v6882_v17 = vpop.f32.mrb[10].mxu0  ;;  %9086 = vst [vmem:[#allocation28_spill] sm:$0xff] %v6916_v24  ;;  %5644 = vpow2.f32 %v3862_v26  ;;  %v6921_v25 = vadd.f32 %v9088_v0, %v2738_v27  ;;  %9089 = vst [vmem:[#allocation26_spill] sm:$0xff] %v6931_v46  ;;  %v9090_v27 = vcombine.low %v6464_v14, %v6466_v5  ;;  %v6951_v43 = vld [vmem:[#allocation9 + $0x9a0] sm:$0xff]  ;;  %v6990_v40 = vld [vmem:[#allocation9 + $0xb28] sm:$0xff] }
 0x335   :  { %v6880_v31 = vpop.f32.mrb[6].mxu1  ;;  %3317 = vmatpush1.bf16.msra.mxu1 %v9078_v20  ;;  %v6902_v20 = vpop.f32.mrb[11].mxu0  ;;  %5646 = vpow2.f32 %v3866_v39  ;;  %9093 = vst [vmem:[#allocation85_spill] sm:$0xff] %v6945_v32  ;;  %9095 = vst [vmem:[#allocation87_spill] sm:$0xff] %v6951_v43  ;;  %v6953_v14 = vld [vmem:[#allocation9 + $0xa60] sm:$0xff]  ;;  %v6963_v13 = vrot.slane %v6660_v33, %v6437_v56  ;;  %v6967_v32 = vrot.slane %v6660_v33, %v9076_v62  ;;  %v7033_v46 = vld [vmem:[#allocation9 + $0x2f0] sm:$0xff] }
 0x336   :  { %9077 = vst [vmem:[#allocation25_spill] sm:$0xff] %v6878_v60  ;;  %3360 = vmatpush1.bf16.msra.mxu0 %v9079_v58  ;;  %v6896_v60 = vld [vmem:[#allocation9 + $0x6a8] sm:$0xff]  ;;  %v6900_v35 = vpop.f32.mrb[7].mxu1  ;;  %3318 = vmatprep.subr.bf16.mxu1 %v9082_v16  ;;  %v3868_v16 = vmul.f32 1.442695, %v3817_v41  ;;  %v5641_v26 = vpop.eup %5640  ;;  %v3894_v41 = vadd.f32 1.0, %v5637_v63  ;;  %5648 = vpow2.f32 %v3864_v34 }
 0x337   :  { %9080 = vst [vmem:[#allocation82_spill] sm:$0xff] %v6896_v60  ;;  %v9084_v58 = vld [vmem:[#allocation29_spill] sm:$0xff]  ;;  %9096 = vst [vmem:[#allocation88_spill] sm:$0xff] %v6953_v14  ;;  %v5643_v5 = vpop.eup %5642  ;;  %v3802_v34 = vmin.f32 %v6921_v25, 20.0  ;;  %v6980_v60 = vld [vmem:[#allocation9 + $0xb20] sm:$0xff]  ;;  %vm3770_vm12 = vcmp.gt.f32.partialorder %v6921_v25, 20.0 }
 0x338   :  { %v9085_v51 = vcombine.high %v9083_v30, %v9084_v58  ;;  %9087 = vst [vmem:[#allocation29_spill] sm:$0xff] %v6918_v18  ;;  %v9091_v39 = vcombine.low %v9083_v30, %v9084_v58  ;;  %v6949_v63 = vld [vmem:[#allocation9 + $0x8e8] sm:$0xff]  ;;  %v3896_v30 = vadd.f32 1.0, %v5639_v47  ;;  %v9097_v58 = vcombine.high %v6496_v42, %v6498_v23  ;;  %9101 = vst [vmem:[#allocation89_spill] sm:$0xff] %v6967_v32  ;;  %v7022_v32 = vld [vmem:[#allocation9 + $0xb8] sm:$0xff] }
 0x339   :  { %3319 = vmatpush1.bf16.msra.mxu1 %v9090_v27  ;;  %9094 = vst [vmem:[#allocation86_spill] sm:$0xff] %v6949_v63  ;;  %v9098_v27 = vld [vmem:[#allocation32_spill] sm:$0xff]  ;;  %5650 = vpow2.f32 %v3868_v16  ;;  %9107 = vst [vmem:[#allocation93_spill] sm:$0xff] %v6990_v40  ;;  %v9109_v18 = vcombine.low %v6496_v42, %v6498_v23  ;;  %v7004_v16 = vld [vmem:[#allocation9 + $0xb0] sm:$0xff]  ;;  %v9137_v40 = vmov 0  }
 0x33a   :  { %3361 = vmatprep.subr.bf16.mxu0 %v9085_v51  ;;  %v6941_v51 = vrot.slane %v6660_v33, %v6427_v9  ;;  %3320 = vmatprep.subr.bf16.mxu1 %v9097_v58  ;;  %9100 = vst [vmem:[#allocation32_spill] sm:$0xff] %v6963_v13  ;;  %v6971_v47 = vld [vmem:[#allocation9 + $0xa68] sm:$0xff]  ;;  %v9104_v58 = vld [vmem:[#allocation27_spill] sm:$0xff]  ;;  %v3895_v33 = vadd.f32 1.0, %v5641_v26  ;;  %5652 = vlog2.f32 %v3894_v41  ;;  %v9110_v26 = vcombine.low %v6506_v6, %v9098_v27  ;;  %v7006_v63 = vld [vmem:[#allocation9 + $0x170] sm:$0xff] }
 0x33b   :  { %3362 = vmatpush1.bf16.msra.mxu0 %v9091_v39  ;;  %v9099_v39 = vcombine.high %v6506_v6, %v9098_v27  ;;  %9103 = vst [vmem:[#allocation91_spill] sm:$0xff] %v6971_v47  ;;  %v6976_v55 = vadd.f32 %v9104_v58, %v6852_v8  ;;  %9105 = vst [vmem:[#allocation27_spill] sm:$0xff] %v6980_v60  ;;  %v6982_v13 = vld [vmem:[#allocation9 + $0xbe0] sm:$0xff]  ;;  %v6992_v8 = vld [vmem:[#allocation9 + $0xbe8] sm:$0xff]  ;;  %5654 = vlog2.f32 %v3896_v30 }
 0x33c   :  { %9092 = vst [vmem:[#allocation84_spill] sm:$0xff] %v6941_v51  ;;  %v6969_v51 = vld [vmem:[#allocation9 + $0x9a8] sm:$0xff]  ;;  %9106 = vst [vmem:[#allocation92_spill] sm:$0xff] %v6982_v13  ;;  %v9113_v41 = vld [vmem:[#allocation30_spill] sm:$0xff]  ;;  %5656 = vlog2.f32 %v3895_v33 }
 0x33d   :  { %3363 = vmatprep.subr.bf16.mxu0 %v9099_v39  ;;  %9102 = vst [vmem:[#allocation90_spill] sm:$0xff] %v6969_v51  ;;  %9108 = vst [vmem:[#allocation94_spill] sm:$0xff] %v6992_v8  ;;  %v3897_v39 = vadd.f32 1.0, %v5643_v5  ;;  %3321 = vmatpush1.bf16.msra.mxu1 %v9109_v18  ;;  %v7010_v5 = vadd.f32 %v9113_v41, %v6864_v3  ;;  %v9114_v42 = vld [vmem:[#allocation34_spill] sm:$0xff]  ;;  %v9115_v23 = vld [vmem:[#allocation35_spill] sm:$0xff]  ;;  %v3804_v14 = vmin.f32 %v6976_v55, 20.0 }
 0x33e   :  { %9111 = vst [vmem:[#allocation95_spill] sm:$0xff] %v7004_v16  ;;  %9112 = vst [vmem:[#allocation96_spill] sm:$0xff] %v7006_v63  ;;  %v9116_v18 = vcombine.high %v9114_v42, %v9115_v23  ;;  %v9117_v6 = vld [vmem:[#allocation36_spill] sm:$0xff]  ;;  %v7024_v30 = vld [vmem:[#allocation9 + $0x178] sm:$0xff]  ;;  %v3838_v3 = vmul.f32 1.442695, %v3802_v34  ;;  %v5645_v60 = vpop.eup %5644  ;;  %v9127_v51 = vcombine.low %v9114_v42, %v9115_v23 }
 0x33f   :  { %3364 = vmatpush1.bf16.msra.mxu0 %v9110_v26  ;;  %v9118_v27 = vcombine.high %v6538_v53, %v9117_v6  ;;  %9119 = vst [vmem:[#allocation30_spill] sm:$0xff] %v7022_v32  ;;  %9120 = vst [vmem:[#allocation34_spill] sm:$0xff] %v7024_v30  ;;  %v9123_v26 = vld [vmem:[#allocation24_spill] sm:$0xff]  ;;  %v7043_v13 = vld [vmem:[#allocation9 + $0x238] sm:$0xff]  ;;  %5658 = vlog2.f32 %v3897_v39  ;;  %v9128_v19 = vcombine.low %v6538_v53, %v9117_v6  ;;  %v5647_v16 = vpop.eup %5646  ;;  %v3803_v42 = vmin.f32 %v7010_v5, 20.0 }
 0x340   :  { %3392 = vmatprep.subr.bf16.mxu1 %v9116_v18  ;;  %9122 = vst [vmem:[#allocation36_spill] sm:$0xff] %v7033_v46  ;;  %3339 = vmatmul.mubr.bf16.vlgmr.msra.gmra.mrb[32].mxu1 %v9123_v26  ;;  %9124 = vst [vmem:[#allocation24_spill] sm:$0xff] %v7043_v13  ;;  %v7045_v43 = vld [vmem:[#allocation9 + $0x2f8] sm:$0xff]  ;;  %v7061_v63 = vld [vmem:[#allocation9 + $0x3b0] sm:$0xff]  ;;  %5660 = vpow2.f32 %v3838_v3  ;;  %v3842_v8 = vmul.f32 1.442695, %v3804_v14 }
 0x341   :  { %3435 = vmatprep.subr.bf16.mxu0 %v9118_v27  ;;  %v7031_v27 = vld [vmem:[#allocation9 + $0x230] sm:$0xff]  ;;  %9125 = vst [vmem:[#allocation97_spill] sm:$0xff] %v7045_v43  ;;  %v9126_v33 = vld [vmem:[#allocation31_spill] sm:$0xff]  ;;  %3393 = vmatpush1.bf16.msra.mxu1 %v9127_v51  ;;  %v7070_v51 = vadd.f32 %v9088_v0, %v6880_v31  ;;  %v3912_v46 = vadd.f32 1.0, %v5647_v16  ;;  %vm3772_vm13 = vcmp.gt.f32.partialorder %v6976_v55, 20.0  ;;  %vm3771_vm14 = vcmp.gt.f32.partialorder %v7010_v5, 20.0 }
 0x342   :  { %9121 = vst [vmem:[#allocation35_spill] sm:$0xff] %v7031_v27  ;;  %3382 = vmatmul.mubr.bf16.vlgmr.msra.gmra.mrb[36].mxu0 %v9123_v26  ;;  %v7049_v47 = vadd.f32 %v9126_v33, %v6866_v61  ;;  %9129 = vst [vmem:[#allocation31_spill] sm:$0xff] %v7061_v63  ;;  %v7063_v39 = vld [vmem:[#allocation9 + $0x470] sm:$0xff]  ;;  %v7065_v61 = vld [vmem:[#allocation12 + $0x8] sm:$0xff]  ;;  %3424 = vmatprep.mubr.bf16.mxu1 %v9137_v40  ;;  %5662 = vpow2.f32 %v3842_v8 }
 0x343   :  { %3436 = vmatpush1.bf16.msra.mxu0 %v9128_v19  ;;  %9130 = vst [vmem:[#allocation98_spill] sm:$0xff] %v7063_v39  ;;  %v9131_v53 = vld [vmem:[#allocation37_spill] sm:$0xff]  ;;  %v9132_v19 = vld [vmem:[#allocation40_spill] sm:$0xff]  ;;  %v9135_v18 = vld [vmem:[#allocation42_spill] sm:$0xff]  ;;  %3467 = vmatprep.mubr.bf16.mxu0 %v9137_v40  ;;  %v7096_v14 = vrot.slane %v7065_v61, %v6275_v38  ;;  %v7100_v3 = vrot.slane %v7065_v61, %v6286_v44 }
 0x344   :  { %v9133_v23 = vcombine.high %v9131_v53, %v9132_v19  ;;  %v9134_v6 = vld [vmem:[#allocation41_spill] sm:$0xff]  ;;  %v7090_v24 = vld [vmem:[#allocation9 + $0x3b8] sm:$0xff]  ;;  %v3805_v31 = vmin.f32 %v7049_v47, 20.0  ;;  %v7115_v44 = vrot.slane %v7065_v61, %v6289_v45  ;;  %v7119_v16 = vrot.slane %v7065_v61, %v6292_v28 }
 0x345   :  { %v9136_v34 = vcombine.high %v9134_v6, %v9135_v18  ;;  %9138 = vst [vmem:[#allocation37_spill] sm:$0xff] %v7090_v24  ;;  %v7092_v32 = vld [vmem:[#allocation9 + $0x478] sm:$0xff]  ;;  %9140 = vst [vmem:[#allocation41_spill] sm:$0xff] %v7096_v14  ;;  %v9143_v30 = vcombine.low %v9134_v6, %v9135_v18  ;;  %v7109_v43 = vld [vmem:[#allocation9 + $0x530] sm:$0xff]  ;;  %v9151_v6 = vcombine.high %v6596_v15, %v6598_v57  ;;  %vm3773_vm15 = vcmp.gt.f32.partialorder %v7049_v47, 20.0 }
 0x346   :  { %3394 = vmatprep.subr.bf16.mxu1 %v9133_v23  ;;  %v5649_v23 = vpop.eup %5648  ;;  %9139 = vst [vmem:[#allocation40_spill] sm:$0xff] %v7092_v32  ;;  %9141 = vst [vmem:[#allocation42_spill] sm:$0xff] %v7100_v3  ;;  %v7111_v38 = vld [vmem:[#allocation9 + $0x5f0] sm:$0xff]  ;;  %v3840_v3 = vmul.f32 1.442695, %v3803_v42  ;;  %v7136_v42 = vadd.f32 %v9113_v41, %v6900_v35  ;;  %v7144_v45 = vld [vmem:[#allocation9 + $0x538] sm:$0xff]  ;;  %v7150_v35 = vadd.f32 %v9126_v33, %v6902_v20 }
 0x347   :  { %3437 = vmatprep.subr.bf16.mxu0 %v9136_v34  ;;  %v3910_v34 = vadd.f32 1.0, %v5645_v60  ;;  %v5651_v0 = vpop.eup %5650  ;;  %v9142_v60 = vcombine.low %v9131_v53, %v9132_v19  ;;  %9144 = vst [vmem:[#allocation99_spill] sm:$0xff] %v7109_v43  ;;  %9145 = vst [vmem:[#allocation100_spill] sm:$0xff] %v7111_v38  ;;  %v3818_v53 = vmin.f32 %v7070_v51, 20.0  ;;  %v7124_v19 = vadd.f32 %v9104_v58, %v6882_v17  ;;  %v7162_v17 = vld [vmem:[#allocation9 + $0x770] sm:$0xff]  ;;  %v9161_v33 = vld [vmem:[#allocation48_spill] sm:$0xff] }
 0x348   :  { %3438 = vmatpush1.bf16.msra.mxu0 %v9143_v30  ;;  %9146 = vst [vmem:[#allocation101_spill] sm:$0xff] %v7115_v44  ;;  %9147 = vst [vmem:[#allocation102_spill] sm:$0xff] %v7119_v16  ;;  %v9149_v30 = vld [vmem:[#allocation45_spill] sm:$0xff]  ;;  %v5653_v28 = vpop.eup %5652  ;;  %v3844_v8 = vmul.f32 1.442695, %v3805_v31  ;;  %v7179_v16 = vld [vmem:[#allocation9 + $0x6b8] sm:$0xff] }
 0x349   :  { %3395 = vmatpush1.bf16.msra.mxu1 %v9142_v60  ;;  %9148 = vst [vmem:[#allocation103_spill] sm:$0xff] %v7124_v19  ;;  %v9150_v18 = vcombine.high %v6578_v48, %v9149_v30  ;;  %3439 = vmatprep.subr.bf16.mxu0 %v9151_v6  ;;  %v3911_v60 = vadd.f32 1.0, %v5649_v23  ;;  %9152 = vst [vmem:[#allocation45_spill] sm:$0xff] %v7136_v42  ;;  %v5655_v58 = vpop.eup %5654  ;;  %5664 = vlog2.f32 %v3910_v34  ;;  %v7146_v23 = vld [vmem:[#allocation9 + $0x5f8] sm:$0xff]  ;;  %v7160_v6 = vld [vmem:[#allocation9 + $0x6b0] sm:$0xff]  ;;  %v3820_v20 = vmin.f32 %v7124_v19, 20.0 }
 0x34a   :  { %9153 = vst [vmem:[#allocation104_spill] sm:$0xff] %v7144_v45  ;;  %9154 = vst [vmem:[#allocation105_spill] sm:$0xff] %v7146_v23  ;;  %5666 = vlog2.f32 %v3912_v46  ;;  %v9156_v41 = vcombine.low %v6578_v48, %v9149_v30  ;;  %v5657_v46 = vpop.eup %5656  ;;  %v3870_v31 = vmul.f32 1.442695, %v3818_v53  ;;  %v9160_v48 = vcombine.high %v6612_v1, %v6614_v11  ;;  %v9163_v53 = vld [vmem:[#allocation44_spill] sm:$0xff]  ;;  %v9170_v45 = vld [vmem:[#allocation50_spill] sm:$0xff] }
 0x34b   :  { %3396 = vmatprep.subr.bf16.mxu1 %v9150_v18  ;;  %v3913_v18 = vadd.f32 1.0, %v5651_v0  ;;  %9155 = vst [vmem:[#allocation106_spill] sm:$0xff] %v7150_v35  ;;  %v9157_v0 = vcombine.low %v6596_v15, %v6598_v57  ;;  %9158 = vst [vmem:[#allocation107_spill] sm:$0xff] %v7160_v6  ;;  %5668 = vpow2.f32 %v3840_v3  ;;  %v9162_v57 = vcombine.high %v6616_v52, %v9161_v33  ;;  %v5659_v30 = vpop.eup %5658  ;;  %v9171_v38 = vld [vmem:[#allocation51_spill] sm:$0xff]  ;;  %v7272_v32 = vld [vmem:[#allocation9 + $0xb30] sm:$0xff] }
 0x34c   :  { %9159 = vst [vmem:[#allocation108_spill] sm:$0xff] %v7162_v17  ;;  %v3927_v15 = vmul.f32 0.6931472, %v5653_v28  ;;  %5670 = vlog2.f32 %v3911_v60  ;;  %v3931_v3 = vmul.f32 0.6931472, %v5655_v58  ;;  %vm3766_vm4 = vcmp.gt.f32.partialorder %v9163_v53, 20.0  ;;  %v5661_v60 = vpop.eup %5660 }
 0x34d   :  { %3397 = vmatpush1.bf16.msra.mxu1 %v9156_v41  ;;  %3440 = vmatpush1.bf16.msra.mxu0 %v9157_v0  ;;  %v3819_v41 = vmin.f32 %v7136_v42, 20.0  ;;  %5672 = vlog2.f32 %v3913_v18  ;;  %9164 = vst [vmem:[#allocation48_spill] sm:$0xff] %v7179_v16  ;;  %v7181_v28 = vld [vmem:[#allocation9 + $0x778] sm:$0xff]  ;;  %v3821_v0 = vmin.f32 %v7150_v35, 20.0  ;;  %v9167_v58 = vcombine.low %v6612_v1, %v6614_v11 }
 0x34e   :  { %3398 = vmatprep.subr.bf16.mxu1 %v9160_v48  ;;  %3441 = vmatprep.subr.bf16.mxu0 %v9162_v57  ;;  %9165 = vst [vmem:[#allocation44_spill] sm:$0xff] %v7181_v28  ;;  %v9166_v57 = vld [vmem:[#allocation46_spill] sm:$0xff]  ;;  %5674 = vpow2.f32 %v3844_v8  ;;  %v9168_v18 = vcombine.low %v6616_v52, %v9161_v33  ;;  %v3929_v34 = vmul.f32 0.6931472, %v5657_v46  ;;  %v3874_v48 = vmul.f32 1.442695, %v3820_v20 }
 0x34f   :  { %vm3768_vm5 = vcmp.gt.f32.partialorder %v9166_v57, 20.0  ;;  %5676 = vpow2.f32 %v3870_v31  ;;  %v9169_v23 = vcombine.high %v6630_v22, %v6632_v4  ;;  %v9172_v8 = vcombine.high %v9170_v45, %v9171_v38  ;;  %v7204_v52 = vld [vmem:[#allocation9 + $0x8f0] sm:$0xff]  ;;  %v7215_v33 = vld [vmem:[#allocation9 + $0x838] sm:$0xff]  ;;  %v5663_v31 = vpop.eup %5662 }
 0x350   :  { %v7200_v1 = vsel %vm3766_vm4, %v9163_v53, %v3927_v15  ;;  %v3933_v11 = vmul.f32 0.6931472, %v5659_v30  ;;  %9175 = vst [vmem:[#allocation51_spill] sm:$0xff] %v7204_v52  ;;  %v3872_v46 = vmul.f32 1.442695, %v3819_v41  ;;  %v7213_v20 = vsel %vm3768_vm5, %v9166_v57, %v3931_v3  ;;  %9177 = vst [vmem:[#allocation110_spill] sm:$0xff] %v7215_v33 }
 0x351   :  { %3399 = vmatpush1.bf16.msra.mxu1 %v9167_v58  ;;  %3442 = vmatpush1.bf16.msra.mxu0 %v9168_v18  ;;  %9173 = vst [vmem:[#allocation46_spill] sm:$0xff] %v7200_v1  ;;  %v7202_v58 = vld [vmem:[#allocation9 + $0x830] sm:$0xff]  ;;  %9176 = vst [vmem:[#allocation109_spill] sm:$0xff] %v7213_v20  ;;  %v9178_v15 = vld [vmem:[#allocation47_spill] sm:$0xff]  ;;  %v3898_v53 = vadd.f32 1.0, %v5661_v60  ;;  %v9183_v3 = vcombine.low %v6630_v22, %v6632_v4  ;;  %v9184_v57 = vcombine.low %v9170_v45, %v9171_v38 }
 0x352   :  { %3400 = vmatprep.subr.bf16.mxu1 %v9169_v23  ;;  %3443 = vmatprep.subr.bf16.mxu0 %v9172_v8  ;;  %9174 = vst [vmem:[#allocation50_spill] sm:$0xff] %v7202_v58  ;;  %vm3767_vm6 = vcmp.gt.f32.partialorder %v9178_v15, 20.0  ;;  %v9179_v30 = vld [vmem:[#allocation49_spill] sm:$0xff]  ;;  %v7221_v18 = vld [vmem:[#allocation9 + $0x8f8] sm:$0xff]  ;;  %v3876_v17 = vmul.f32 1.442695, %v3821_v0  ;;  %5678 = vpow2.f32 %v3874_v48  ;;  %v9187_v4 = vcombine.high %v6674_v54, %v6676_v21 }
 0x353   :  { %vm3769_vm7 = vcmp.gt.f32.partialorder %v9179_v30, 20.0  ;;  %9180 = vst [vmem:[#allocation47_spill] sm:$0xff] %v7221_v18  ;;  %v7223_v8 = vld [vmem:[#allocation9 + $0x9b0] sm:$0xff]  ;;  %v7236_v41 = vsel %vm3767_vm6, %v9178_v15, %v3929_v34  ;;  %v5665_v16 = vpop.eup %5664  ;;  %v9188_v22 = vld [vmem:[#allocation52_spill] sm:$0xff]  ;;  %5680 = vpow2.f32 %v3872_v46  ;;  %v3900_v52 = vadd.f32 1.0, %v5663_v31  ;;  %v9202_v63 = vld [vmem:[#allocation43_spill] sm:$0xff] }
 0x354   :  { %9181 = vst [vmem:[#allocation49_spill] sm:$0xff] %v7223_v8  ;;  %v7225_v23 = vld [vmem:[#allocation9 + $0xa70] sm:$0xff]  ;;  %v9189_v38 = vcombine.high %v6685_v50, %v9188_v22  ;;  %v7252_v34 = vsel %vm3769_vm7, %v9179_v30, %v3933_v11  ;;  %v5667_v48 = vpop.eup %5666  ;;  %v7263_v11 = vld [vmem:[#allocation9 + $0x9b8] sm:$0xff]  ;;  %5682 = vlog2.f32 %v3898_v53  ;;  %v9200_v31 = vcombine.low %v6674_v54, %v6676_v21 }
 0x355   :  { %9182 = vst [vmem:[#allocation111_spill] sm:$0xff] %v7225_v23  ;;  %3401 = vmatpush1.bf16.msra.mxu1 %v9183_v3  ;;  %3444 = vmatpush1.bf16.msra.mxu0 %v9184_v57  ;;  %v9185_v60 = vld [vmem:[#allocation33_spill] sm:$0xff]  ;;  %v9190_v45 = vld [vmem:[#allocation38_spill] sm:$0xff]  ;;  %9191 = vst [vmem:[#allocation52_spill] sm:$0xff] %v7252_v34  ;;  %v2824_v3 = vpop.f32.mrb[8].mxu1  ;;  %v2867_v57 = vpop.f32.mrb[12].mxu0  ;;  %5684 = vpow2.f32 %v3876_v17  ;;  %v4109_v13 = vmul.f32 %v9202_v63, %v7252_v34  ;;  %v9204_v54 = vcombine.high %v6698_v12, %v6700_v2 }
 0x356   :  { %v4106_v6 = vmul.f32 %v9185_v60, %v7200_v1  ;;  %9186 = vst [vmem:[#allocation33_spill] sm:$0xff] %v7236_v41  ;;  %3402 = vmatprep.subr.bf16.mxu1 %v9187_v4  ;;  %3445 = vmatprep.subr.bf16.mxu0 %v9189_v38  ;;  %v4108_v0 = vmul.f32 %v9190_v45, %v7213_v20  ;;  %9192 = vst [vmem:[#allocation38_spill] sm:$0xff] %v7263_v11  ;;  %v7265_v30 = vld [vmem:[#allocation9 + $0xa78] sm:$0xff]  ;;  %v5669_v15 = vpop.eup %5668  ;;  %v9194_v58 = vld [vmem:[#allocation53_spill] sm:$0xff]  ;;  %v2826_v43 = vpop.f32.mrb[9].mxu1  ;;  %5686 = vlog2.f32 %v3900_v52 }
 0x357   :  { %9193 = vst [vmem:[#allocation112_spill] sm:$0xff] %v7265_v30  ;;  %v7268_v46 = vadd.f32 %v9194_v58, %v2824_v3  ;;  %v2869_v44 = vpop.f32.mrb[13].mxu0  ;;  %v9195_v4 = vld [vmem:[#allocation39_spill] sm:$0xff]  ;;  %9196 = vst [vmem:[#allocation53_spill] sm:$0xff] %v7272_v32  ;;  %v7274_v38 = vld [vmem:[#allocation9 + $0xbf0] sm:$0xff]  ;;  %v5671_v28 = vpop.eup %5670  ;;  %v9201_v3 = vcombine.low %v6685_v50, %v9188_v22  ;;  %vm3786_vm4 = vcmp.gt.f32.partialorder %v7070_v51, 20.0 }
 0x358   :  { %v4107_v14 = vmul.f32 %v9195_v4, %v7236_v41  ;;  %9197 = vst [vmem:[#allocation39_spill] sm:$0xff] %v7274_v38  ;;  %v9198_v18 = vld [vmem:[#allocation54_spill] sm:$0xff]  ;;  %v2828_v24 = vpop.f32.mrb[10].mxu1  ;;  %v7279_v53 = vpop.f32.mrb[14].mxu0  ;;  %v4138_v39 = vmul.f32 1.442695, %v4106_v6 }
 0x359   :  { %v7277_v33 = vadd.f32 %v9198_v18, %v2867_v57  ;;  %3403 = vmatpush1.bf16.msra.mxu1 %v9200_v31  ;;  %3446 = vmatpush1.bf16.msra.mxu0 %v9201_v3  ;;  %v5673_v27 = vpop.eup %5672  ;;  %v9203_v17 = vld [vmem:[#allocation55_spill] sm:$0xff]  ;;  %v7293_v35 = vpop.f32.mrb[11].mxu1  ;;  %v9205_v50 = vld [vmem:[#allocation57_spill] sm:$0xff]  ;;  %v9206_v21 = vld [vmem:[#allocation58_spill] sm:$0xff]  ;;  %v4142_v22 = vmul.f32 1.442695, %v4108_v0 }
 0x35a   :  { %v7291_v57 = vadd.f32 %v9203_v17, %v2826_v43  ;;  %v7295_v42 = vpop.f32.mrb[15].mxu0  ;;  %3404 = vmatprep.subr.bf16.mxu1 %v9204_v54  ;;  %v9207_v6 = vcombine.high %v9205_v50, %v9206_v21  ;;  %v5675_v3 = vpop.eup %5674  ;;  %v9208_v34 = vld [vmem:[#allocation69_spill] sm:$0xff]  ;;  %v3899_v41 = vadd.f32 1.0, %v5669_v15  ;;  %v3959_v19 = vmul.f32 0.6931472, %v5665_v16  ;;  %v9209_v43 = vld [vmem:[#allocation56_spill] sm:$0xff] }
 0x35b   :  { %9199 = vst [vmem:[#allocation54_spill] sm:$0xff] %v7277_v33  ;;  %vm3785_vm11 = vcmp.gt.f32.partialorder %v9208_v34, 20.0  ;;  %v5677_v1 = vpop.eup %5676  ;;  %v3806_v0 = vmin.f32 %v7268_v46, 20.0  ;;  %v3963_v31 = vmul.f32 0.6931472, %v5667_v48  ;;  %v3808_v23 = vmin.f32 %v7277_v33, 20.0 }
 0x35c   :  { %3447 = vmatprep.subr.bf16.mxu0 %v9207_v6  ;;  %v4140_v6 = vmul.f32 1.442695, %v4107_v14  ;;  %v7315_v8 = vadd.f32 %v9209_v43, %v2869_v44  ;;  %v9210_v16 = vcombine.low %v6698_v12, %v6700_v2  ;;  %v9211_v15 = vcombine.low %v9205_v50, %v9206_v21  ;;  %v9212_v14 = vld [vmem:[#allocation59_spill] sm:$0xff]  ;;  %v9213_v48 = vld [vmem:[#allocation60_spill] sm:$0xff]  ;;  %v9215_v11 = vld [vmem:[#allocation61_spill] sm:$0xff] }
 0x35d   :  { %5688 = vpow2.f32 %v4138_v39  ;;  %v4144_v54 = vmul.f32 1.442695, %v4109_v13  ;;  %v3901_v52 = vadd.f32 1.0, %v5675_v3  ;;  %v3807_v20 = vmin.f32 %v7291_v57, 20.0  ;;  %v9216_v44 = vld [vmem:[#allocation62_spill] sm:$0xff]  ;;  %v5679_v3 = vpop.eup %5678 }
 0x35e   :  { %3405 = vmatpush1.bf16.msra.mxu1 %v9210_v16  ;;  %3448 = vmatpush1.bf16.msra.mxu0 %v9211_v15  ;;  %v9214_v30 = vcombine.high %v9212_v14, %v9213_v48  ;;  %v9217_v33 = vcombine.high %v9215_v11, %v9216_v44  ;;  %5690 = vpow2.f32 %v4142_v22  ;;  %v3961_v12 = vmul.f32 0.6931472, %v5671_v28  ;;  %v7335_v50 = vld [vmem:[#allocation9 + $0xb38] sm:$0xff]  ;;  %v9223_v22 = vld [vmem:[#allocation64_spill] sm:$0xff] }
 0x35f   :  { %5692 = vlog2.f32 %v3899_v41  ;;  %v3914_v2 = vadd.f32 1.0, %v5677_v1  ;;  %v7333_v39 = vsel %vm3782_vm8, %v6740_v10, %v3959_v19  ;;  %v3965_v13 = vmul.f32 0.6931472, %v5673_v27  ;;  %9218 = vst [vmem:[#allocation43_spill] sm:$0xff] %v7335_v50  ;;  %v7337_v21 = vld [vmem:[#allocation9 + $0xbf8] sm:$0xff]  ;;  %v5681_v1 = vpop.eup %5680 }
 0x360   :  { %3406 = vmatprep.subr.bf16.mxu1 %v9214_v30  ;;  %3449 = vmatprep.subr.bf16.mxu0 %v9217_v33  ;;  %9219 = vst [vmem:[#allocation55_spill] sm:$0xff] %v7337_v21  ;;  %v3846_v30 = vmul.f32 1.442695, %v3806_v0  ;;  %v7340_v16 = vadd.f32 %v9194_v58, %v2828_v24  ;;  %5694 = vpow2.f32 %v4140_v6  ;;  %v7345_v28 = vsel %vm3784_vm9, %v6752_v7, %v3963_v31  ;;  %v5683_v58 = vpop.eup %5682  ;;  %v9222_v41 = vld [vmem:[#allocation63_spill] sm:$0xff]  ;;  %v9225_v31 = vld [vmem:[#allocation65_spill] sm:$0xff]  ;;  %v9226_v0 = vld [vmem:[#allocation66_spill] sm:$0xff] }
 0x361   :  { %v3850_v33 = vmul.f32 1.442695, %v3808_v23  ;;  %v3809_v10 = vmin.f32 %v7315_v8, 20.0  ;;  %v9220_v27 = vcombine.low %v9212_v14, %v9213_v48  ;;  %v9221_v19 = vcombine.low %v9215_v11, %v9216_v44 }
 0x362   :  { %5696 = vpow2.f32 %v4144_v54  ;;  %v3848_v7 = vmul.f32 1.442695, %v3807_v20  ;;  %v9224_v23 = vcombine.high %v9222_v41, %v9223_v22  ;;  %v9227_v6 = vcombine.high %v9225_v31, %v9226_v0  ;;  %v5685_v54 = vpop.eup %5684 }
 0x363   :  { %3407 = vmatpush1.bf16.msra.mxu1 %v9220_v27  ;;  %3450 = vmatpush1.bf16.msra.mxu0 %v9221_v19  ;;  %5698 = vlog2.f32 %v3901_v52  ;;  %v4122_v15 = vmul.f32 %v9185_v60, %v7333_v39  ;;  %v3916_v14 = vadd.f32 1.0, %v5679_v3  ;;  %v4124_v20 = vmul.f32 %v9190_v45, %v7345_v28 }
 0x364   :  { %3478 = vmatprep.subr.bf16.mxu1 %v9224_v23  ;;  %3521 = vmatprep.subr.bf16.mxu0 %v9227_v6  ;;  %5700 = vlog2.f32 %v3914_v2  ;;  %v7371_v52 = vsel %vm3783_vm10, %v6778_v36, %v3961_v12  ;;  %v3915_v48 = vadd.f32 1.0, %v5681_v1  ;;  %v3822_v44 = vmin.f32 %v7340_v16, 20.0 }
 0x365   :  { %5702 = vpow2.f32 %v3846_v30  ;;  %v7379_v60 = vsel %vm3785_vm11, %v9208_v34, %v3965_v13  ;;  %v3852_v45 = vmul.f32 1.442695, %v3809_v10  ;;  %v7383_v2 = vadd.f32 %v9198_v18, %v7279_v53  ;;  %v5687_v30 = vpop.eup %5686  ;;  %v9230_v13 = vld [vmem:[#allocation67_spill] sm:$0xff]  ;;  %v9233_v53 = vld [vmem:[#allocation70_spill] sm:$0xff] }
 0x366   :  { %3425 = vmatmul.mubr.bf16.vlgmr.msra.gmra.mrb[36].mxu1 %v9123_v26  ;;  %3468 = vmatmul.mubr.bf16.vlgmr.msra.gmra.mrb[40].mxu0 %v9123_v26  ;;  %5704 = vpow2.f32 %v3850_v33  ;;  %v9228_v36 = vcombine.low %v9222_v41, %v9223_v22  ;;  %v9229_v12 = vcombine.low %v9225_v31, %v9226_v0  ;;  %v3935_v3 = vmul.f32 0.6931472, %v5683_v58  ;;  %v9231_v33 = vld [vmem:[#allocation68_spill] sm:$0xff]  ;;  %v9234_v10 = vld [vmem:[#allocation71_spill] sm:$0xff] }
 0x367   :  { %v3917_v1 = vadd.f32 1.0, %v5685_v54  ;;  %5706 = vpow2.f32 %v3848_v7  ;;  %v7393_v34 = vadd.f32 %v9203_v17, %v7293_v35  ;;  %v9232_v18 = vcombine.high %v9230_v13, %v9231_v33  ;;  %v7403_v41 = vpop.eup %5688  ;;  %3510 = vmatprep.mubr.bf16.mxu1 %v9137_v40  ;;  %3553 = vmatprep.mubr.bf16.mxu0 %v9137_v40  ;;  %v9241_v54 = vld [vmem:[#allocation72_spill] sm:$0xff] }
 0x368   :  { %3479 = vmatpush1.bf16.msra.mxu1 %v9228_v36  ;;  %3522 = vmatpush1.bf16.msra.mxu0 %v9229_v12  ;;  %v9235_v27 = vcombine.high %v9233_v53, %v9234_v10  ;;  %v4123_v19 = vmul.f32 %v9195_v4, %v7371_v52  ;;  %9236 = vst [vmem:[#allocation57_spill] sm:$0xff] %v7403_v41  ;;  %5708 = vlog2.f32 %v3916_v14  ;;  %v4170_v35 = vmul.f32 1.442695, %v4122_v15  ;;  %v7413_v7 = vpop.eup %5690  ;;  %v9242_v14 = vld [vmem:[#allocation73_spill] sm:$0xff] }
 0x369   :  { %3480 = vmatprep.subr.bf16.mxu1 %v9232_v18  ;;  %v7407_v58 = vadd.f32 %v9209_v43, %v7295_v42  ;;  %v4125_v17 = vmul.f32 %v9202_v63, %v7379_v60  ;;  %9237 = vst [vmem:[#allocation58_spill] sm:$0xff] %v7413_v7  ;;  %5710 = vlog2.f32 %v3915_v48  ;;  %v3878_v4 = vmul.f32 1.442695, %v3822_v44  ;;  %v5693_v23 = vpop.eup %5692  ;;  %v9244_v48 = vld [vmem:[#allocation74_spill] sm:$0xff]  ;;  %v9245_v44 = vld [vmem:[#allocation75_spill] sm:$0xff] }
 0x36a   :  { %3523 = vmatprep.subr.bf16.mxu0 %v9235_v27  ;;  %v4174_v22 = vmul.f32 1.442695, %v4124_v20  ;;  %5712 = vpow2.f32 %v3852_v45  ;;  %v3824_v42 = vmin.f32 %v7383_v2, 20.0  ;;  %v9238_v43 = vcombine.low %v9230_v13, %v9231_v33  ;;  %v7426_v6 = vpop.eup %5694  ;;  %v9248_v33 = vld [vmem:[#allocation76_spill] sm:$0xff] }
 0x36b   :  { %v9239_v31 = vcombine.low %v9233_v53, %v9234_v10  ;;  %v7424_v63 = vsel %vm3770_vm12, %v6921_v25, %v3935_v3  ;;  %v3939_v0 = vmul.f32 0.6931472, %v5687_v30  ;;  %9240 = vst [vmem:[#allocation69_spill] sm:$0xff] %v7426_v6  ;;  %5714 = vlog2.f32 %v3917_v1 }
 0x36c   :  { %3481 = vmatpush1.bf16.msra.mxu1 %v9238_v43  ;;  %v3823_v15 = vmin.f32 %v7393_v34, 20.0  ;;  %v9243_v20 = vcombine.high %v9241_v54, %v9242_v14  ;;  %v9246_v45 = vcombine.high %v9244_v48, %v9245_v44  ;;  %v4172_v36 = vmul.f32 1.442695, %v4123_v19  ;;  %v7437_v25 = vpop.eup %5696  ;;  %v9253_v43 = vld [vmem:[#allocation77_spill] sm:$0xff] }
 0x36d   :  { %3524 = vmatpush1.bf16.msra.mxu0 %v9239_v31  ;;  %v3825_v3 = vmin.f32 %v7407_v58, 20.0  ;;  %5716 = vpow2.f32 %v4170_v35  ;;  %v4176_v30 = vmul.f32 1.442695, %v4125_v17  ;;  %v7442_v1 = vrot.slane %v7065_v61, %v6427_v9  ;;  %v5699_v13 = vpop.eup %5698 }
 0x36e   :  { %3482 = vmatprep.subr.bf16.mxu1 %v9243_v20  ;;  %3525 = vmatprep.subr.bf16.mxu0 %v9246_v45  ;;  %5718 = vpow2.f32 %v3878_v4  ;;  %v4110_v18 = vmul.f32 %v9248_v33, %v7424_v63  ;;  %v3937_v53 = vmul.f32 0.6931472, %v5693_v23  ;;  %v7447_v10 = vpop.eup %5700  ;;  %v3882_v27 = vmul.f32 1.442695, %v3824_v42 }
 0x36f   :  { %9247 = vst [vmem:[#allocation56_spill] sm:$0xff] %v7442_v1  ;;  %v9249_v19 = vcombine.low %v9241_v54, %v9242_v14  ;;  %v9250_v35 = vcombine.low %v9244_v48, %v9245_v44  ;;  %5720 = vpow2.f32 %v4174_v22  ;;  %v7456_v9 = vsel %vm3772_vm13, %v6976_v55, %v3939_v0  ;;  %v5703_v4 = vpop.eup %5702  ;;  %v9257_v14 = vld [vmem:[#allocation78_spill] sm:$0xff] }
 0x370   :  { %v7460_v17 = vrot.slane %v7065_v61, %v6430_v29  ;;  %v3880_v23 = vmul.f32 1.442695, %v3823_v15  ;;  %v9252_v42 = vcombine.high %v6841_v49, %v6843_v37  ;;  %v9254_v31 = vcombine.high %v6845_v59, %v9253_v43  ;;  %v5705_v29 = vpop.eup %5704 }
 0x371   :  { %3483 = vmatpush1.bf16.msra.mxu1 %v9249_v19  ;;  %3526 = vmatpush1.bf16.msra.mxu0 %v9250_v35  ;;  %5722 = vpow2.f32 %v4172_v36  ;;  %v7470_v22 = vrot.slane %v7065_v61, %v6437_v56  ;;  %v7474_v55 = vrot.slane %v7065_v61, %v9076_v62  ;;  %v3884_v0 = vmul.f32 1.442695, %v3825_v3  ;;  %v5707_v15 = vpop.eup %5706  ;;  %v9260_v36 = vld [vmem:[#allocation22_spill] sm:$0xff]  ;;  %v9264_v19 = vld [vmem:[#allocation80_spill] sm:$0xff] }
 0x372   :  { %9251 = vst [vmem:[#allocation59_spill] sm:$0xff] %v7460_v17  ;;  %3484 = vmatprep.subr.bf16.mxu1 %v9252_v42  ;;  %3527 = vmatprep.subr.bf16.mxu0 %v9254_v31  ;;  %5724 = vpow2.f32 %v4176_v30  ;;  %v4146_v54 = vmul.f32 1.442695, %v4110_v18  ;;  %v4112_v20 = vmul.f32 %v9257_v14, %v7456_v9  ;;  %v7481_v48 = vsel %vm3771_vm14, %v7010_v5, %v3937_v53  ;;  %v5709_v44 = vpop.eup %5708  ;;  %v9261_v3 = vld [vmem:[#allocation46_spill] sm:$0xff]  ;;  %v9262_v5 = vld [vmem:[#allocation109_spill] sm:$0xff]  ;;  %v9263_v53 = vld [vmem:[#allocation103_spill] sm:$0xff] }
 0x373   :  { %9255 = vst [vmem:[#allocation60_spill] sm:$0xff] %v7470_v22  ;;  %9256 = vst [vmem:[#allocation61_spill] sm:$0xff] %v7474_v55  ;;  %v3941_v56 = vmul.f32 0.6931472, %v5699_v13  ;;  %v3902_v62 = vadd.f32 1.0, %v5703_v4  ;;  %5726 = vpow2.f32 %v3882_v27  ;;  %v9258_v61 = vcombine.low %v6841_v49, %v6843_v37  ;;  %v5711_v18 = vpop.eup %5710  ;;  %v9265_v37 = vld [vmem:[#allocation81_spill] sm:$0xff] }
 0x374   :  { %v9259_v45 = vcombine.low %v6845_v59, %v9253_v43  ;;  %v7492_v30 = vmul.f32 %v9261_v3, %v9260_v36  ;;  %v7496_v13 = vmul.f32 %v9262_v5, %v9260_v36  ;;  %vm3788_vm5 = vcmp.gt.f32.partialorder %v9263_v53, 20.0  ;;  %v9267_v35 = vld [vmem:[#allocation82_spill] sm:$0xff]  ;;  %v9268_v59 = vld [vmem:[#allocation83_spill] sm:$0xff]  ;;  %v9270_v42 = vld [vmem:[#allocation33_spill] sm:$0xff] }
 0x375   :  { %3485 = vmatpush1.bf16.msra.mxu1 %v9258_v61  ;;  %v3904_v27 = vadd.f32 1.0, %v5705_v29  ;;  %5728 = vpow2.f32 %v3880_v23  ;;  %v9266_v49 = vcombine.high %v9264_v19, %v9265_v37  ;;  %v9269_v4 = vcombine.high %v9267_v35, %v9268_v59  ;;  %v9271_v31 = vld [vmem:[#allocation52_spill] sm:$0xff]  ;;  %v9272_v23 = vld [vmem:[#allocation23_spill] sm:$0xff] }
 0x376   :  { %3528 = vmatpush1.bf16.msra.mxu0 %v9259_v45  ;;  %v7507_v43 = vmul.f32 %v9270_v42, %v9260_v36  ;;  %v7511_v61 = vmul.f32 %v9271_v31, %v9260_v36  ;;  %v5713_v45 = vpop.eup %5712  ;;  %v3903_v3 = vadd.f32 1.0, %v5707_v15  ;;  %5730 = vpow2.f32 %v3884_v0  ;;  %v9274_v5 = vld [vmem:[#allocation79_spill] sm:$0xff]  ;;  %v9292_v17 = vld [vmem:[#allocation84_spill] sm:$0xff] }
 0x377   :  { %3486 = vmatprep.subr.bf16.mxu1 %v9266_v49  ;;  %3529 = vmatprep.subr.bf16.mxu0 %v9269_v4  ;;  %v7515_v29 = vmul.f32 %v7333_v39, %v9272_v23  ;;  %v4111_v49 = vmul.f32 %v9274_v5, %v7481_v48  ;;  %v7519_v11 = vpop.eup %5714  ;;  %v7523_v4 = vmul.f32 %v7345_v28, %v9272_v23  ;;  %5732 = vpow2.f32 %v4146_v54  ;;  %v9277_v39 = vld [vmem:[#allocation45_spill] sm:$0xff] }
 0x378   :  { %v4150_v42 = vmul.f32 1.442695, %v4112_v20  ;;  %v7528_v15 = vsel %vm3773_vm15, %v7049_v47, %v3941_v56  ;;  %v7530_v0 = vpop.eup %5716  ;;  %vm3787_vm6 = vcmp.gt.f32.partialorder %v9277_v39, 20.0  ;;  %5734 = vlog2.f32 %v3902_v62 }
 0x379   :  { %9273 = vst [vmem:[#allocation62_spill] sm:$0xff] %v7515_v29  ;;  %9275 = vst [vmem:[#allocation63_spill] sm:$0xff] %v7523_v4  ;;  %v9278_v31 = vcombine.low %v9264_v19, %v9265_v37  ;;  %v9279_v28 = vcombine.low %v9267_v35, %v9268_v59  ;;  %v7540_v54 = vmul.f32 0.0, %v7403_v41  ;;  %v7544_v47 = vmul.f32 %v7371_v52, %v9272_v23  ;;  %v5719_v56 = vpop.eup %5718  ;;  %v9282_v19 = vld [vmem:[#allocation28_spill] sm:$0xff]  ;;  %v9283_v37 = vld [vmem:[#allocation29_spill] sm:$0xff] }
 0x37a   :  { %9276 = vst [vmem:[#allocation64_spill] sm:$0xff] %v7530_v0  ;;  %v7548_v20 = vmul.f32 %v7379_v60, %v9272_v23  ;;  %5736 = vlog2.f32 %v3904_v27  ;;  %v3905_v62 = vadd.f32 1.0, %v5713_v45  ;;  %v9285_v35 = vld [vmem:[#allocation26_spill] sm:$0xff]  ;;  %v7557_v12 = vmul.f32 0.0, %v7413_v7  ;;  %v7560_v24 = vpop.eup %5720  ;;  %v2910_v60 = vpop.f32.mrb[12].mxu1  ;;  %v9290_v45 = vld [vmem:[#allocation25_spill] sm:$0xff] }
 0x37b   :  { %3487 = vmatpush1.bf16.msra.mxu1 %v9278_v31  ;;  %3530 = vmatpush1.bf16.msra.mxu0 %v9279_v28  ;;  %9280 = vst [vmem:[#allocation65_spill] sm:$0xff] %v7544_v47  ;;  %v9284_v31 = vcombine.high %v9282_v19, %v9283_v37  ;;  %v9286_v59 = vld [vmem:[#allocation86_spill] sm:$0xff]  ;;  %v3967_v52 = vmul.f32 0.6931472, %v7447_v10  ;;  %9289 = vst [vmem:[#allocation68_spill] sm:$0xff] %v7560_v24  ;;  %5738 = vlog2.f32 %v3903_v3  ;;  %v2953_v0 = vpop.f32.mrb[16].mxu0 }
 0x37c   :  { %9281 = vst [vmem:[#allocation66_spill] sm:$0xff] %v7548_v20  ;;  %v9287_v28 = vcombine.high %v9285_v35, %v9286_v59  ;;  %9288 = vst [vmem:[#allocation67_spill] sm:$0xff] %v7557_v12  ;;  %v4148_v27 = vmul.f32 1.442695, %v4111_v49  ;;  %v4113_v55 = vmul.f32 %v9290_v45, %v7528_v15  ;;  %v3971_v22 = vmul.f32 0.6931472, %v5709_v44 }
 0x37d   :  { %3488 = vmatprep.subr.bf16.mxu1 %v9284_v31  ;;  %v7564_v31 = vpop.eup %5722  ;;  %v7567_v1 = vadd.f32 %v9292_v17, %v2910_v60  ;;  %v2912_v50 = vpop.f32.mrb[13].mxu1  ;;  %v7573_v24 = vmul.f32 0.0, %v7426_v6  ;;  %5740 = vpow2.f32 %v4150_v42  ;;  %v9296_v49 = vld [vmem:[#allocation106_spill] sm:$0xff]  ;;  %v3918_v38 = vadd.f32 1.0, %v5719_v56  ;;  %v9297_v44 = vld [vmem:[#allocation32_spill] sm:$0xff] }
 0x37e   :  { %3531 = vmatprep.subr.bf16.mxu0 %v9287_v28  ;;  %9291 = vst [vmem:[#allocation70_spill] sm:$0xff] %v7564_v31  ;;  %v9293_v28 = vld [vmem:[#allocation85_spill] sm:$0xff]  ;;  %v2955_v10 = vpop.f32.mrb[17].mxu0  ;;  %v7575_v3 = vpop.eup %5724  ;;  %vm3789_vm7 = vcmp.gt.f32.partialorder %v9296_v49, 20.0  ;;  %v7579_v32 = vadd.f32 %v9297_v44, %v2912_v50  ;;  %v9299_v41 = vcombine.low %v9282_v19, %v9283_v37  ;;  %v9300_v42 = vcombine.low %v9285_v35, %v9286_v59  ;;  %v9302_v47 = vld [vmem:[#allocation88_spill] sm:$0xff]  ;;  %v9304_v4 = vld [vmem:[#allocation90_spill] sm:$0xff] }
 0x37f   :  { %v7570_v21 = vadd.f32 %v9293_v28, %v2953_v0  ;;  %9294 = vst [vmem:[#allocation71_spill] sm:$0xff] %v7573_v24  ;;  %9295 = vst [vmem:[#allocation72_spill] sm:$0xff] %v7575_v3  ;;  %v9298_v31 = vld [vmem:[#allocation89_spill] sm:$0xff]  ;;  %v2914_v7 = vpop.f32.mrb[14].mxu1  ;;  %v2957_v0 = vpop.f32.mrb[18].mxu0  ;;  %5742 = vlog2.f32 %v3905_v62  ;;  %v3810_v56 = vmin.f32 %v7567_v1, 20.0  ;;  %v7609_v59 = vsel %vm3788_vm5, %v9263_v53, %v3971_v22 }
 0x380   :  { %v7582_v60 = vadd.f32 %v9298_v31, %v2955_v10  ;;  %3489 = vmatpush1.bf16.msra.mxu1 %v9299_v41  ;;  %3532 = vmatpush1.bf16.msra.mxu0 %v9300_v42  ;;  %v3969_v3 = vmul.f32 0.6931472, %v5711_v18  ;;  %v2916_v6 = vpop.f32.mrb[15].mxu1  ;;  %v7592_v20 = vpop.f32.mrb[19].mxu0  ;;  %v9301_v10 = vld [vmem:[#allocation87_spill] sm:$0xff]  ;;  %v7603_v18 = vsel %vm3786_vm4, %v7070_v51, %v3967_v52  ;;  %v3811_v37 = vmin.f32 %v7579_v32, 20.0 }
 0x381   :  { %v3812_v50 = vmin.f32 %v7570_v21, 20.0  ;;  %v9303_v24 = vcombine.high %v9301_v10, %v9302_v47  ;;  %v9305_v19 = vld [vmem:[#allocation91_spill] sm:$0xff]  ;;  %v5727_v62 = vpop.eup %5726  ;;  %5744 = vpow2.f32 %v4148_v27  ;;  %v4152_v35 = vmul.f32 1.442695, %v4113_v55 }
 0x382   :  { %v9306_v41 = vcombine.high %v9304_v4, %v9305_v19  ;;  %v3854_v42 = vmul.f32 1.442695, %v3810_v56  ;;  %v7613_v12 = vadd.f32 %v9292_v17, %v2914_v7  ;;  %5746 = vlog2.f32 %v3918_v38  ;;  %v9310_v17 = vld [vmem:[#allocation27_spill] sm:$0xff] }
 0x383   :  { %3490 = vmatprep.subr.bf16.mxu1 %v9303_v24  ;;  %v5729_v24 = vpop.eup %5728  ;;  %v3858_v29 = vmul.f32 1.442695, %v3812_v50  ;;  %v3856_v52 = vmul.f32 1.442695, %v3811_v37  ;;  %v9307_v27 = vcombine.low %v9301_v10, %v9302_v47  ;;  %v9308_v55 = vcombine.low %v9304_v4, %v9305_v19  ;;  %v9311_v50 = vld [vmem:[#allocation92_spill] sm:$0xff]  ;;  %v9313_v10 = vld [vmem:[#allocation93_spill] sm:$0xff] }
 0x384   :  { %3533 = vmatprep.subr.bf16.mxu0 %v9306_v41  ;;  %v3813_v41 = vmin.f32 %v7582_v60, 20.0  ;;  %v5731_v51 = vpop.eup %5730  ;;  %v4126_v22 = vmul.f32 %v9248_v33, %v7603_v18  ;;  %v3973_v53 = vmul.f32 0.6931472, %v7519_v11  ;;  %v3920_v7 = vadd.f32 1.0, %v5727_v62  ;;  %v9314_v37 = vld [vmem:[#allocation94_spill] sm:$0xff] }
 0x385   :  { %3491 = vmatpush1.bf16.msra.mxu1 %v9307_v27  ;;  %3534 = vmatpush1.bf16.msra.mxu0 %v9308_v55  ;;  %v7624_v56 = vpop.eup %5732  ;;  %5748 = vpow2.f32 %v3854_v42  ;;  %v7627_v38 = vadd.f32 %v9293_v28, %v2957_v0  ;;  %v9312_v47 = vcombine.high %v9310_v17, %v9311_v50  ;;  %v9315_v4 = vcombine.high %v9313_v10, %v9314_v37 }
 0x386   :  { %9309 = vst [vmem:[#allocation73_spill] sm:$0xff] %v7624_v56  ;;  %v7638_v33 = vsel %vm3787_vm6, %v9277_v39, %v3969_v3  ;;  %v5735_v11 = vpop.eup %5734  ;;  %v3919_v19 = vadd.f32 1.0, %v5729_v24  ;;  %5750 = vpow2.f32 %v3858_v29  ;;  %v7641_v62 = vmul.f32 0.0, %v7437_v25 }
 0x387   :  { %3492 = vmatprep.subr.bf16.mxu1 %v9312_v47  ;;  %3535 = vmatprep.subr.bf16.mxu0 %v9315_v4  ;;  %v4128_v28 = vmul.f32 %v9257_v14, %v7609_v59  ;;  %v5737_v0 = vpop.eup %5736  ;;  %vm3774_vm8 = vcmp.gt.f32.partialorder %v7268_v46, 20.0  ;;  %5752 = vpow2.f32 %v3856_v52  ;;  %v3860_v42 = vmul.f32 1.442695, %v3813_v41  ;;  %v9319_v52 = vld [vmem:[#allocation95_spill] sm:$0xff]  ;;  %v9322_v4 = vld [vmem:[#allocation30_spill] sm:$0xff] }
 0x388   :  { %v3826_v27 = vmin.f32 %v7613_v12, 20.0  ;;  %v5739_v55 = vpop.eup %5738  ;;  %v3921_v47 = vadd.f32 1.0, %v5731_v51  ;;  %v9316_v39 = vcombine.low %v9310_v17, %v9311_v50  ;;  %v9317_v29 = vcombine.low %v9313_v10, %v9314_v37  ;;  %v9320_v17 = vld [vmem:[#allocation96_spill] sm:$0xff]  ;;  %v9323_v10 = vld [vmem:[#allocation34_spill] sm:$0xff] }
 0x389   :  { %5754 = vpow2.f32 %v4152_v35  ;;  %v4178_v3 = vmul.f32 1.442695, %v4126_v22  ;;  %v4127_v14 = vmul.f32 %v9274_v5, %v7638_v33  ;;  %v7655_v24 = vpop.eup %5740  ;;  %v3828_v41 = vmin.f32 %v7627_v38, 20.0  ;;  %v9325_v35 = vld [vmem:[#allocation54_spill] sm:$0xff] }
 0x38a   :  { %3493 = vmatpush1.bf16.msra.mxu1 %v9316_v39  ;;  %3536 = vmatpush1.bf16.msra.mxu0 %v9317_v29  ;;  %9318 = vst [vmem:[#allocation74_spill] sm:$0xff] %v7655_v24  ;;  %5756 = vlog2.f32 %v3920_v7  ;;  %v7659_v51 = vadd.f32 %v9297_v44, %v2916_v6  ;;  %v9321_v50 = vcombine.high %v9319_v52, %v9320_v17  ;;  %vm3776_vm9 = vcmp.gt.f32.partialorder %v9325_v35, 20.0  ;;  %v5743_v6 = vpop.eup %5742 }
 0x38b   :  { %v9324_v37 = vcombine.high %v9322_v4, %v9323_v10  ;;  %v7670_v5 = vsel %vm3789_vm7, %v9296_v49, %v3973_v53  ;;  %5758 = vlog2.f32 %v3919_v19  ;;  %v4182_v22 = vmul.f32 1.442695, %v4128_v28 }
 0x38c   :  { %3564 = vmatprep.subr.bf16.mxu1 %v9321_v50  ;;  %v3943_v7 = vmul.f32 0.6931472, %v5735_v11  ;;  %5760 = vpow2.f32 %v3860_v42  ;;  %v3886_v44 = vmul.f32 1.442695, %v3826_v27  ;;  %v3947_v39 = vmul.f32 0.6931472, %v5737_v0  ;;  %v7675_v50 = vpop.eup %5744 }
 0x38d   :  { %3607 = vmatprep.subr.bf16.mxu0 %v9324_v37  ;;  %3511 = vmatmul.mubr.bf16.vlgmr.msra.gmra.mrb[40].mxu1 %v9123_v26  ;;  %v3945_v29 = vmul.f32 0.6931472, %v5739_v55  ;;  %9326 = vst [vmem:[#allocation75_spill] sm:$0xff] %v7675_v50  ;;  %5762 = vlog2.f32 %v3921_v47  ;;  %v7679_v49 = vadd.f32 %v9298_v31, %v7592_v20  ;;  %v9327_v53 = vcombine.low %v9319_v52, %v9320_v17  ;;  %v9329_v27 = vld [vmem:[#allocation35_spill] sm:$0xff]  ;;  %v9330_v20 = vld [vmem:[#allocation36_spill] sm:$0xff]  ;;  %v9333_v47 = vld [vmem:[#allocation97_spill] sm:$0xff]  ;;  %v5747_v17 = vpop.eup %5746 }
 0x38e   :  { %3554 = vmatmul.mubr.bf16.vlgmr.msra.gmra.mrb[44].mxu0 %v9123_v26  ;;  %v9328_v11 = vcombine.low %v9322_v4, %v9323_v10  ;;  %v4180_v19 = vmul.f32 1.442695, %v4127_v14  ;;  %v4129_v28 = vmul.f32 %v9290_v45, %v7670_v5  ;;  %vm3775_vm10 = vcmp.gt.f32.partialorder %v7291_v57, 20.0  ;;  %v9332_v55 = vld [vmem:[#allocation24_spill] sm:$0xff]  ;;  %3596 = vmatprep.mubr.bf16.mxu1 %v9137_v40 }
 0x38f   :  { %3565 = vmatpush1.bf16.msra.mxu1 %v9327_v53  ;;  %v3890_v0 = vmul.f32 1.442695, %v3828_v41  ;;  %v3827_v42 = vmin.f32 %v7659_v51, 20.0  ;;  %v9331_v31 = vcombine.high %v9329_v27, %v9330_v20  ;;  %v9334_v52 = vcombine.high %v9332_v55, %v9333_v47  ;;  %3639 = vmatprep.mubr.bf16.mxu0 %v9137_v40  ;;  %v5749_v41 = vpop.eup %5748  ;;  %v9341_v53 = vld [vmem:[#allocation40_spill] sm:$0xff] }
 0x390   :  { %3608 = vmatpush1.bf16.msra.mxu0 %v9328_v11  ;;  %5764 = vpow2.f32 %v4178_v3  ;;  %vm3777_vm11 = vcmp.gt.f32.partialorder %v7315_v8, 20.0  ;;  %v7703_v45 = vsel %vm3774_vm8, %v7268_v46, %v3943_v7  ;;  %v3949_v14 = vmul.f32 0.6931472, %v5743_v6  ;;  %v5751_v4 = vpop.eup %5750 }
 0x391   :  { %3566 = vmatprep.subr.bf16.mxu1 %v9331_v31  ;;  %3609 = vmatprep.subr.bf16.mxu0 %v9334_v52  ;;  %5766 = vpow2.f32 %v4182_v22  ;;  %vm3790_vm12 = vcmp.gt.f32.partialorder %v7340_v16, 20.0  ;;  %v7709_v3 = vsel %vm3776_vm9, %v9325_v35, %v3947_v39  ;;  %v7714_v40 = vsel %vm3775_vm10, %v7291_v57, %v3945_v29  ;;  %v5753_v7 = vpop.eup %5752  ;;  %v9338_v57 = vld [vmem:[#allocation98_spill] sm:$0xff]  ;;  %v9340_v29 = vld [vmem:[#allocation37_spill] sm:$0xff] }
 0x392   :  { %5768 = vpow2.f32 %v3886_v44  ;;  %v3906_v10 = vadd.f32 1.0, %v5749_v41  ;;  %v3829_v46 = vmin.f32 %v7679_v49, 20.0  ;;  %v9335_v37 = vcombine.low %v9329_v27, %v9330_v20  ;;  %v9337_v44 = vld [vmem:[#allocation31_spill] sm:$0xff]  ;;  %v9344_v20 = vld [vmem:[#allocation41_spill] sm:$0xff] }
 0x393   :  { %v9336_v22 = vcombine.low %v9332_v55, %v9333_v47  ;;  %5770 = vpow2.f32 %v4180_v19  ;;  %v4184_v35 = vmul.f32 1.442695, %v4129_v28  ;;  %v3888_v6 = vmul.f32 1.442695, %v3827_v42  ;;  %v7735_v19 = vpop.eup %5754  ;;  %v9347_v55 = vld [vmem:[#allocation101_spill] sm:$0xff] }
 0x394   :  { %3567 = vmatpush1.bf16.msra.mxu1 %v9335_v37  ;;  %5772 = vpow2.f32 %v3890_v0  ;;  %v9339_v39 = vcombine.high %v9337_v44, %v9338_v57  ;;  %v9342_v11 = vcombine.high %v9340_v29, %v9341_v53  ;;  %v7731_v27 = vmul.f32 %v7424_v63, %v9260_v36  ;;  %9345 = vst [vmem:[#allocation77_spill] sm:$0xff] %v7735_v19  ;;  %v9346_v0 = vld [vmem:[#allocation42_spill] sm:$0xff]  ;;  %v5757_v52 = vpop.eup %5756 }
 0x395   :  { %3610 = vmatpush1.bf16.msra.mxu0 %v9336_v22  ;;  %v4114_v31 = vmul.f32 %v9344_v20, %v7703_v45  ;;  %vm3792_vm13 = vcmp.gt.f32.partialorder %v7383_v2, 20.0  ;;  %vm3791_vm14 = vcmp.gt.f32.partialorder %v7393_v34, 20.0  ;;  %v3908_v28 = vadd.f32 1.0, %v5751_v4  ;;  %v5759_v4 = vpop.eup %5758 }
 0x396   :  { %3568 = vmatprep.subr.bf16.mxu1 %v9339_v39  ;;  %3611 = vmatprep.subr.bf16.mxu0 %v9342_v11  ;;  %9343 = vst [vmem:[#allocation76_spill] sm:$0xff] %v7731_v27  ;;  %v4116_v42 = vmul.f32 %v9346_v0, %v7709_v3  ;;  %v4115_v47 = vmul.f32 %v9347_v55, %v7714_v40  ;;  %5774 = vlog2.f32 %v3906_v10  ;;  %v3907_v41 = vadd.f32 1.0, %v5753_v7  ;;  %v9352_v10 = vld [vmem:[#allocation100_spill] sm:$0xff] }
 0x397   :  { %v7746_v63 = vsel %vm3777_vm11, %v7315_v8, %v3949_v14  ;;  %v7750_v37 = vmul.f32 %v7456_v9, %v9260_v36  ;;  %v3975_v22 = vmul.f32 0.6931472, %v5747_v17  ;;  %v3892_v39 = vmul.f32 1.442695, %v3829_v46  ;;  %v5761_v9 = vpop.eup %5760  ;;  %v9351_v17 = vld [vmem:[#allocation99_spill] sm:$0xff]  ;;  %v9354_v7 = vld [vmem:[#allocation104_spill] sm:$0xff] }
 0x398   :  { %v9348_v11 = vcombine.low %v9337_v44, %v9338_v57  ;;  %v9349_v27 = vcombine.low %v9340_v29, %v9341_v53  ;;  %v7760_v8 = vmul.f32 %v7481_v48, %v9260_v36  ;;  %v7764_v14 = vmul.f32 %v7528_v15, %v9260_v36  ;;  %v9355_v44 = vld [vmem:[#allocation105_spill] sm:$0xff]  ;;  %v9358_v53 = vld [vmem:[#allocation102_spill] sm:$0xff] }
 0x399   :  { %5776 = vpow2.f32 %v4184_v35  ;;  %v9353_v46 = vcombine.high %v9351_v17, %v9352_v10  ;;  %v9356_v57 = vcombine.high %v9354_v7, %v9355_v44  ;;  %v7774_v29 = vmul.f32 %v7603_v18, %v9272_v23 }
 0x39a   :  { %3569 = vmatpush1.bf16.msra.mxu1 %v9348_v11  ;;  %3612 = vmatpush1.bf16.msra.mxu0 %v9349_v27  ;;  %9350 = vst [vmem:[#allocation78_spill] sm:$0xff] %v7764_v14  ;;  %5778 = vpow2.f32 %v3888_v6  ;;  %v4154_v48 = vmul.f32 1.442695, %v4114_v31  ;;  %v4117_v15 = vmul.f32 %v9358_v53, %v7746_v63  ;;  %v5763_v27 = vpop.eup %5762  ;;  %vm3793_vm15 = vcmp.gt.f32.partialorder %v7407_v58, 20.0 }
 0x39b   :  { %3570 = vmatprep.subr.bf16.mxu1 %v9353_v46  ;;  %3613 = vmatprep.subr.bf16.mxu0 %v9356_v57  ;;  %9357 = vst [vmem:[#allocation46_spill] sm:$0xff] %v7774_v29  ;;  %5780 = vlog2.f32 %v3908_v28  ;;  %v7781_v35 = vmul.f32 %v7609_v59, %v9272_v23  ;;  %v4158_v6 = vmul.f32 1.442695, %v4116_v42  ;;  %v4156_v11 = vmul.f32 1.442695, %v4115_v47  ;;  %v7783_v46 = vpop.eup %5764 }
 0x39c   :  { %9359 = vst [vmem:[#allocation109_spill] sm:$0xff] %v7783_v46  ;;  %5782 = vlog2.f32 %v3907_v41  ;;  %v4014_v18 = vsel %vm3790_vm12, %v7340_v16, %v3975_v22  ;;  %v3979_v31 = vmul.f32 0.6931472, %v5757_v52  ;;  %v3977_v57 = vmul.f32 0.6931472, %v5759_v4  ;;  %v7788_v29 = vpop.eup %5766  ;;  %v9365_v52 = vld [vmem:[#allocation107_spill] sm:$0xff] }
 0x39d   :  { %9360 = vst [vmem:[#allocation103_spill] sm:$0xff] %v7788_v29  ;;  %v3909_v14 = vadd.f32 1.0, %v5761_v9  ;;  %5784 = vpow2.f32 %v3892_v39  ;;  %v9361_v28 = vcombine.low %v9351_v17, %v9352_v10  ;;  %v9362_v59 = vcombine.low %v9354_v7, %v9355_v44  ;;  %v5769_v47 = vpop.eup %5768  ;;  %v9366_v41 = vld [vmem:[#allocation108_spill] sm:$0xff] }
 0x39e   :  { %v7798_v42 = vmul.f32 %v7638_v33, %v9272_v23  ;;  %v7802_v16 = vmul.f32 %v7670_v5, %v9272_v23  ;;  %v9367_v22 = vcombine.high %v9365_v52, %v9366_v41  ;;  %v9368_v4 = vld [vmem:[#allocation48_spill] sm:$0xff]  ;;  %v7811_v17 = vmul.f32 0.0, %v7624_v56  ;;  %v7816_v7 = vpop.eup %5770  ;;  %v9411_v56 = vld [vmem:[#allocation39_spill] sm:$0xff] }
 0x39f   :  { %3571 = vmatpush1.bf16.msra.mxu1 %v9361_v28  ;;  %3614 = vmatpush1.bf16.msra.mxu0 %v9362_v59  ;;  %v9369_v39 = vld [vmem:[#allocation44_spill] sm:$0xff]  ;;  %v7814_v10 = vmul.f32 0.0, %v7655_v24  ;;  %5786 = vpow2.f32 %v4154_v48  ;;  %v4160_v33 = vmul.f32 1.442695, %v4117_v15  ;;  %9371 = vst [vmem:[#allocation82_spill] sm:$0xff] %v7816_v7  ;;  %v7819_v5 = vmul.f32 0.0, %v7675_v50  ;;  %v5773_v59 = vpop.eup %5772 }
 0x3a0   :  { %9363 = vst [vmem:[#allocation80_spill] sm:$0xff] %v7798_v42  ;;  %9364 = vst [vmem:[#allocation81_spill] sm:$0xff] %v7802_v16  ;;  %3572 = vmatprep.subr.bf16.mxu1 %v9367_v22  ;;  %v9370_v9 = vcombine.high %v9368_v4, %v9369_v39  ;;  %v7822_v44 = vmul.f32 0.0, %v7735_v19  ;;  %5788 = vpow2.f32 %v4158_v6  ;;  %v4130_v28 = vmul.f32 %v9344_v20, %v4014_v18  ;;  %v9409_v19 = vld [vmem:[#allocation58_spill] sm:$0xff]  ;;  %v9410_v24 = vld [vmem:[#allocation53_spill] sm:$0xff] }
 0x3a1   :  { %9372 = vst [vmem:[#allocation83_spill] sm:$0xff] %v7819_v5  ;;  %vm3778_vm4 = vcmp.gt.f32.partialorder %v7567_v1, 20.0  ;;  %5790 = vpow2.f32 %v4156_v11  ;;  %v4016_v48 = vsel %vm3792_vm13, %v7383_v2, %v3979_v31  ;;  %v7832_v15 = vsel %vm3791_vm14, %v7393_v34, %v3977_v57  ;;  %v5775_v34 = vpop.eup %5774  ;;  %v9381_v57 = vld [vmem:[#allocation110_spill] sm:$0xff] }
 0x3a2   :  { %3615 = vmatprep.subr.bf16.mxu0 %v9370_v9  ;;  %9373 = vst [vmem:[#allocation33_spill] sm:$0xff] %v7822_v44  ;;  %v3981_v22 = vmul.f32 0.6931472, %v5763_v27  ;;  %5792 = vlog2.f32 %v3909_v14  ;;  %v3922_v9 = vadd.f32 1.0, %v5769_v47  ;;  %v9374_v6 = vcombine.low %v9365_v52, %v9366_v41  ;;  %v9378_v27 = vld [vmem:[#allocation50_spill] sm:$0xff]  ;;  %v9379_v14 = vld [vmem:[#allocation51_spill] sm:$0xff] }
 0x3a3   :  { %v9375_v20 = vcombine.low %v9368_v4, %v9369_v39  ;;  %v7842_v11 = vmul.f32 %v7703_v45, %v9260_v36  ;;  %v7846_v2 = vmul.f32 %v7709_v3, %v9260_v36  ;;  %v9380_v31 = vcombine.high %v9378_v27, %v9379_v14  ;;  %v9382_v47 = vld [vmem:[#allocation47_spill] sm:$0xff]  ;;  %v7865_v4 = vpop.eup %5776  ;;  %v2996_v39 = vpop.f32.mrb[16].mxu1  ;;  %v9418_v44 = vld [vmem:[#allocation56_spill] sm:$0xff] }
 0x3a4   :  { %3573 = vmatpush1.bf16.msra.mxu1 %v9374_v6  ;;  %v9383_v52 = vcombine.high %v9381_v57, %v9382_v47  ;;  %v7856_v41 = vmul.f32 %v7714_v40, %v9260_v36  ;;  %5794 = vpow2.f32 %v4160_v33  ;;  %v7860_v45 = vmul.f32 %v7746_v63, %v9260_v36  ;;  %9387 = vst [vmem:[#allocation26_spill] sm:$0xff] %v7865_v4  ;;  %v3039_v6 = vpop.f32.mrb[20].mxu0  ;;  %v5779_v33 = vpop.eup %5778 }
 0x3a5   :  { %3616 = vmatpush1.bf16.msra.mxu0 %v9375_v20  ;;  %9376 = vst [vmem:[#allocation52_spill] sm:$0xff] %v7842_v11  ;;  %9377 = vst [vmem:[#allocation79_spill] sm:$0xff] %v7846_v2  ;;  %3574 = vmatprep.subr.bf16.mxu1 %v9380_v31  ;;  %v7863_v3 = vmul.f32 %v4014_v18, %v9272_v23  ;;  %vm3780_vm5 = vcmp.gt.f32.partialorder %v7570_v21, 20.0  ;;  %v7868_v20 = vmul.f32 1.442695, %v4130_v28  ;;  %vm3779_vm6 = vcmp.gt.f32.partialorder %v7579_v32, 20.0 }
 0x3a6   :  { %3617 = vmatprep.subr.bf16.mxu0 %v9383_v52  ;;  %9384 = vst [vmem:[#allocation45_spill] sm:$0xff] %v7856_v41  ;;  %9385 = vst [vmem:[#allocation28_spill] sm:$0xff] %v7860_v45  ;;  %v4132_v31 = vmul.f32 %v9346_v0, %v4016_v48  ;;  %v7872_v40 = vmul.f32 %v4016_v48, %v9272_v23  ;;  %v7876_v63 = vmul.f32 %v9347_v55, %v7832_v15  ;;  %v2998_v28 = vpop.f32.mrb[17].mxu1  ;;  %v5781_v48 = vpop.eup %5780  ;;  %v9402_v41 = vld [vmem:[#allocation38_spill] sm:$0xff]  ;;  %v9403_v2 = vld [vmem:[#allocation112_spill] sm:$0xff]  ;;  %vm6038_vm12 = vmmov 0  }
 0x3a7   :  { %9386 = vst [vmem:[#allocation29_spill] sm:$0xff] %v7863_v3  ;;  %v3924_v18 = vadd.f32 1.0, %v5773_v59  ;;  %v7880_v52 = vmul.f32 %v7492_v30, %v2996_v39  ;;  %v7883_v4 = vmul.f32 %v7496_v13, %v3039_v6  ;;  %v3041_v3 = vpop.f32.mrb[21].mxu0  ;;  %v7888_v0 = vsel %vm3793_vm15, %v7407_v58, %v3981_v22  ;;  %v3000_v30 = vpop.f32.mrb[18].mxu1 }
 0x3a8   :  { %9388 = vst [vmem:[#allocation86_spill] sm:$0xff] %v7872_v40  ;;  %5796 = vlog2.f32 %v3922_v9  ;;  %v7891_v55 = vmul.f32 %v7507_v43, %v2998_v28  ;;  %v7894_v59 = vmul.f32 %v7511_v61, %v3041_v3  ;;  %v3043_v39 = vpop.f32.mrb[22].mxu0  ;;  %v9389_v13 = vcombine.low %v9378_v27, %v9379_v14  ;;  %v5783_v22 = vpop.eup %5782  ;;  %v9391_v43 = vld [vmem:[#allocation67_spill] sm:$0xff]  ;;  %v9392_v3 = vld [vmem:[#allocation62_spill] sm:$0xff] }
 0x3a9   :  { %v9390_v6 = vcombine.low %v9381_v57, %v9382_v47  ;;  %v3951_v58 = vmul.f32 0.6931472, %v5775_v34  ;;  %v7904_v9 = vadd.f32 %v7540_v54, %v7880_v52  ;;  %v7908_v61 = vadd.f32 %v9391_v43, %v7883_v4  ;;  %v9393_v40 = vld [vmem:[#allocation63_spill] sm:$0xff]  ;;  %v3002_v14 = vpop.f32.mrb[19].mxu1  ;;  %v9394_v57 = vld [vmem:[#allocation49_spill] sm:$0xff] }
 0x3aa   :  { %3575 = vmatpush1.bf16.msra.mxu1 %v9389_v13  ;;  %v7911_v28 = vmul.f32 %v9392_v3, %v3000_v30  ;;  %v7914_v27 = vmul.f32 %v9393_v40, %v3043_v39  ;;  %v3045_v13 = vpop.f32.mrb[23].mxu0  ;;  %v9395_v47 = vld [vmem:[#allocation111_spill] sm:$0xff]  ;;  %v7925_v43 = vadd.f32 %v7641_v62, %v7894_v59  ;;  %v9398_v30 = vld [vmem:[#allocation65_spill] sm:$0xff]  ;;  %v9400_v40 = vld [vmem:[#allocation66_spill] sm:$0xff]  ;;  %v9404_v11 = vcombine.high %v9402_v41, %v9403_v2 }
 0x3ab   :  { %3618 = vmatpush1.bf16.msra.mxu0 %v9390_v6  ;;  %v9396_v34 = vcombine.high %v9394_v57, %v9395_v47  ;;  %v5785_v6 = vpop.eup %5784  ;;  %v9397_v54 = vld [vmem:[#allocation71_spill] sm:$0xff]  ;;  %v7928_v3 = vmul.f32 %v9398_v30, %v3002_v14  ;;  %v7931_v39 = vmul.f32 %v9400_v40, %v3045_v13  ;;  %v3923_v7 = vadd.f32 1.0, %v5779_v33 }
 0x3ac   :  { %v7921_v45 = vadd.f32 %v9397_v54, %v7891_v55  ;;  %3619 = vmatprep.subr.bf16.mxu0 %v9404_v11  ;;  %v4314_v54 = vrot.slane %v7904_v9, 6  ;;  %v4316_v29 = vrot.slane %v7908_v61, 6  ;;  %v3955_v46 = vmul.f32 0.6931472, %v5781_v48 }
 0x3ad   :  { %3576 = vmatprep.subr.bf16.mxu1 %v9396_v34  ;;  %9399 = vst [vmem:[#allocation25_spill] sm:$0xff] %v7928_v3  ;;  %9401 = vst [vmem:[#allocation84_spill] sm:$0xff] %v7931_v39  ;;  %v7936_v34 = vpop.eup %5786  ;;  %vm3781_vm7 = vcmp.gt.f32.partialorder %v7582_v60, 20.0  ;;  %v4317_v13 = vrot.slane %v7925_v43, 6  ;;  %v9405_v30 = vcombine.low %v9394_v57, %v9395_v47  ;;  %v9406_v11 = vcombine.low %v9402_v41, %v9403_v2  ;;  %v9408_v39 = vld [vmem:[#allocation57_spill] sm:$0xff]  ;;  %v9413_v57 = vld [vmem:[#allocation43_spill] sm:$0xff] }
 0x3ae   :  { %v7940_v62 = vpop.eup %5788  ;;  %v4315_v14 = vrot.slane %v7921_v45, 6  ;;  %v4002_v33 = vsel %vm3778_vm4, %v7567_v1, %v3951_v58  ;;  %v3953_v48 = vmul.f32 0.6931472, %v5783_v22  ;;  %v4346_v3 = vmul.f32 %v9408_v39, %v4314_v54  ;;  %v9414_v47 = vld [vmem:[#allocation55_spill] sm:$0xff]  ;;  %v9416_v22 = vld [vmem:[#allocation69_spill] sm:$0xff] }
 0x3af   :  { %3577 = vmatpush1.bf16.msra.mxu1 %v9405_v30  ;;  %3620 = vmatpush1.bf16.msra.mxu0 %v9406_v11  ;;  %v7954_v40 = vpop.eup %5790  ;;  %v4348_v50 = vmul.f32 %v9409_v19, %v4316_v29  ;;  %v9412_v16 = vcombine.high %v9410_v24, %v9411_v56  ;;  %v9415_v30 = vcombine.high %v9413_v57, %v9414_v47  ;;  %v4190_v2 = vmul.f32 1.442695, %v4132_v31 }
 0x3b0   :  { %9407 = vst [vmem:[#allocation85_spill] sm:$0xff] %v7954_v40  ;;  %v4133_v41 = vmul.f32 %v9358_v53, %v7888_v0  ;;  %v5793_v1 = vpop.eup %5792  ;;  %5798 = vlog2.f32 %v3924_v18  ;;  %v3925_v58 = vadd.f32 1.0, %v5785_v6  ;;  %v4347_v11 = vmul.f32 %v9416_v22, %v4315_v14 }
 0x3b1   :  { %3578 = vmatprep.subr.bf16.mxu1 %v9412_v16  ;;  %3621 = vmatprep.subr.bf16.mxu0 %v9415_v30  ;;  %v4349_v54 = vmul.f32 %v7437_v25, %v4317_v13  ;;  %v7968_v29 = vpop.eup %5794  ;;  %v4362_v42 = vadd.f32 %v4346_v3, %v7880_v52  ;;  %v4364_v16 = vadd.f32 %v4348_v50, %v7883_v4  ;;  %5800 = vlog2.f32 %v3923_v7 }
 0x3b2   :  { %9417 = vst [vmem:[#allocation106_spill] sm:$0xff] %v7968_v29  ;;  %v4118_v5 = vmul.f32 %v9418_v44, %v4002_v33  ;;  %v4004_v31 = vsel %vm3780_vm5, %v7570_v21, %v3955_v46  ;;  %v7977_v53 = vadd.f32 %v4347_v11, %v7891_v55  ;;  %v9419_v6 = vcombine.low %v9410_v24, %v9411_v56  ;;  %v5797_v13 = vpop.eup %5796  ;;  %v9421_v24 = vld [vmem:[#allocation59_spill] sm:$0xff] }
 0x3b3   :  { %v7980_v18 = vadd.f32 %v4349_v54, %v7894_v59  ;;  %v9420_v50 = vcombine.low %v9413_v57, %v9414_v47  ;;  %v4003_v3 = vsel %vm3779_vm6, %v7579_v32, %v3953_v48  ;;  %v4394_v21 = vrot.slane %v4362_v42, 6 }
 0x3b4   :  { %3579 = vmatpush1.bf16.msra.mxu1 %v9419_v6  ;;  %v4396_v46 = vrot.slane %v4364_v16, 6  ;;  %v4188_v7 = vmul.f32 1.442695, %v7876_v63  ;;  %v3957_v14 = vmul.f32 0.6931472, %v5793_v1  ;;  %5802 = vlog2.f32 %v3925_v58  ;;  %v9422_v63 = vld [vmem:[#allocation60_spill] sm:$0xff] }
 0x3b5   :  { %3622 = vmatpush1.bf16.msra.mxu0 %v9420_v50  ;;  %v7994_v30 = vmul.f32 %v7832_v15, %v9272_v23  ;;  %v4192_v56 = vmul.f32 1.442695, %v4133_v41  ;;  %v4120_v11 = vmul.f32 %v9421_v24, %v4004_v31  ;;  %5804 = vpow2.f32 %v7868_v20 }
 0x3b6   :  { %v8002_v32 = vmul.f32 %v7888_v0, %v9272_v23  ;;  %v4119_v48 = vmul.f32 %v9422_v63, %v4003_v3  ;;  %v4426_v57 = vmul.f32 %v9408_v39, %v4394_v21  ;;  %vm3794_vm8 = vcmp.gt.f32.partialorder %v7613_v12, 20.0  ;;  %v9424_v21 = vld [vmem:[#allocation61_spill] sm:$0xff] }
 0x3b7   :  { %3597 = vmatmul.mubr.bf16.vlgmr.msra.gmra.mrb[44].mxu1 %v9123_v26  ;;  %5806 = vpow2.f32 %v4190_v2  ;;  %v4162_v15 = vmul.f32 1.442695, %v4118_v5  ;;  %v4858_v47 = vsel %vm251_vm1, %v7904_v9, %v4362_v42  ;;  %v4428_v41 = vmul.f32 %v9409_v19, %v4396_v46 }
 0x3b8   :  { %3640 = vmatmul.mubr.bf16.vlgmr.msra.gmra.mrb[48].mxu0 %v9123_v26  ;;  %v8011_v26 = vmul.f32 0.0, %v7936_v34  ;;  %5808 = vpow2.f32 %v4188_v7  ;;  %v4005_v20 = vsel %vm3781_vm7, %v7582_v60, %v3957_v14  ;;  %v4442_v0 = vadd.f32 %v4426_v57, %v7880_v52 }
 0x3b9   :  { %vm3796_vm9 = vcmp.gt.f32.partialorder %v7627_v38, 20.0  ;;  %v8019_v2 = vmul.f32 0.0, %v7940_v62  ;;  %v8022_v5 = vmul.f32 0.0, %v7954_v40  ;;  %5810 = vpow2.f32 %v4192_v56 }
 0x3ba   :  { %v4166_v42 = vmul.f32 1.442695, %v4120_v11  ;;  %v4395_v9 = vrot.slane %v7977_v53, 6  ;;  %v4164_v1 = vmul.f32 1.442695, %v4119_v48  ;;  %v4474_v58 = vrot.slane %v4442_v0, 6  ;;  %v5799_v6 = vpop.eup %5798 }
 0x3bb   :  { %v4874_v54 = vsel %vm267_vm2, %v4858_v47, %v4442_v0  ;;  %v8027_v60 = vmul.f32 0.0, %v7968_v29  ;;  %5812 = vpow2.f32 %v4162_v15  ;;  %v8030_v50 = vmul.f32 %v4002_v33, %v9260_v36  ;;  %v5801_v48 = vpop.eup %5800 }
 0x3bc   :  { %v4121_v46 = vmul.f32 %v9424_v21, %v4005_v20  ;;  %v8034_v7 = vmul.f32 %v4004_v31, %v9260_v36  ;;  %v8037_v14 = vmul.f32 %v4003_v3, %v9260_v36  ;;  %v3983_v56 = vmul.f32 0.6931472, %v5797_v13 }
 0x3bd   :  { %9423 = vst [vmem:[#allocation32_spill] sm:$0xff] %v8030_v50  ;;  %v4506_v11 = vmul.f32 %v9408_v39, %v4474_v58  ;;  %v4397_v57 = vrot.slane %v7980_v18, 6  ;;  %5814 = vpow2.f32 %v4166_v42  ;;  %v4444_v15 = vadd.f32 %v4428_v41, %v7883_v4 }
 0x3be   :  { %9425 = vst [vmem:[#allocation89_spill] sm:$0xff] %v8034_v7  ;;  %9426 = vst [vmem:[#allocation87_spill] sm:$0xff] %v8037_v14  ;;  %v4860_v33 = vsel %vm251_vm1, %v7908_v61, %v4364_v16  ;;  %vm3795_vm10 = vcmp.gt.f32.partialorder %v7659_v51, 20.0  ;;  %vm3797_vm11 = vcmp.gt.f32.partialorder %v7679_v49, 20.0  ;;  %5816 = vpow2.f32 %v4164_v1  ;;  %v5803_v39 = vpop.eup %5802  ;;  %v9456_v14 = vld [vmem:[#allocation74_spill] sm:$0xff] }
 0x3bf   :  { %v3987_v31 = vmul.f32 0.6931472, %v5799_v6  ;;  %v4522_v3 = vadd.f32 %v4506_v11, %v7880_v52  ;;  %v4427_v13 = vmul.f32 %v9416_v22, %v4395_v9  ;;  %v4168_v47 = vmul.f32 1.442695, %v4121_v46  ;;  %v8052_v58 = vpop.eup %5804 }
 0x3c0   :  { %v8049_v0 = vmul.f32 %v4005_v20, %v9260_v36  ;;  %v4476_v42 = vrot.slane %v4444_v15, 6  ;;  %v4876_v41 = vsel %vm267_vm2, %v4860_v33, %v4444_v15  ;;  %9428 = vst [vmem:[#allocation90_spill] sm:$0xff] %v8052_v58  ;;  %v4018_v61 = vsel %vm3794_vm8, %v7613_v12, %v3983_v56  ;;  %v9432_v56 = vld [vmem:[#allocation64_spill] sm:$0xff]  ;;  %v9445_v36 = vld [vmem:[#allocation78_spill] sm:$0xff] }
 0x3c1   :  { %v3985_v16 = vmul.f32 0.6931472, %v5801_v48  ;;  %v4554_v1 = vrot.slane %v4522_v3, 6  ;;  %v8058_v52 = vsel %vm283_vm3, %v4874_v54, %v4522_v3  ;;  %v8060_v9 = vpop.eup %5806  ;;  %v4443_v20 = vadd.f32 %v4427_v13, %v7891_v55 }
 0x3c2   :  { %9427 = vst [vmem:[#allocation88_spill] sm:$0xff] %v8049_v0  ;;  %9429 = vst [vmem:[#allocation91_spill] sm:$0xff] %v8058_v52  ;;  %v4508_v6 = vmul.f32 %v9409_v19, %v4476_v42  ;;  %v4859_v46 = vsel %vm251_vm1, %v7921_v45, %v7977_v53  ;;  %v4429_v11 = vmul.f32 %v7437_v25, %v4397_v57  ;;  %v8068_v15 = vpop.eup %5808  ;;  %v3989_v54 = vmul.f32 0.6931472, %v5803_v39 }
 0x3c3   :  { %9430 = vst [vmem:[#allocation27_spill] sm:$0xff] %v8060_v9  ;;  %9431 = vst [vmem:[#allocation92_spill] sm:$0xff] %v8068_v15  ;;  %v4020_v12 = vsel %vm3796_vm9, %v7627_v38, %v3987_v31  ;;  %v4586_v48 = vmul.f32 %v9432_v56, %v4554_v1  ;;  %v4861_v19 = vsel %vm251_vm1, %v7925_v43, %v7980_v18  ;;  %v8077_v33 = vpop.eup %5810  ;;  %5818 = vpow2.f32 %v4168_v47 }
 0x3c4   :  { %9433 = vst [vmem:[#allocation93_spill] sm:$0xff] %v8077_v33  ;;  %v4524_v45 = vadd.f32 %v4508_v6, %v7883_v4  ;;  %v4475_v53 = vrot.slane %v4443_v20, 6  ;;  %v4875_v57 = vsel %vm267_vm2, %v4859_v46, %v4443_v20  ;;  %v4134_v3 = vmul.f32 %v9418_v44, %v4018_v61 }
 0x3c5   :  { %v8083_v13 = vmul.f32 %v4018_v61, %v9272_v23  ;;  %v4445_v38 = vadd.f32 %v4429_v11, %v7894_v59  ;;  %v4602_v31 = vadd.f32 %v4586_v48, %v7911_v28  ;;  %v8087_v39 = vpop.eup %5812  ;;  %v4136_v43 = vmul.f32 %v9421_v24, %v4020_v12 }
 0x3c6   :  { %9435 = vst [vmem:[#allocation95_spill] sm:$0xff] %v8087_v39  ;;  %v4556_v18 = vrot.slane %v4524_v45, 6  ;;  %v8091_v47 = vsel %vm283_vm3, %v4876_v41, %v4524_v45  ;;  %v4507_v4 = vmul.f32 %v9416_v22, %v4475_v53  ;;  %v8095_v42 = vmul.f32 %v4020_v12, %v9272_v23  ;;  %v9439_v22 = vld [vmem:[#allocation68_spill] sm:$0xff]  ;;  %v3125_v45 = vpop.f32.mrb[24].mxu0 }
 0x3c7   :  { %9434 = vst [vmem:[#allocation94_spill] sm:$0xff] %v8083_v13  ;;  %9436 = vst [vmem:[#allocation96_spill] sm:$0xff] %v8091_v47  ;;  %v4477_v44 = vrot.slane %v4445_v38, 6  ;;  %v4877_v61 = vsel %vm267_vm2, %v4861_v19, %v4445_v38  ;;  %v4634_v1 = vrot.slane %v4602_v31, 6  ;;  %v8098_v6 = vpop.eup %5814  ;;  %v8103_v20 = vsel %vm3795_vm10, %v7659_v51, %v3985_v16  ;;  %v3082_v16 = vpop.f32.mrb[20].mxu1  ;;  %v9444_v38 = vld [vmem:[#allocation76_spill] sm:$0xff] }
 0x3c8   :  { %9437 = vst [vmem:[#allocation30_spill] sm:$0xff] %v8095_v42  ;;  %9438 = vst [vmem:[#allocation34_spill] sm:$0xff] %v8098_v6  ;;  %v8108_v24 = vsel %vm3797_vm11, %v7679_v49, %v3989_v54  ;;  %v4588_v41 = vmul.f32 %v9439_v22, %v4556_v18  ;;  %v4523_v46 = vadd.f32 %v4507_v4, %v7891_v55  ;;  %v8112_v11 = vpop.eup %5816  ;;  %v8115_v12 = vmul.f32 0.0, %v8087_v39  ;;  %v3084_v4 = vpop.f32.mrb[21].mxu1  ;;  %v9450_v47 = vld [vmem:[#allocation33_spill] sm:$0xff] }
 0x3c9   :  { %9440 = vst [vmem:[#allocation54_spill] sm:$0xff] %v8112_v11  ;;  %v8117_v48 = vmul.f32 1.442695, %v4134_v3  ;;  %v4509_v19 = vmul.f32 %v7437_v25, %v4477_v44  ;;  %v4666_v51 = vmul.f32 %v9432_v56, %v4634_v1  ;;  %v8121_v53 = vmul.f32 1.442695, %v4136_v43  ;;  %v3127_v25 = vpop.f32.mrb[25].mxu0 }
 0x3ca   :  { %9441 = vst [vmem:[#allocation35_spill] sm:$0xff] %v8115_v12  ;;  %v4555_v49 = vrot.slane %v4523_v46, 6  ;;  %v8124_v54 = vsel %vm283_vm3, %v4875_v57, %v4523_v46  ;;  %v4604_v55 = vadd.f32 %v4588_v41, %v7914_v27  ;;  %v8128_v18 = vmul.f32 %v9444_v38, %v3082_v16  ;;  %v3086_v46 = vpop.f32.mrb[22].mxu1  ;;  %v3129_v41 = vpop.f32.mrb[26].mxu0 }
 0x3cb   :  { %9442 = vst [vmem:[#allocation36_spill] sm:$0xff] %v8121_v53  ;;  %9443 = vst [vmem:[#allocation24_spill] sm:$0xff] %v8124_v54  ;;  %v8131_v3 = vmul.f32 %v7750_v37, %v3125_v45  ;;  %v4525_v44 = vadd.f32 %v4509_v19, %v7894_v59  ;;  %v4682_v1 = vadd.f32 %v4666_v51, %v7911_v28  ;;  %v9446_v54 = vld [vmem:[#allocation70_spill] sm:$0xff]  ;;  %v3088_v51 = vpop.f32.mrb[23].mxu1  ;;  %5820 = vpow2.f32 %v8117_v48 }
 0x3cc   :  { %v8136_v43 = vmul.f32 %v7760_v8, %v3084_v4  ;;  %v8139_v57 = vmul.f32 %v9445_v36, %v3127_v25  ;;  %v4587_v16 = vmul.f32 %v9446_v54, %v4555_v49  ;;  %v4636_v38 = vrot.slane %v4604_v55, 6  ;;  %v9447_v59 = vld [vmem:[#allocation46_spill] sm:$0xff]  ;;  %v3131_v36 = vpop.f32.mrb[27].mxu0  ;;  %v9449_v25 = vld [vmem:[#allocation83_spill] sm:$0xff] }
 0x3cd   :  { %v4286_v37 = vadd.f32 %v7811_v17, %v8128_v18  ;;  %v4288_v45 = vadd.f32 %v7814_v10, %v8131_v3  ;;  %v8147_v19 = vmul.f32 %v9447_v59, %v3086_v46  ;;  %v8150_v8 = vmul.f32 %v7781_v35, %v3129_v41  ;;  %v8152_v4 = vpop.eup %5818  ;;  %v9451_v17 = vld [vmem:[#allocation80_spill] sm:$0xff]  ;;  %v9452_v10 = vld [vmem:[#allocation81_spill] sm:$0xff] }
 0x3ce   :  { %9448 = vst [vmem:[#allocation97_spill] sm:$0xff] %v8152_v4  ;;  %v4287_v49 = vadd.f32 %v9449_v25, %v8136_v43  ;;  %v8158_v52 = vadd.f32 %v9450_v47, %v8139_v57  ;;  %v8161_v39 = vmul.f32 %v9451_v17, %v3088_v51  ;;  %v8164_v46 = vmul.f32 %v9452_v10, %v3131_v36  ;;  %v9455_v47 = vld [vmem:[#allocation73_spill] sm:$0xff]  ;;  %v9457_v17 = vld [vmem:[#allocation72_spill] sm:$0xff]  ;;  %v9458_v10 = vld [vmem:[#allocation75_spill] sm:$0xff] }
 0x3cf   :  { %v4318_v59 = vrot.slane %v4286_v37, 6  ;;  %v4320_v35 = vrot.slane %v4288_v45, 6  ;;  %v4557_v41 = vrot.slane %v4525_v44, 6  ;;  %v8167_v33 = vsel %vm283_vm3, %v4877_v61, %v4525_v44  ;;  %v9459_v4 = vld [vmem:[#allocation77_spill] sm:$0xff] }
 0x3d0   :  { %9453 = vst [vmem:[#allocation31_spill] sm:$0xff] %v8164_v46  ;;  %9454 = vst [vmem:[#allocation98_spill] sm:$0xff] %v8167_v33  ;;  %v4319_v42 = vrot.slane %v4287_v49, 6  ;;  %v4321_v13 = vrot.slane %v8158_v52, 6  ;;  %v4714_v25 = vrot.slane %v4682_v1, 6  ;;  %v4906_v12 = vsel %vm251_vm1, %v4602_v31, %v4682_v1  ;;  %v9460_v44 = vld [vmem:[#allocation25_spill] sm:$0xff] }
 0x3d1   :  { %v4350_v0 = vmul.f32 %v9455_v47, %v4318_v59  ;;  %v4352_v51 = vmul.f32 %v9456_v14, %v4320_v35  ;;  %v4589_v7 = vmul.f32 %v9457_v17, %v4557_v41  ;;  %v4668_v36 = vmul.f32 %v9439_v22, %v4636_v38  ;;  %v9461_v59 = vld [vmem:[#allocation84_spill] sm:$0xff] }
 0x3d2   :  { %v4351_v50 = vmul.f32 %v9458_v10, %v4319_v42  ;;  %v4353_v11 = vmul.f32 %v9459_v4, %v4321_v13  ;;  %v4746_v61 = vmul.f32 %v9432_v56, %v4714_v25  ;;  %v4603_v33 = vadd.f32 %v4587_v16, %v9460_v44 }
 0x3d3   :  { %v4366_v15 = vadd.f32 %v4350_v0, %v8128_v18  ;;  %v4368_v31 = vadd.f32 %v4352_v51, %v8131_v3  ;;  %v4684_v1 = vadd.f32 %v4668_v36, %v7914_v27  ;;  %v4605_v35 = vadd.f32 %v4589_v7, %v9461_v59 }
 0x3d4   :  { %v4367_v41 = vadd.f32 %v4351_v50, %v8136_v43  ;;  %v8185_v38 = vadd.f32 %v4353_v11, %v8139_v57  ;;  %v4762_v42 = vadd.f32 %v4746_v61, %v7911_v28  ;;  %v4635_v13 = vrot.slane %v4603_v33, 6 }
 0x3d5   :  { %v4398_v53 = vrot.slane %v4366_v15, 6  ;;  %v4400_v25 = vrot.slane %v4368_v31, 6  ;;  %v4716_v6 = vrot.slane %v4684_v1, 6  ;;  %v4908_v16 = vsel %vm251_vm1, %v4604_v55, %v4684_v1 }
 0x3d6   :  { %v4399_v0 = vrot.slane %v4367_v41, 6  ;;  %v4401_v51 = vrot.slane %v8185_v38, 6  ;;  %v4794_v9 = vrot.slane %v4762_v42, 6  ;;  %v4922_v36 = vsel %vm267_vm2, %v4906_v12, %v4762_v42 }
 0x3d7   :  { %v4748_v7 = vmul.f32 %v9439_v22, %v4716_v6  ;;  %v4667_v50 = vmul.f32 %v9446_v54, %v4635_v13  ;;  %v4637_v11 = vrot.slane %v4605_v35, 6  ;;  %v4430_v58 = vmul.f32 %v9455_v47, %v4398_v53 }
 0x3d8   :  { %v4826_v61 = vmul.f32 %v9432_v56, %v4794_v9  ;;  %v4862_v46 = vsel %vm251_vm1, %v4286_v37, %v4366_v15  ;;  %v4432_v29 = vmul.f32 %v9456_v14, %v4400_v25  ;;  %v4864_v55 = vsel %vm251_vm1, %v4288_v45, %v4368_v31 }
 0x3d9   :  { %v4764_v1 = vadd.f32 %v4748_v7, %v7914_v27  ;;  %v4683_v40 = vadd.f32 %v4667_v50, %v9460_v44  ;;  %v4669_v12 = vmul.f32 %v9457_v17, %v4637_v11  ;;  %v4446_v6 = vadd.f32 %v4430_v58, %v8128_v18 }
 0x3da   :  { %v4842_v42 = vadd.f32 %v4826_v61, %v7911_v28  ;;  %v4448_v53 = vadd.f32 %v4432_v29, %v8131_v3  ;;  %v4431_v9 = vmul.f32 %v9458_v10, %v4399_v0  ;;  %v4863_v15 = vsel %vm251_vm1, %v4287_v49, %v4367_v41 }
 0x3db   :  { %v4796_v56 = vrot.slane %v4764_v1, 6  ;;  %v4924_v37 = vsel %vm267_vm2, %v4908_v16, %v4764_v1  ;;  %v4715_v45 = vrot.slane %v4683_v40, 6  ;;  %v4907_v31 = vsel %vm251_vm1, %v4603_v33, %v4683_v40 }
 0x3dc   :  { %v8209_v13 = vsel %vm283_vm3, %v4922_v36, %v4842_v42  ;;  %v4685_v25 = vadd.f32 %v4669_v12, %v9461_v59  ;;  %v4478_v58 = vrot.slane %v4446_v6, 6  ;;  %v4878_v28 = vsel %vm267_vm2, %v4862_v46, %v4446_v6 }
 0x3dd   :  { %v4828_v29 = vmul.f32 %v9439_v22, %v4796_v56  ;;  %v4747_v0 = vmul.f32 %v9446_v54, %v4715_v45  ;;  %v4480_v7 = vrot.slane %v4448_v53, 6  ;;  %v4880_v49 = vsel %vm267_vm2, %v4864_v55, %v4448_v53 }
 0x3de   :  { %v4717_v41 = vrot.slane %v4685_v25, 6  ;;  %v4909_v16 = vsel %vm251_vm1, %v4605_v35, %v4685_v25  ;;  %v4510_v40 = vmul.f32 %v9455_v47, %v4478_v58  ;;  %v4447_v33 = vadd.f32 %v4431_v9, %v8136_v43  ;;  %v9463_v58 = vld [vmem:[#allocation103_spill] sm:$0xff] }
 0x3df   :  { %v4844_v36 = vadd.f32 %v4828_v29, %v7914_v27  ;;  %v4763_v50 = vadd.f32 %v4747_v0, %v9460_v44  ;;  %v4512_v46 = vmul.f32 %v9456_v14, %v4480_v7  ;;  %v4433_v22 = vmul.f32 %v9459_v4, %v4401_v51 }
 0x3e0   :  { %v4749_v11 = vmul.f32 %v9457_v17, %v4717_v41  ;;  %v4526_v61 = vadd.f32 %v4510_v40, %v8128_v18  ;;  %v4479_v55 = vrot.slane %v4447_v33, 6  ;;  %v4879_v1 = vsel %vm267_vm2, %v4863_v15, %v4447_v33  ;;  %v9464_v40 = vld [vmem:[#allocation82_spill] sm:$0xff] }
 0x3e1   :  { %v8227_v35 = vsel %vm283_vm3, %v4924_v37, %v4844_v36  ;;  %v4795_v47 = vrot.slane %v4763_v50, 6  ;;  %v4923_v12 = vsel %vm267_vm2, %v4907_v31, %v4763_v50  ;;  %v4528_v27 = vadd.f32 %v4512_v46, %v8131_v3  ;;  %v9462_v3 = vld [vmem:[#allocation109_spill] sm:$0xff] }
 0x3e2   :  { %v4765_v6 = vadd.f32 %v4749_v11, %v9461_v59  ;;  %v4558_v14 = vrot.slane %v4526_v61, 6  ;;  %v8233_v51 = vsel %vm283_vm3, %v4878_v28, %v4526_v61  ;;  %v4511_v42 = vmul.f32 %v9458_v10, %v4479_v55  ;;  %v3211_v11 = vpop.f32.mrb[28].mxu0  ;;  %v9465_v61 = vld [vmem:[#allocation52_spill] sm:$0xff]  ;;  %v9466_v55 = vld [vmem:[#allocation79_spill] sm:$0xff] }
 0x3e3   :  { %v4827_v18 = vmul.f32 %v9446_v54, %v4795_v47  ;;  %v4560_v53 = vrot.slane %v4528_v27, 6  ;;  %v8238_v9 = vsel %vm283_vm3, %v4880_v49, %v4528_v27  ;;  %v4449_v15 = vadd.f32 %v4433_v22, %v8139_v57  ;;  %v3168_v22 = vpop.f32.mrb[24].mxu1  ;;  %v3213_v47 = vpop.f32.mrb[29].mxu0  ;;  %v9468_v27 = vld [vmem:[#allocation45_spill] sm:$0xff] }
 0x3e4   :  { %v4797_v56 = vrot.slane %v4765_v6, 6  ;;  %v4925_v37 = vsel %vm267_vm2, %v4909_v16, %v4765_v6  ;;  %v4590_v45 = vmul.f32 %v9462_v3, %v4558_v14  ;;  %v4527_v31 = vadd.f32 %v4511_v42, %v8136_v43  ;;  %v9469_v6 = vld [vmem:[#allocation28_spill] sm:$0xff] }
 0x3e5   :  { %v4843_v25 = vadd.f32 %v4827_v18, %v9460_v44  ;;  %v4592_v28 = vmul.f32 %v9463_v58, %v4560_v53  ;;  %v4481_v10 = vrot.slane %v4449_v15, 6  ;;  %v4865_v54 = vsel %vm251_vm1, %v8158_v52, %v8185_v38  ;;  %v3215_v18 = vpop.f32.mrb[30].mxu0 }
 0x3e6   :  { %v4829_v29 = vmul.f32 %v9457_v17, %v4797_v56  ;;  %v4559_v0 = vrot.slane %v4527_v31, 6  ;;  %v8251_v7 = vsel %vm283_vm3, %v4879_v1, %v4527_v31  ;;  %v4881_v49 = vsel %vm267_vm2, %v4865_v54, %v4449_v15  ;;  %v3170_v1 = vpop.f32.mrb[25].mxu1  ;;  %v3217_v54 = vpop.f32.mrb[31].mxu0 }
 0x3e7   :  { %v8255_v41 = vsel %vm283_vm3, %v4923_v12, %v4843_v25  ;;  %v4513_v43 = vmul.f32 %v9459_v4, %v4481_v10  ;;  %v4606_v44 = vadd.f32 %v4590_v45, %v8147_v19  ;;  %v4608_v16 = vadd.f32 %v4592_v28, %v8150_v8  ;;  %v3172_v42 = vpop.f32.mrb[26].mxu1  ;;  %v9470_v45 = vld [vmem:[#allocation29_spill] sm:$0xff]  ;;  %v9471_v25 = vld [vmem:[#allocation86_spill] sm:$0xff] }
 0x3e8   :  { %v8262_v52 = vmul.f32 %v9422_v63, %v8103_v20  ;;  %v8266_v17 = vmul.f32 %v8103_v20, %v9272_v23  ;;  %v4845_v38 = vadd.f32 %v4829_v29, %v9461_v59  ;;  %v4591_v33 = vmul.f32 %v9464_v40, %v4559_v0  ;;  %v3174_v10 = vpop.f32.mrb[27].mxu1 }
 0x3e9   :  { %v8272_v36 = vmul.f32 %v9424_v21, %v8108_v24  ;;  %v4529_v4 = vadd.f32 %v4513_v43, %v8139_v57  ;;  %v4638_v50 = vrot.slane %v4606_v44, 6  ;;  %v4640_v46 = vrot.slane %v4608_v16, 6 }
 0x3ea   :  { %v8278_v63 = vmul.f32 %v8108_v24, %v9272_v23  ;;  %v8281_v20 = vsel %vm283_vm3, %v4925_v37, %v4845_v38  ;;  %v4607_v59 = vadd.f32 %v4591_v33, %v8161_v39  ;;  %v8285_v21 = vmul.f32 %v9465_v61, %v3168_v22  ;;  %v9472_v38 = vld [vmem:[#allocation26_spill] sm:$0xff]  ;;  %v9473_v61 = vld [vmem:[#allocation85_spill] sm:$0xff] }
 0x3eb   :  { %v8288_v57 = vmul.f32 %v9466_v55, %v3211_v11  ;;  %v4561_v12 = vrot.slane %v4529_v4, 6  ;;  %v8291_v48 = vsel %vm283_vm3, %v4881_v49, %v4529_v4  ;;  %v8294_v24 = vmul.f32 %v9468_v27, %v3170_v1  ;;  %v9474_v1 = vld [vmem:[#allocation106_spill] sm:$0xff] }
 0x3ec   :  { %9467 = vst [vmem:[#allocation37_spill] sm:$0xff] %v8291_v48  ;;  %v8297_v14 = vmul.f32 %v9469_v6, %v3213_v47  ;;  %v4670_v53 = vmul.f32 %v9462_v3, %v4638_v50  ;;  %v4672_v15 = vmul.f32 %v9463_v58, %v4640_v46  ;;  %v4290_v56 = vadd.f32 %v8011_v26, %v8285_v21 }
 0x3ed   :  { %v4292_v37 = vadd.f32 %v8019_v2, %v8288_v57  ;;  %v8306_v31 = vmul.f32 %v9470_v45, %v3172_v42  ;;  %v8309_v28 = vmul.f32 %v9471_v25, %v3215_v18  ;;  %v8313_v29 = vadd.f32 %v8022_v5, %v8294_v24 }
 0x3ee   :  { %v8317_v0 = vadd.f32 %v8027_v60, %v8297_v14  ;;  %v8320_v26 = vmul.f32 %v7994_v30, %v3174_v10  ;;  %v8323_v2 = vmul.f32 %v8002_v32, %v3217_v54  ;;  %v4322_v49 = vrot.slane %v4290_v56, 6  ;;  %v9475_v10 = vld [vmem:[#allocation31_spill] sm:$0xff] }
 0x3ef   :  { %v4324_v43 = vrot.slane %v4292_v37, 6  ;;  %v4593_v33 = vmul.f32 %v9472_v38, %v4561_v12  ;;  %v4686_v4 = vadd.f32 %v4670_v53, %v8147_v19  ;;  %v4323_v50 = vrot.slane %v8313_v29, 6 }
 0x3f0   :  { %v4325_v5 = vrot.slane %v8317_v0, 6  ;;  %v4688_v46 = vadd.f32 %v4672_v15, %v8150_v8  ;;  %v4639_v60 = vrot.slane %v4607_v59, 6  ;;  %v4354_v22 = vmul.f32 %v7936_v34, %v4322_v49  ;;  %v8340_v15 = vpop.eup %5820 }
 0x3f1   :  { %v4356_v30 = vmul.f32 %v7940_v62, %v4324_v43  ;;  %v4718_v11 = vrot.slane %v4686_v4, 6  ;;  %v4910_v32 = vsel %vm251_vm1, %v4606_v44, %v4686_v4  ;;  %v4355_v55 = vmul.f32 %v9473_v61, %v4323_v50 }
 0x3f2   :  { %v4357_v47 = vmul.f32 %v9474_v1, %v4325_v5  ;;  %v4720_v12 = vrot.slane %v4688_v46, 6  ;;  %v4912_v27 = vsel %vm251_vm1, %v4608_v16, %v4688_v46  ;;  %v4370_v6 = vadd.f32 %v4354_v22, %v8285_v21 }
 0x3f3   :  { %v4372_v42 = vadd.f32 %v4356_v30, %v8288_v57  ;;  %v4750_v18 = vmul.f32 %v9462_v3, %v4718_v11  ;;  %v4671_v53 = vmul.f32 %v9464_v40, %v4639_v60  ;;  %v4371_v45 = vadd.f32 %v4355_v55, %v8294_v24 }
 0x3f4   :  { %v4373_v44 = vadd.f32 %v4357_v47, %v8297_v14  ;;  %v4752_v25 = vmul.f32 %v9463_v58, %v4720_v12  ;;  %v4609_v54 = vadd.f32 %v4593_v33, %v9475_v10  ;;  %v4402_v49 = vrot.slane %v4370_v6, 6 }
 0x3f5   :  { %v4404_v16 = vrot.slane %v4372_v42, 6  ;;  %v4766_v43 = vadd.f32 %v4750_v18, %v8147_v19  ;;  %v4687_v4 = vadd.f32 %v4671_v53, %v8161_v39  ;;  %v4403_v50 = vrot.slane %v4371_v45, 6 }
 0x3f6   :  { %v4405_v5 = vrot.slane %v4373_v44, 6  ;;  %v4768_v46 = vadd.f32 %v4752_v25, %v8150_v8  ;;  %v4641_v60 = vrot.slane %v4609_v54, 6  ;;  %v4434_v18 = vmul.f32 %v7936_v34, %v4402_v49 }
 0x3f7   :  { %v4798_v22 = vrot.slane %v4766_v43, 6  ;;  %v4926_v30 = vsel %vm267_vm2, %v4910_v32, %v4766_v43  ;;  %v4719_v11 = vrot.slane %v4687_v4, 6  ;;  %v4911_v55 = vsel %vm251_vm1, %v4607_v59, %v4687_v4 }
 0x3f8   :  { %v4800_v47 = vrot.slane %v4768_v46, 6  ;;  %v4928_v33 = vsel %vm267_vm2, %v4912_v27, %v4768_v46  ;;  %v4673_v12 = vmul.f32 %v9472_v38, %v4641_v60  ;;  %v4866_v25 = vsel %vm251_vm1, %v4290_v56, %v4370_v6 }
 0x3f9   :  { %v4830_v53 = vmul.f32 %v9462_v3, %v4798_v22  ;;  %v4751_v23 = vmul.f32 %v9464_v40, %v4719_v11  ;;  %v4436_v48 = vmul.f32 %v7940_v62, %v4404_v16  ;;  %v4450_v59 = vadd.f32 %v4434_v18, %v8285_v21 }
 0x3fa   :  { %v4832_v32 = vmul.f32 %v9463_v58, %v4800_v47  ;;  %v4689_v43 = vadd.f32 %v4673_v12, %v9475_v10  ;;  %v4868_v27 = vsel %vm251_vm1, %v4292_v37, %v4372_v42  ;;  %v4435_v46 = vmul.f32 %v9473_v61, %v4403_v50 }
 0x3fb   :  { %v4846_v4 = vadd.f32 %v4830_v53, %v8147_v19  ;;  %v4767_v49 = vadd.f32 %v4751_v23, %v8161_v39  ;;  %v4452_v3 = vadd.f32 %v4436_v48, %v8288_v57  ;;  %v4482_v58 = vrot.slane %v4450_v59, 6 }
 0x3fc   :  { %v4848_v56 = vadd.f32 %v4832_v32, %v8150_v8  ;;  %v4721_v6 = vrot.slane %v4689_v43, 6  ;;  %v4913_v16 = vsel %vm251_vm1, %v4609_v54, %v4689_v43  ;;  %v4882_v19 = vsel %vm267_vm2, %v4866_v25, %v4450_v59  ;;  %v9477_v59 = vld [vmem:[#allocation90_spill] sm:$0xff] }
 0x3fd   :  { %v8369_v60 = vsel %vm283_vm3, %v4926_v30, %v4846_v4  ;;  %v4799_v22 = vrot.slane %v4767_v49, 6  ;;  %v4927_v37 = vsel %vm267_vm2, %v4911_v55, %v4767_v49  ;;  %v4514_v42 = vmul.f32 %v7936_v34, %v4482_v58 }
 0x3fe   :  { %v8374_v23 = vsel %vm283_vm3, %v4928_v33, %v4848_v56  ;;  %v4753_v48 = vmul.f32 %v9472_v38, %v4721_v6  ;;  %v4484_v8 = vrot.slane %v4452_v3, 6  ;;  %v4884_v54 = vsel %vm267_vm2, %v4868_v27, %v4452_v3  ;;  %v5617_v6 = vld [vmem:[%s8718_s9 + $0x8] sm:$0xff]  }
 0x3ff   :  { %v4831_v50 = vmul.f32 %v9464_v40, %v4799_v22  ;;  %v4451_v30 = vadd.f32 %v4435_v46, %v8294_v24  ;;  %v4867_v11 = vsel %vm251_vm1, %v8313_v29, %v4371_v45  ;;  %v4530_v47 = vadd.f32 %v4514_v42, %v8285_v21 }
 0x400   :  { %v4769_v55 = vadd.f32 %v4753_v48, %v9475_v10  ;;  %v4516_v33 = vmul.f32 %v7940_v62, %v4484_v8  ;;  %v4437_v12 = vmul.f32 %v9474_v1, %v4405_v5  ;;  %v4869_v53 = vsel %vm251_vm1, %v8317_v0, %v4373_v44  ;;  %v5616_v62 = vld [vmem:[%s8718_s9] sm:$0xff]   ;;  %v9484_v8 = vld [vmem:[#allocation92_spill] sm:$0xff] }
 0x401   :  { %v4847_v34 = vadd.f32 %v4831_v50, %v8161_v39  ;;  %v4483_v18 = vrot.slane %v4451_v30, 6  ;;  %v4883_v40 = vsel %vm267_vm2, %v4867_v11, %v4451_v30  ;;  %v4562_v29 = vrot.slane %v4530_v47, 6  ;;  %v3254_v11 = vpop.f32.mrb[28].mxu1 }
 0x402   :  { %v4801_v25 = vrot.slane %v4769_v55, 6  ;;  %v4929_v32 = vsel %vm267_vm2, %v4913_v16, %v4769_v55  ;;  %v8393_v45 = vsel %vm283_vm3, %v4882_v19, %v4530_v47  ;;  %v4532_v39 = vadd.f32 %v4516_v33, %v8288_v57  ;;  %v9479_v16 = vld [vmem:[#allocation27_spill] sm:$0xff]  ;;  %v9482_v19 = vld [vmem:[#allocation36_spill] sm:$0xff]  ;;  %v9485_v55 = vld [vmem:[#allocation54_spill] sm:$0xff] }
 0x403   :  { %9476 = vst [vmem:[#allocation40_spill] sm:$0xff] %v8393_v45  ;;  %v8399_v21 = vsel %vm283_vm3, %v4927_v37, %v4847_v34  ;;  %v4515_v5 = vmul.f32 %v9473_v61, %v4483_v18  ;;  %v4453_v0 = vadd.f32 %v4437_v12, %v8297_v14  ;;  %v4196_v44 = vmul.f32 1.442695, %v8262_v52  ;;  %v9486_v33 = vld [vmem:[#allocation97_spill] sm:$0xff] }
 0x404   :  { %v4833_v43 = vmul.f32 %v9472_v38, %v4801_v25  ;;  %v4594_v27 = vmul.f32 %v9477_v59, %v4562_v29  ;;  %v4564_v4 = vrot.slane %v4532_v39, 6  ;;  %v8408_v49 = vsel %vm283_vm3, %v4884_v54, %v4532_v39  ;;  %v5618_v18 = vld [vmem:[%s8718_s9 + $0x10] sm:$0xff]  }
 0x405   :  { %9478 = vst [vmem:[#allocation41_spill] sm:$0xff] %v8408_v49  ;;  %v4531_v3 = vadd.f32 %v4515_v5, %v8294_v24  ;;  %v4485_v46 = vrot.slane %v4453_v0, 6  ;;  %v8987_v56 = vmov 0.0   ;;  %v4200_v57 = vmul.f32 1.442695, %v8272_v36  ;;  %v9481_v36 = vld [vmem:[#allocation34_spill] sm:$0xff] }
 0x406   :  { %5575 = vmatprep.subr.bf16.mxu1 %v8987_v56  ;;  %v4849_v61 = vadd.f32 %v4833_v43, %v9475_v10  ;;  %v4885_v52 = vsel %vm267_vm2, %v4869_v53, %v4453_v0  ;;  %v4610_v38 = vadd.f32 %v4594_v27, %v8306_v31  ;;  %v4596_v58 = vmul.f32 %v9479_v16, %v4564_v4  ;;  %v9490_v5 = vld [vmem:[#allocation87_spill] sm:$0xff] }
 0x407   :  { %5576 = vmatpush3.bf16.msra.mxu1 %v5616_v62  ;;  %v4563_v24 = vrot.slane %v4531_v3, 6  ;;  %v8421_v22 = vsel %vm283_vm3, %v4883_v40, %v4531_v3  ;;  %v4517_v37 = vmul.f32 %v9474_v1, %v4485_v46  ;;  %v4280_v10 = vmul.f32 0.0, %v9481_v36  ;;  %v3297_v1 = vpop.f32.mrb[32].mxu0  ;;  %v9487_v40 = vld [vmem:[#allocation32_spill] sm:$0xff] }
 0x408   :  { %9480 = vst [vmem:[#allocation42_spill] sm:$0xff] %v8421_v22  ;;  %5577 = vmatprep.subr.bf16.mxu1 %v8987_v56  ;;  %5822 = vpow2.f32 %v9482_v19  ;;  %v8428_v48 = vsel %vm283_vm3, %v4929_v32, %v4849_v61  ;;  %v4642_v42 = vrot.slane %v4610_v38, 6  ;;  %v8433_v30 = vadd.f32 %v4596_v58, %v8309_v28  ;;  %v3256_v32 = vpop.f32.mrb[29].mxu1  ;;  %v3299_v29 = vpop.f32.mrb[33].mxu0 }
 0x409   :  { %9483 = vst [vmem:[#allocation101_spill] sm:$0xff] %v8428_v48  ;;  %5824 = vpow2.f32 %v4196_v44  ;;  %v4595_v50 = vmul.f32 %v9484_v8, %v4563_v24  ;;  %v4533_v54 = vadd.f32 %v4517_v37, %v8297_v14  ;;  %v4279_v47 = vmul.f32 0.0, %v9485_v55  ;;  %v9488_v14 = vld [vmem:[#allocation89_spill] sm:$0xff]  ;;  %v9491_v44 = vld [vmem:[#allocation88_spill] sm:$0xff]  ;;  %v3258_v27 = vpop.f32.mrb[30].mxu1  ;;  %v3301_v4 = vpop.f32.mrb[34].mxu0 }
 0x40a   :  { %v4281_v12 = vmul.f32 0.0, %v9486_v33  ;;  %5826 = vpow2.f32 %v4200_v57  ;;  %v4674_v34 = vmul.f32 %v9477_v59, %v4642_v42  ;;  %v8442_v53 = vmul.f32 %v9487_v40, %v3254_v11  ;;  %v9492_v57 = vld [vmem:[#allocation35_spill] sm:$0xff]  ;;  %v9494_v24 = vld [vmem:[#allocation30_spill] sm:$0xff]  ;;  %v3260_v19 = vpop.f32.mrb[31].mxu1  ;;  %v3303_v42 = vpop.f32.mrb[35].mxu0 }
 0x40b   :  { %5578 = vmatpush3.bf16.msra.mxu1 %v5617_v6  ;;  %v8445_v25 = vmul.f32 %v9488_v14, %v3297_v1  ;;  %v4565_v62 = vrot.slane %v4533_v54, 6  ;;  %v8448_v39 = vsel %vm283_vm3, %v4885_v52, %v4533_v54  ;;  %v8452_v0 = vmul.f32 %v9490_v5, %v3256_v32  ;;  %v9493_v6 = vld [vmem:[#allocation94_spill] sm:$0xff]  ;;  %v9495_v32 = vld [vmem:[#allocation93_spill] sm:$0xff] }
 0x40c   :  { %9489 = vst [vmem:[#allocation99_spill] sm:$0xff] %v8448_v39  ;;  %5579 = vmatprep.subr.bf16.mxu1 %v8987_v56  ;;  %v8455_v43 = vmul.f32 %v9491_v44, %v3299_v29  ;;  %v4690_v3 = vadd.f32 %v4674_v34, %v8306_v31  ;;  %v4644_v46 = vrot.slane %v8433_v30, 6  ;;  %v4294_v61 = vadd.f32 %v9492_v57, %v8442_v53 }
 0x40d   :  { %v4296_v52 = vadd.f32 %v4280_v10, %v8445_v25  ;;  %v8463_v58 = vmul.f32 %v9493_v6, %v3258_v27  ;;  %v8466_v37 = vmul.f32 %v9494_v24, %v3301_v4  ;;  %v8469_v54 = vadd.f32 %v4279_v47, %v8452_v0  ;;  %v5619_v10 = vld [vmem:[%s8718_s9 + $0x18] sm:$0xff]  }
 0x40e   :  { %v8472_v11 = vadd.f32 %v4281_v12, %v8455_v43  ;;  %v8475_v1 = vmul.f32 %v8266_v17, %v3260_v19  ;;  %v8478_v34 = vmul.f32 %v8278_v63, %v3303_v42  ;;  %v4326_v40 = vrot.slane %v4294_v61, 6 }
 0x40f   :  { %5580 = vmatpush3.bf16.msra.mxu1 %v5618_v18  ;;  %v4328_v14 = vrot.slane %v4296_v52, 6  ;;  %v4597_v29 = vmul.f32 %v9495_v32, %v4565_v62  ;;  %v4722_v47 = vrot.slane %v4690_v3, 6  ;;  %v4327_v12 = vrot.slane %v8469_v54, 6  ;;  %v9496_v18 = vld [vmem:[#allocation95_spill] sm:$0xff] }
 0x410   :  { %5581 = vmatprep.subr.bf16.mxu1 %v8987_v56  ;;  %v4329_v17 = vrot.slane %v8472_v11, 6  ;;  %v4914_v5 = vsel %vm251_vm1, %v4610_v38, %v4690_v3  ;;  %v4676_v63 = vmul.f32 %v9479_v16, %v4644_v46  ;;  %v4358_v44 = vmul.f32 %v9496_v18, %v4326_v40 }
 0x411   :  { %v4360_v27 = vmul.f32 %v9481_v36, %v4328_v14  ;;  %v4754_v4 = vmul.f32 %v9477_v59, %v4722_v47  ;;  %v4611_v57 = vadd.f32 %v4595_v50, %v8320_v26  ;;  %v4359_v6 = vmul.f32 %v9485_v55, %v4327_v12 }
 0x412   :  { %v8493_v62 = vpop.eup %5822  ;;  %v4361_v24 = vmul.f32 %v9486_v33, %v4329_v17  ;;  %v4692_v19 = vadd.f32 %v4676_v63, %v8309_v28  ;;  %v4613_v38 = vadd.f32 %v4597_v29, %v8323_v2  ;;  %v4374_v46 = vadd.f32 %v4358_v44, %v8442_v53 }
 0x413   :  { %5582 = vmatpush3.bf16.msra.mxu1 %v5619_v10  ;;  %v8499_v3 = vpop.eup %5824  ;;  %v4376_v42 = vadd.f32 %v4360_v27, %v8445_v25  ;;  %v4770_v40 = vadd.f32 %v4754_v4, %v8306_v31  ;;  %v4643_v50 = vrot.slane %v4611_v57, 6  ;;  %v4375_v47 = vadd.f32 %v4359_v6, %v8452_v0 }
 0x414   :  { %5583 = vmatprep.subr.bf16.mxu1 %v8987_v56  ;;  %v8505_v14 = vpop.eup %5826  ;;  %v8509_v12 = vadd.f32 %v4361_v24, %v8455_v43  ;;  %v4724_v29 = vrot.slane %v4692_v19, 6  ;;  %v4916_v10 = vsel %vm251_vm1, %v8433_v30, %v4692_v19  ;;  %v4406_v17 = vrot.slane %v4374_v46, 6 }
 0x415   :  { %v4408_v63 = vrot.slane %v4376_v42, 6  ;;  %v4802_v44 = vrot.slane %v4770_v40, 6  ;;  %v4930_v27 = vsel %vm267_vm2, %v4914_v5, %v4770_v40  ;;  %v4407_v4 = vrot.slane %v4375_v47, 6 }
 0x416   :  { %v4409_v39 = vrot.slane %v8509_v12, 6  ;;  %v4756_v56 = vmul.f32 %v9479_v16, %v4724_v29  ;;  %v4675_v22 = vmul.f32 %v9484_v8, %v4643_v50  ;;  %v4645_v24 = vrot.slane %v4613_v38, 6 }
 0x417   :  { %v4834_v6 = vmul.f32 %v9477_v59, %v4802_v44  ;;  %v4438_v49 = vmul.f32 %v9496_v18, %v4406_v17  ;;  %v4870_v45 = vsel %vm251_vm1, %v4294_v61, %v4374_v46  ;;  %v4440_v5 = vmul.f32 %v9481_v36, %v4408_v63  ;;  %v5620_v61 = vld [vmem:[%s8718_s9 + $0x20] sm:$0xff]   ;;  %v5621_v63 = vld [vmem:[%s8718_s9 + $0x28] sm:$0xff]  }
 0x418   :  { %v4772_v30 = vadd.f32 %v4756_v56, %v8309_v28  ;;  %v4691_v19 = vadd.f32 %v4675_v22, %v8320_v26  ;;  %v4872_v40 = vsel %vm251_vm1, %v4296_v52, %v4376_v42  ;;  %v4677_v29 = vmul.f32 %v9495_v32, %v4645_v24  ;;  %5584 = vmatpush3.bf16.msra.mxu1 %v5620_v61 }
 0x419   :  { %v4850_v48 = vadd.f32 %v4834_v6, %v8306_v31  ;;  %v4454_v50 = vadd.f32 %v4438_v49, %v8442_v53  ;;  %v4439_v59 = vmul.f32 %v9485_v55, %v4407_v4  ;;  %v4456_v4 = vadd.f32 %v4440_v5, %v8445_v25 }
 0x41a   :  { %v4804_v46 = vrot.slane %v4772_v30, 6  ;;  %v4932_v56 = vsel %vm267_vm2, %v4916_v10, %v4772_v30  ;;  %v4723_v22 = vrot.slane %v4691_v19, 6  ;;  %v4915_v17 = vsel %vm251_vm1, %v4611_v57, %v4691_v19 }
 0x41b   :  { %v8534_v52 = vsel %vm283_vm3, %v4930_v27, %v4850_v48  ;;  %v4693_v31 = vadd.f32 %v4677_v29, %v8323_v2  ;;  %v4486_v42 = vrot.slane %v4454_v50, 6  ;;  %v4886_v49 = vsel %vm267_vm2, %v4870_v45, %v4454_v50 }
 0x41c   :  { %v4836_v44 = vmul.f32 %v9479_v16, %v4804_v46  ;;  %v4755_v10 = vmul.f32 %v9484_v8, %v4723_v22  ;;  %v4455_v57 = vadd.f32 %v4439_v59, %v8452_v0  ;;  %v9497_v48 = vmov 0.0  }
 0x41d   :  { %5585 = vmatprep.subr.bf16.mxu1 %v9497_v48  ;;  %v4725_v27 = vrot.slane %v4693_v31, 6  ;;  %v4917_v6 = vsel %vm251_vm1, %v4613_v38, %v4693_v31  ;;  %v4518_v45 = vmul.f32 %v9496_v18, %v4486_v42  ;;  %v4871_v24 = vsel %vm251_vm1, %v8469_v54, %v4375_v47  ;;  %v5622_v18 = vld [vmem:[%s8718_s9 + $0x30] sm:$0xff]   ;;  %5591 = vmatprep.mubr.msk.bf16.mxu1 %vm6038_vm12, %v9497_v48 }
 0x41e   :  { %v4852_v30 = vadd.f32 %v4836_v44, %v8309_v28  ;;  %v4771_v16 = vadd.f32 %v4755_v10, %v8320_v26  ;;  %v4488_v19 = vrot.slane %v4456_v4, 6  ;;  %v4888_v29 = vsel %vm267_vm2, %v4872_v40, %v4456_v4  ;;  %5586 = vmatpush3.bf16.msra.mxu1 %v5621_v63 }
 0x41f   :  { %v4757_v5 = vmul.f32 %v9495_v32, %v4725_v27  ;;  %v4534_v50 = vadd.f32 %v4518_v45, %v8442_v53  ;;  %v4487_v59 = vrot.slane %v4455_v57, 6  ;;  %v4887_v61 = vsel %vm267_vm2, %v4871_v24, %v4455_v57  ;;  %5587 = vmatprep.subr.bf16.mxu1 %v9497_v48 }
 0x420   :  { %v8560_v54 = vsel %vm283_vm3, %v4932_v56, %v4852_v30  ;;  %v4803_v28 = vrot.slane %v4771_v16, 6  ;;  %v4931_v38 = vsel %vm267_vm2, %v4915_v17, %v4771_v16  ;;  %v4520_v47 = vmul.f32 %v9481_v36, %v4488_v19 }
 0x421   :  { %v4773_v53 = vadd.f32 %v4757_v5, %v8323_v2  ;;  %v4566_v40 = vrot.slane %v4534_v50, 6  ;;  %v8567_v46 = vsel %vm283_vm3, %v4886_v49, %v4534_v50  ;;  %v4519_v22 = vmul.f32 %v9485_v55, %v4487_v59  ;;  %v3340_v50 = vpop.f32.mrb[32].mxu1 }
 0x422   :  { %v4835_v31 = vmul.f32 %v9484_v8, %v4803_v28  ;;  %v4536_v56 = vadd.f32 %v4520_v47, %v8445_v25  ;;  %v4441_v42 = vmul.f32 %v9486_v33, %v4409_v39  ;;  %v4873_v36 = vsel %vm251_vm1, %v8472_v11, %v8509_v12  ;;  %5588 = vmatpush3.bf16.msra.mxu1 %v5622_v18  ;;  %v5623_v8 = vld [vmem:[%s8718_s9 + $0x38] sm:$0xff]   ;;  %v9498_v18 = vld [vmem:[#allocation91_spill] sm:$0xff]  ;;  %v3342_v47 = vpop.f32.mrb[33].mxu1 }
 0x423   :  { %v4805_v17 = vrot.slane %v4773_v53, 6  ;;  %v4933_v63 = vsel %vm267_vm2, %v4917_v6, %v4773_v53  ;;  %v4598_v44 = vmul.f32 %v8340_v15, %v4566_v40  ;;  %v4535_v49 = vadd.f32 %v4519_v22, %v8452_v0  ;;  %5589 = vmatprep.subr.bf16.mxu1 %v9497_v48  ;;  %v9500_v22 = vld [vmem:[#allocation24_spill] sm:$0xff] }
 0x424   :  { %v4851_v55 = vadd.f32 %v4835_v31, %v8320_v26  ;;  %v4568_v25 = vrot.slane %v4536_v56, 6  ;;  %v8584_v39 = vsel %vm283_vm3, %v4888_v29, %v4536_v56  ;;  %v4457_v11 = vadd.f32 %v4441_v42, %v8455_v43  ;;  %v9501_v56 = vld [vmem:[#allocation98_spill] sm:$0xff] }
 0x425   :  { %v4837_v12 = vmul.f32 %v9495_v32, %v4805_v17  ;;  %v4567_v10 = vrot.slane %v4535_v49, 6  ;;  %v8590_v0 = vsel %vm283_vm3, %v4887_v61, %v4535_v49  ;;  %v4614_v4 = vadd.f32 %v4598_v44, %v8463_v58 }
 0x426   :  { %v8594_v57 = vsel %vm283_vm3, %v4931_v38, %v4851_v55  ;;  %v4600_v26 = vmul.f32 %v8493_v62, %v4568_v25  ;;  %v4489_v27 = vrot.slane %v4457_v11, 6  ;;  %v4889_v6 = vsel %vm267_vm2, %v4873_v36, %v4457_v11  ;;  %5590 = vmatpush3.bf16.msra.mxu1 %v5623_v8  ;;  %v3344_v36 = vpop.f32.mrb[34].mxu1 }
 0x427   :  { %v4853_v45 = vadd.f32 %v4837_v12, %v8323_v2  ;;  %v4599_v24 = vmul.f32 %v8499_v3, %v4567_v10  ;;  %v4646_v30 = vrot.slane %v4614_v4, 6  ;;  %v3383_v2 = vpop.f32.mrb[36].mxu0  ;;  %v4954_v28 = vmul.f32 %v9498_v18, %v3340_v50  ;;  %v3346_v8 = vpop.f32.mrb[35].mxu1 }
 0x428   :  { %v4521_v32 = vmul.f32 %v9486_v33, %v4489_v27  ;;  %v4616_v16 = vadd.f32 %v4600_v26, %v8466_v37  ;;  %v9499_v33 = vld [vmem:[#allocation96_spill] sm:$0xff]  ;;  %v3385_v53 = vpop.f32.mrb[37].mxu0  ;;  %v4955_v31 = vmul.f32 %v9500_v22, %v3342_v47  ;;  %v4971_v10 = vmul.f32 %v8255_v41, %v3346_v8 }
 0x429   :  { %v8604_v19 = vsel %vm283_vm3, %v4933_v63, %v4853_v45  ;;  %v4678_v29 = vmul.f32 %v8340_v15, %v4646_v30  ;;  %v4615_v5 = vadd.f32 %v4599_v24, %v8475_v1  ;;  %v4956_v38 = vmul.f32 %v9499_v33, %v3383_v2  ;;  %v3387_v17 = vpop.f32.mrb[38].mxu0 }
 0x42a   :  { %v4537_v59 = vadd.f32 %v4521_v32, %v8455_v43  ;;  %v4648_v61 = vrot.slane %v4616_v16, 6  ;;  %v4957_v42 = vmul.f32 %v9501_v56, %v3385_v53  ;;  %v4970_v43 = vmul.f32 %v8209_v13, %v3344_v36  ;;  %v3389_v55 = vpop.f32.mrb[39].mxu0 }
 0x42b   :  { %v4694_v48 = vadd.f32 %v4678_v29, %v8463_v58  ;;  %v4647_v40 = vrot.slane %v4615_v5, 6  ;;  %v4972_v49 = vmul.f32 %v8227_v35, %v3387_v17  ;;  %v4986_v12 = vadd.f32 %v4955_v31, %v4954_v28 }
 0x42c   :  { %v4569_v63 = vrot.slane %v4537_v59, 6  ;;  %v8615_v44 = vsel %vm283_vm3, %v4889_v6, %v4537_v59  ;;  %v4973_v26 = vmul.f32 %v8281_v20, %v3389_v55  ;;  %v4680_v6 = vmul.f32 %v8493_v62, %v4648_v61 }
 0x42d   :  { %v4726_v25 = vrot.slane %v4694_v48, 6  ;;  %v4918_v11 = vsel %vm251_vm1, %v4614_v4, %v4694_v48  ;;  %v4679_v13 = vmul.f32 %v8499_v3, %v4647_v40  ;;  %v4988_v24 = vadd.f32 %v4986_v12, %v4956_v38 }
 0x42e   :  { %v4601_v27 = vmul.f32 %v8505_v14, %v4569_v63  ;;  %v4987_v35 = vadd.f32 %v4971_v10, %v4970_v43  ;;  %v4696_v4 = vadd.f32 %v4680_v6, %v8466_v37 }
 0x42f   :  { %v4758_v45 = vmul.f32 %v8340_v15, %v4726_v25  ;;  %v4695_v41 = vadd.f32 %v4679_v13, %v8475_v1  ;;  %v4990_v29 = vadd.f32 %v4988_v24, %v4957_v42 }
 0x430   :  { %v4617_v30 = vadd.f32 %v4601_v27, %v8478_v34  ;;  %v4989_v20 = vadd.f32 %v4987_v35, %v4972_v49  ;;  %v4728_v18 = vrot.slane %v4696_v4, 6  ;;  %v4920_v61 = vsel %vm251_vm1, %v4616_v16, %v4696_v4 }
 0x431   :  { %v4774_v32 = vadd.f32 %v4758_v45, %v8463_v58  ;;  %v4727_v33 = vrot.slane %v4695_v41, 6  ;;  %v4919_v38 = vsel %vm251_vm1, %v4615_v5, %v4695_v41 }
 0x432   :  { %v4649_v50 = vrot.slane %v4617_v30, 6  ;;  %v4991_v28 = vadd.f32 %v4989_v20, %v4973_v26  ;;  %v4760_v48 = vmul.f32 %v8493_v62, %v4728_v18 }
 0x433   :  { %v4806_v2 = vrot.slane %v4774_v32, 6  ;;  %v4934_v59 = vsel %vm267_vm2, %v4918_v11, %v4774_v32  ;;  %v4759_v40 = vmul.f32 %v8499_v3, %v4727_v33  ;;  %v9502_v32 = vld [vmem:[#allocation37_spill] sm:$0xff] }
 0x434   :  { %v4681_v47 = vmul.f32 %v8505_v14, %v4649_v50  ;;  %v4776_v56 = vadd.f32 %v4760_v48, %v8466_v37 }
 0x435   :  { %v4838_v53 = vmul.f32 %v8340_v15, %v4806_v2  ;;  %v4775_v16 = vadd.f32 %v4759_v40, %v8475_v1 }
 0x436   :  { %v4697_v22 = vadd.f32 %v4681_v47, %v8478_v34  ;;  %v4808_v17 = vrot.slane %v4776_v56, 6  ;;  %v4936_v15 = vsel %vm267_vm2, %v4920_v61, %v4776_v56 }
 0x437   :  { %v4854_v31 = vadd.f32 %v4838_v53, %v8463_v58  ;;  %v4807_v63 = vrot.slane %v4775_v16, 6  ;;  %v4935_v43 = vsel %vm267_vm2, %v4919_v38, %v4775_v16 }
 0x438   :  { %v4729_v42 = vrot.slane %v4697_v22, 6  ;;  %v4921_v36 = vsel %vm251_vm1, %v4617_v30, %v4697_v22  ;;  %v4840_v58 = vmul.f32 %v8493_v62, %v4808_v17 }
 0x439   :  { %v8643_v5 = vsel %vm283_vm3, %v4934_v59, %v4854_v31  ;;  %v4839_v8 = vmul.f32 %v8499_v3, %v4807_v63  ;;  %v3426_v6 = vpop.f32.mrb[36].mxu1 }
 0x43a   :  { %v4761_v49 = vmul.f32 %v8505_v14, %v4729_v42  ;;  %v4856_v25 = vadd.f32 %v4840_v58, %v8466_v37  ;;  %v3469_v37 = vpop.f32.mrb[40].mxu0  ;;  %v3428_v24 = vpop.f32.mrb[37].mxu1  ;;  %v9506_v42 = vld [vmem:[#allocation42_spill] sm:$0xff] }
 0x43b   :  { %v4855_v11 = vadd.f32 %v4839_v8, %v8475_v1  ;;  %v4958_v1 = vmul.f32 %v8233_v51, %v3426_v6  ;;  %v4960_v13 = vmul.f32 %v8238_v9, %v3469_v37  ;;  %v3471_v35 = vpop.f32.mrb[41].mxu0  ;;  %v4959_v30 = vmul.f32 %v8251_v7, %v3428_v24  ;;  %v3430_v41 = vpop.f32.mrb[38].mxu1  ;;  %v9503_v51 = vld [vmem:[#allocation101_spill] sm:$0xff] }
 0x43c   :  { %v4777_v55 = vadd.f32 %v4761_v49, %v8478_v34  ;;  %v8655_v26 = vsel %vm283_vm3, %v4936_v15, %v4856_v25  ;;  %v4961_v4 = vmul.f32 %v9502_v32, %v3471_v35  ;;  %v3473_v20 = vpop.f32.mrb[42].mxu0  ;;  %v3432_v2 = vpop.f32.mrb[39].mxu1 }
 0x43d   :  { %v8658_v27 = vsel %vm283_vm3, %v4935_v43, %v4855_v11  ;;  %v4976_v50 = vmul.f32 %v8374_v23, %v3473_v20  ;;  %v3475_v59 = vpop.f32.mrb[43].mxu0  ;;  %v4975_v18 = vmul.f32 %v8399_v21, %v3432_v2  ;;  %v9507_v21 = vld [vmem:[#allocation99_spill] sm:$0xff]  ;;  %v9508_v11 = vld [vmem:[#allocation20_spill] sm:$0xff] }
 0x43e   :  { %v4809_v12 = vrot.slane %v4777_v55, 6  ;;  %v4937_v10 = vsel %vm267_vm2, %v4921_v36, %v4777_v55  ;;  %v4977_v61 = vmul.f32 %v9503_v51, %v3475_v59 }
 0x440   :  { %v4841_v45 = vmul.f32 %v8505_v14, %v4809_v12  ;;  %v4992_v14 = vadd.f32 %v4990_v29, %v4958_v1  ;;  %v9504_v29 = vld [vmem:[#allocation40_spill] sm:$0xff]  ;;  %v5027_v12 = vsub.f32 0.0, %v9508_v11 }
 0x442   :  { %v4857_v62 = vadd.f32 %v4841_v45, %v8478_v34  ;;  %v4974_v34 = vmul.f32 %v8369_v60, %v3430_v41  ;;  %v4994_v9 = vadd.f32 %v4992_v14, %v4959_v30  ;;  %v9505_v60 = vld [vmem:[#allocation41_spill] sm:$0xff] }
 0x444   :  { %v8663_v3 = vsel %vm283_vm3, %v4937_v10, %v4857_v62  ;;  %v4993_v33 = vadd.f32 %v4991_v28, %v4974_v34  ;;  %v4996_v38 = vadd.f32 %v4994_v9, %v4960_v13  ;;  %v9509_v62 = vld [vmem:[#allocation21_spill] sm:$0xff]  ;;  %v5029_v13 = vmul.f32 1.442695, %v5027_v12 }
 0x445   :  { %v5028_v6 = vsub.f32 0.0, %v9509_v62 }
 0x446   :  { %v4995_v47 = vadd.f32 %v4993_v33, %v4975_v18  ;;  %v4998_v7 = vadd.f32 %v4996_v38, %v4961_v4  ;;  %5828 = vpow2.f32 %v5029_v13 }
 0x448   :  { %v4997_v53 = vadd.f32 %v4995_v47, %v4976_v50 }
 0x44a   :  { %v4999_v48 = vadd.f32 %v4997_v53, %v4977_v61 }
 0x460   :  { %v3512_v40 = vpop.f32.mrb[40].mxu1 }
 0x461   :  { %v3555_v22 = vpop.f32.mrb[44].mxu0  ;;  %v4962_v31 = vmul.f32 %v9504_v29, %v3512_v40  ;;  %v3514_v23 = vpop.f32.mrb[41].mxu1  ;;  %v9510_v29 = vld [vmem:[#allocation22_spill] sm:$0xff] }
 0x462   :  { %v4964_v56 = vmul.f32 %v9505_v60, %v3555_v22  ;;  %v3557_v16 = vpop.f32.mrb[45].mxu0  ;;  %v4963_v36 = vmul.f32 %v9506_v42, %v3514_v23  ;;  %v3516_v15 = vpop.f32.mrb[42].mxu1 }
 0x463   :  { %v4965_v17 = vmul.f32 %v9507_v21, %v3557_v16  ;;  %v3559_v63 = vpop.f32.mrb[46].mxu0  ;;  %v5000_v28 = vadd.f32 %v4998_v7, %v4962_v31  ;;  %v4978_v43 = vmul.f32 %v8534_v52, %v3516_v15  ;;  %v3518_v58 = vpop.f32.mrb[43].mxu1  ;;  %v5031_v52 = vmul.f32 1.442695, %v5028_v6  ;;  %v9511_v16 = vld [vmem:[#allocation23_spill] sm:$0xff] }
 0x464   :  { %v4980_v49 = vmul.f32 %v8560_v54, %v3559_v63  ;;  %v3561_v8 = vpop.f32.mrb[47].mxu0  ;;  %v4979_v55 = vmul.f32 %v8594_v57, %v3518_v58  ;;  %v5829_v54 = vpop.eup %5828  ;;  %v5836_v15 = vld [vmem:[%s8709_s0] sm:$0xff] }
 0x465   :  { %v4981_v25 = vmul.f32 %v8604_v19, %v3561_v8  ;;  %v5002_v10 = vadd.f32 %v5000_v28, %v4963_v36  ;;  %v5001_v45 = vadd.f32 %v4999_v48, %v4978_v43  ;;  %5830 = vpow2.f32 %v5031_v52  ;;  %v5557_v48 = vld [vmem:[#allocation13] ss:$0 sm:$0xff] }
 0x466   :  { %v5033_v57 = vadd.f32 1.0, %v5829_v54  ;;  %v5023_v31 = vmul.f32 %v5557_v48, %v9510_v29  ;;  %v5024_v42 = vmul.f32 %v5557_v48, %v9511_v16  ;;  %v5060_v63 = vmul.f32 2.0, %v5836_v15  ;;  %v5837_v28 = vld [vmem:[%s8709_s0 + $0x8] sm:$0xff] }
 0x467   :  { %v5004_v37 = vadd.f32 %v5002_v10, %v4964_v56  ;;  %v5003_v1 = vadd.f32 %v5001_v45, %v4979_v55  ;;  %v5061_v43 = vmul.f32 2.0, %v5837_v28 }
 0x468   :  { %5832 = vrcp.f32 %v5033_v57 }
 0x469   :  { %v5006_v24 = vadd.f32 %v5004_v37, %v4965_v17  ;;  %v5005_v35 = vadd.f32 %v5003_v1, %v4980_v49 }
 0x46b   :  { %v5007_v30 = vadd.f32 %v5005_v35, %v4981_v25 }
 0x46f   :  { %v5831_v32 = vpop.eup %5830 }
 0x470   :  { %v5034_v4 = vadd.f32 1.0, %v5831_v32 }
 0x472   :  { %5834 = vrcp.f32 %v5034_v4  ;;  %v5833_v22 = vpop.eup %5832 }
 0x47c   :  { %v5835_v56 = vpop.eup %5834 }
 0x48a   :  { %v3598_v19 = vpop.f32.mrb[44].mxu1 }
 0x48b   :  { %v3641_v41 = vpop.f32.mrb[48].mxu0  ;;  %v4966_v20 = vmul.f32 %v8567_v46, %v3598_v19  ;;  %v3600_v34 = vpop.f32.mrb[45].mxu1 }
 0x48c   :  { %v4968_v14 = vmul.f32 %v8584_v39, %v3641_v41  ;;  %v3643_v50 = vpop.f32.mrb[49].mxu0  ;;  %v4967_v2 = vmul.f32 %v8590_v0, %v3600_v34  ;;  %v3602_v18 = vpop.f32.mrb[46].mxu1 }
 0x48d   :  { %v4969_v59 = vmul.f32 %v8615_v44, %v3643_v50  ;;  %v3645_v51 = vpop.f32.mrb[50].mxu0  ;;  %v5008_v61 = vadd.f32 %v5006_v24, %v4966_v20  ;;  %v4982_v9 = vmul.f32 %v8643_v5, %v3602_v18  ;;  %v3604_v38 = vpop.f32.mrb[47].mxu1  ;;  %v5039_v5 = vmul.f32 %v5833_v22, %v9508_v11 }
 0x48e   :  { %v4984_v33 = vmul.f32 %v8655_v26, %v3645_v51  ;;  %v3647_v47 = vpop.f32.mrb[51].mxu0  ;;  %v4983_v7 = vmul.f32 %v8658_v27, %v3604_v38  ;;  %v5040_v27 = vmul.f32 %v5835_v56, %v9509_v62 }
 0x48f   :  { %v4985_v46 = vmul.f32 %v8663_v3, %v3647_v47  ;;  %v5010_v39 = vadd.f32 %v5008_v61, %v4967_v2  ;;  %v5009_v53 = vadd.f32 %v5007_v30, %v4982_v9 }
 0x491   :  { %v5012_v40 = vadd.f32 %v5010_v39, %v4968_v14  ;;  %v5011_v0 = vadd.f32 %v5009_v53, %v4983_v7 }
 0x493   :  { %v5014_v44 = vadd.f32 %v5012_v40, %v4969_v59  ;;  %v5013_v60 = vadd.f32 %v5011_v0, %v4984_v33 }
 0x495   :  { %v5025_v26 = vadd.f32 %v5023_v31, %v5014_v44  ;;  %v5015_v23 = vadd.f32 %v5013_v60, %v4985_v46 }
 0x497   :  { %v5041_v3 = vmul.f32 %v5039_v5, %v5025_v26  ;;  %v5026_v36 = vadd.f32 %v5024_v42, %v5015_v23 }
 0x499   :  { %v5042_v21 = vmul.f32 %v5040_v27, %v5026_v36 }
 0x49b   :  { %v5043_v17 = vpack.c.bf16 %v5042_v21, %v5041_v3 }
 0x49d   :  { %5592 = vmatmul.mubr.bf16.vlgmr.msra.gmra.mrb[48].mxu1 %v5043_v17 }
 0x570   :  { %v5144_v49 = vpop.f32.mrb[48].mxu1 }
 0x571   :  { %v5145_v58 = vadd.f32 %v5144_v49, %v5060_v63  ;;  %v5593_v8 = vpop.f32.mrb[49].mxu1 }
 0x572   :  { %v5147_v55 = vpop.f32.mrb[50].mxu1 }
 0x573   :  { %5151 = vst.msk [vmem:[%s8719_s10] sm:$0xff] %vm137_vm0, %v5145_v58  ;;  %v5148_v25 = vadd.f32 %v5147_v55, %v5061_v43  ;;  %v5594_v11 = vpop.f32.mrb[51].mxu1 }
 0x575   :  { %5152 = vst.msk [vmem:[%s8719_s10 + $0x8] sm:$0xff] %vm137_vm0, %v5148_v25 }
 0x576   :  { %5157 = vsyncpa [#allocation3], 1 }
 0x577   :  { %5158 = vsyncpa [#allocation5], 1 }
 0x578   :  { %5159 = vsyncpa [#allocation8], 1 }
 0x579   :  { %5160 = vsyncpa [#allocation11], 1 }
 0x57a   :  { %5161 = vsyncpa [#allocation14], 1 }

</bundles_post_ra>
